<compile_context>
chip_gen: v5e
topology: v5e:2x2
jax: 0.10.0
libtpu: 0.0.40
codegen_flags: <defaults>
</compile_context>

<pallas_src>
import functools

import jax
import jax.numpy as jnp
from jax.experimental import pallas as pl
from jax.experimental.pallas import tpu as pltpu

# ----------------------------------------------------------------------------
# Config (small shapes consistent with the module's forward pass)
# ----------------------------------------------------------------------------
NUM_CLASSES = 16
IMAGE_HEIGHT = 32
IMAGE_WIDTH = 256
BATCH = 2
IN_CHANNELS = 1
PATCH = 32                               # /32 spatial downsampling of the extractor
EXTRACTOR_HIDDEN = 128                   # hidden width of the placeholder extractor
CNN_OUT_CHANNELS = 32                    # cnn_output_channels
MAPPED_HIDDEN = 32                       # num_feats_mapped_seq_hidden
SEQ_HIDDEN = 32                          # num_feats_seq_hidden
OUTPUT_HEIGHT = IMAGE_HEIGHT // 32       # = 1
LANE = 128                               # TPU lane width; final dense padded to this

H = SEQ_HIDDEN                           # LSTM hidden size
G = 4 * H                                # gate lanes per direction (= 128)

PACKED_KEYS = ("we1", "be1", "we2", "be2", "wmap", "bmap",
               "wih1", "b1", "whh1_f", "whh1_b",
               "wih2", "b2", "whh2_f", "whh2_b",
               "wd", "bd")

VMEM_SPEC = pl.BlockSpec(memory_space=pltpu.MemorySpace.VMEM)


def _dot(a, b):
    return jnp.dot(a, b, preferred_element_type=jnp.float32)


# ----------------------------------------------------------------------------
# Fused bidirectional LSTM layer (used inside the kernel)
# ----------------------------------------------------------------------------
def _bilstm_layer(gx, whh_f, whh_b, gxflat_ref, gxbuf_ref, hbuf_ref, lbuf_ref, n):
    """One bidirectional LSTM layer, PyTorch gate order [i, f, g, o].

    gx : (T*n, 8H) hoisted input projections (+bias) for both directions,
         lanes [0:4H] = forward, [4H:8H] = backward, rows ordered t*n + batch.
    Writes (T*n, 2H) rows = [h_fwd(t) | h_bwd(t)] into lbuf_ref.
    """
    steps = gxbuf_ref.shape[0]

    # Stage the hoisted projections per step, with the two directions stacked
    # along sublanes, so the recurrence reads exactly one (2n, 4H) block per
    # step.  This depends only on `gx` -> off the serial recurrent chain.
    gxflat_ref[...] = gx
    for s in range(steps):
        gxbuf_ref[s, 0:n, :] = gxflat_ref[n * s:n * (s + 1), 0:G]                       # fwd, t = s
        gxbuf_ref[s, n:2 * n, :] = gxflat_ref[n * (steps - 1 - s):n * (steps - s), G:2 * G]  # bwd, t = T-1-s

    # Row masks selecting the fwd / bwd half of the sublane-stacked state, so a
    # single stacked state feeds both recurrent matmuls (no slicing / concat).
    row = jax.lax.broadcasted_iota(jnp.int32, (2 * n, 1), 0)
    m_f = (row < n).astype(jnp.float32)
    m_b = (row >= n).astype(jnp.float32)
    # Pre-scale the `g` gate lanes by 2 so ONE sigmoid pass yields every gate:
    # tanh(g) = 2*sigmoid(2g) - 1.
    lane = jax.lax.broadcasted_iota(jnp.int32, (2 * n, G), 1)
    g_scale = jnp.where((lane >= 2 * H) & (lane < 3 * H),
                        jnp.float32(2.0), jnp.float32(1.0))

    h_st = jnp.zeros((2 * n, H), jnp.float32)     # rows 0:n fwd, rows n:2n bwd
    c_st = jnp.zeros((2 * n, H), jnp.float32)
    for s in range(steps):                        # static trip count -> fully unrolled
        g_hh = _dot(h_st * m_f, whh_f) + _dot(h_st * m_b, whh_b)
        gates = (gxbuf_ref[s] + g_hh) * g_scale   # (2n, 4H): both dirs in one vreg
        sg = jax.nn.sigmoid(gates)                # single EUP pass per step
        i_g = sg[:, 0 * H:1 * H]
        f_g = sg[:, 1 * H:2 * H]
        g_g = 2.0 * sg[:, 2 * H:3 * H] - 1.0      # == tanh of the raw g gate
        o_g = sg[:, 3 * H:4 * H]
        c_st = f_g * c_st + i_g * g_g
        h_st = o_g * jnp.tanh(c_st)
        hbuf_ref[s] = h_st                        # fwd h(t=s) rows 0:n, bwd h(t=T-1-s) rows n:2n

    # Re-assemble time-aligned [h_fwd(t) | h_bwd(t)] rows for the next batched
    # matmul (off the critical path; small VMEM-to-VMEM copies).
    for t in range(steps):
        lbuf_ref[n * t:n * (t + 1), 0:H] = hbuf_ref[t, 0:n, :]
        lbuf_ref[n * t:n * (t + 1), H:2 * H] = hbuf_ref[steps - 1 - t, n:2 * n, :]


# ----------------------------------------------------------------------------
# The single fused Pallas kernel
# ----------------------------------------------------------------------------
def _crnn_kernel(*refs, n):
    (xp_ref, we1, be1, we2, be2, wmap, bmap,
     wih1, b1, whh1_f, whh1_b,
     wih2, b2, whh2_f, whh2_b,
     wd, bd,
     out_ref,
     gxflat1, gxbuf1, hbuf1, lbuf1,
     gxflat2, gxbuf2, hbuf2, lbuf2) = refs

    relu = lambda v: jnp.maximum(v, jnp.float32(0.0))

    # ---- visual feature extractor (placeholder) + map_visual_to_seq ---------
    # Batched over all T*N rows; weight refs are read lazily at their use site.
    e = relu(_dot(xp_ref[...], we1[...]) + be1[...])      # (T*n, 128)
    v = relu(_dot(e, we2[...]) + be2[...])                # (T*n, C_out)
    seq = _dot(v, wmap[...]) + bmap[...]                  # (T*n, mapped)
    # nn.Dropout(p=0.25) -> identity at inference.

    # ---- BiLSTM 1: hoisted input projection, fwd|bwd lane-packed to 256 -----
    gx1 = _dot(seq, wih1[...]) + b1[...]                  # (T*n, 8H)
    _bilstm_layer(gx1, whh1_f[...], whh1_b[...], gxflat1, gxbuf1, hbuf1, lbuf1, n)

    # ---- BiLSTM 2 ------------------------------------------------------------
    gx2 = _dot(lbuf1[...], wih2[...]) + b2[...]           # (T*n, 8H)
    _bilstm_layer(gx2, whh2_f[...], whh2_b[...], gxflat2, gxbuf2, hbuf2, lbuf2, n)
    # nn.Dropout(p=0.25) -> identity at inference.

    # ---- final dense (lane-padded to 128 cols) + masked log_softmax ----------
    logits = _dot(lbuf2[...], wd[...]) + bd[...]          # (T*n, 128)
    lane = jax.lax.broadcasted_iota(jnp.int32, logits.shape, 1)
    logits = jnp.where(lane < NUM_CLASSES, logits, jnp.float32(-1e9))
    m = jnp.max(logits, axis=-1, keepdims=True)
    sh = logits - m
    lse = jnp.log(jnp.sum(jnp.exp(sh), axis=-1, keepdims=True))
    out_ref[...] = (sh - lse).astype(out_ref.dtype)       # one dense (T*n, 128) store


# ----------------------------------------------------------------------------
# Host-side wrapper
# ----------------------------------------------------------------------------
def make_patches(x_nchw):
    """(N, C, Himg, W) -> (T, N, C*Himg*PATCH): one 32-wide column block per timestep."""
    b, c, h, w = x_nchw.shape
    t = w // PATCH
    xp = x_nchw.reshape(b, c, h, t, PATCH)
    xp = jnp.transpose(xp, (3, 0, 1, 2, 4))               # (T, N, C, Himg, PATCH)
    return xp.reshape(t, b, c * h * PATCH)


@jax.jit
def crnn_forward(x_nchw, packed):
    n = x_nchw.shape[0]
    t = x_nchw.shape[3] // PATCH
    xp = make_patches(x_nchw).reshape(t * n, -1)          # lane/sublane-dense input slab

    # TODO(synk): for real IAM shapes (T, batch >> toy sizes) add a leading grid
    # axis over batch rows with dimension_semantics=("parallel",) to use v7x's
    # second TensorCore and keep the resident set under its 64 MiB VMEM; at
    # batch=2 the duplicated weight DMA is not worth it.  All math stays f32
    # (v5e VPU/EUP have no bf16); bf16 would only be safe as MXU inputs.
    out = pl.pallas_call(
        functools.partial(_crnn_kernel, n=n),
        out_shape=jax.ShapeDtypeStruct((t * n, LANE), jnp.float32),
        in_specs=[VMEM_SPEC] * (1 + len(PACKED_KEYS)),
        out_specs=VMEM_SPEC,
        scratch_shapes=[
            pltpu.VMEM((t * n, 8 * H), jnp.float32),      # gxflat1
            pltpu.VMEM((t, 2 * n, G), jnp.float32),       # gxbuf1
            pltpu.VMEM((t, 2 * n, H), jnp.float32),       # hbuf1
            pltpu.VMEM((t * n, 2 * H), jnp.float32),      # lbuf1
            pltpu.VMEM((t * n, 8 * H), jnp.float32),      # gxflat2
            pltpu.VMEM((t, 2 * n, G), jnp.float32),       # gxbuf2
            pltpu.VMEM((t, 2 * n, H), jnp.float32),       # hbuf2
            pltpu.VMEM((t * n, 2 * H), jnp.float32),      # lbuf2
        ],
        compiler_params=pltpu.CompilerParams(vmem_limit_bytes=8 * 1024 * 1024),
    )(xp, *[packed[k] for k in PACKED_KEYS])

    # (T*N, 128) lane-dense slab -> (T, N, num_classes); only XLA epilogue.
    return out.reshape(t, n, LANE)[:, :, :NUM_CLASSES]


# ----------------------------------------------------------------------------
# Parameter init (natural per-direction layout) and MXU-friendly packing
# ----------------------------------------------------------------------------
def _uniform(key, shape, bound):
    return jax.random.uniform(key, shape, jnp.float32, -bound, bound)


def _init_linear(key, fan_in, fan_out):
    k1, k2 = jax.random.split(key)
    bound = 1.0 / float(fan_in) ** 0.5
    return _uniform(k1, (fan_in, fan_out), bound), _uniform(k2, (fan_out,), bound)


def _init_lstm_dir(key, input_size, hidden):
    k1, k2, k3 = jax.random.split(key, 3)
    bound = 1.0 / float(hidden) ** 0.5
    w_ih = _uniform(k1, (input_size, 4 * hidden), bound)
    w_hh = _uniform(k2, (hidden, 4 * hidden), bound)
    b = _uniform(k3, (4 * hidden,), bound)                # b_ih + b_hh folded
    return w_ih, w_hh, b


def init_params(key):
    ks = jax.random.split(key, 8)
    p = {}
    patch_dim = IN_CHANNELS * IMAGE_HEIGHT * PATCH        # 1024
    p["we1"], p["be1"] = _init_linear(ks[0], patch_dim, EXTRACTOR_HIDDEN)
    p["we2"], p["be2"] = _init_linear(ks[1], EXTRACTOR_HIDDEN, CNN_OUT_CHANNELS)
    p["wmap"], p["bmap"] = _init_linear(ks[2], CNN_OUT_CHANNELS * OUTPUT_HEIGHT,
                                        MAPPED_HIDDEN)
    for name, k, in_size in (("1_f", ks[3], MAPPED_HIDDEN),
                             ("1_b", ks[4], MAPPED_HIDDEN),
                             ("2_f", ks[5], 2 * SEQ_HIDDEN),
                             ("2_b", ks[6], 2 * SEQ_HIDDEN)):
        wih, whh, b = _init_lstm_dir(k, in_size, SEQ_HIDDEN)
        p["wih" + name], p["whh" + name], p["b" + name] = wih, whh, b
    p["wd"], p["bd"] = _init_linear(ks[7], 2 * SEQ_HIDDEN, NUM_CLASSES)
    return p


def pack_params(p):
    """Repack natural per-direction weights into the kernel's MXU-friendly layout."""
    q = {"we1": p["we1"], "be1": p["be1"].reshape(1, -1),
         "we2": p["we2"], "be2": p["be2"].reshape(1, -1),
         "wmap": p["wmap"], "bmap": p["bmap"].reshape(1, -1)}
    for l in ("1", "2"):
        # Lane-concat fwd|bwd input projections: 256 output lanes per MXU push.
        q["wih" + l] = jnp.concatenate([p[f"wih{l}_f"], p[f"wih{l}_b"]], axis=1)
        q["b" + l] = jnp.concatenate([p[f"b{l}_f"], p[f"b{l}_b"]], axis=0).reshape(1, -1)
        q["whh" + l + "_f"] = p[f"whh{l}_f"]
        q["whh" + l + "_b"] = p[f"whh{l}_b"]
    # Lane-pad the final dense to 128 output columns (zero weights / bias).
    q["wd"] = jnp.zeros((2 * SEQ_HIDDEN, LANE), jnp.float32).at[:, :NUM_CLASSES].set(p["wd"])
    q["bd"] = jnp.zeros((1, LANE), jnp.float32).at[:, :NUM_CLASSES].set(p["bd"])
    return q


# ----------------------------------------------------------------------------
# Pure-JAX textbook reference (unpacked weights, standard LSTM cell)
# ----------------------------------------------------------------------------
def crnn_reference(x_nchw, p):
    xp = make_patches(x_nchw)                             # (T, N, patch_dim)
    relu = lambda v: jnp.maximum(v, 0.0)
    e = relu(xp @ p["we1"] + p["be1"])
    v = relu(e @ p["we2"] + p["be2"])
    seq = v @ p["wmap"] + p["bmap"]

    t_steps, n_b = seq.shape[0], seq.shape[1]

    def run_dir(xs, w_ih, w_hh, b, reverse):
        h = jnp.zeros((n_b, H), jnp.float32)
        c = jnp.zeros((n_b, H), jnp.float32)
        outs = [None] * t_steps
        order = range(t_steps - 1, -1, -1) if reverse else range(t_steps)
        for t in order:
            gates = xs[t] @ w_ih + h @ w_hh + b
            i = jax.nn.sigmoid(gates[:, 0 * H:1 * H])
            f = jax.nn.sigmoid(gates[:, 1 * H:2 * H])
            g = jnp.tanh(gates[:, 2 * H:3 * H])
            o = jax.nn.sigmoid(gates[:, 3 * H:4 * H])
            c = f * c + i * g
            h = o * jnp.tanh(c)
            outs[t] = h
        return jnp.stack(outs, axis=0)

    def bilstm(xs, tag):
        hf = run_dir(xs, p[f"wih{tag}_f"], p[f"whh{tag}_f"], p[f"b{tag}_f"], False)
        hb = run_dir(xs, p[f"wih{tag}_b"], p[f"whh{tag}_b"], p[f"b{tag}_b"], True)
        return jnp.concatenate([hf, hb], axis=-1)

    l1 = bilstm(seq, "1")
    l2 = bilstm(l1, "2")
    logits = l2 @ p["wd"] + p["bd"]
    return jax.nn.log_softmax(logits, axis=-1)


# ----------------------------------------------------------------------------
# Main
# ----------------------------------------------------------------------------
if __name__ == "__main__":
    key = jax.random.PRNGKey(0)
    k_param, k_input = jax.random.split(key)

    params = init_params(k_param)
    packed = pack_params(params)
    x = jax.random.normal(k_input, (BATCH, IN_CHANNELS, IMAGE_HEIGHT, IMAGE_WIDTH),
                          dtype=jnp.float32)

    log_probs = jax.block_until_ready(crnn_forward(x, packed))

    t_steps = IMAGE_WIDTH // PATCH
    assert log_probs.shape == (t_steps, BATCH, NUM_CLASSES), log_probs.shape

    # Reference on the unpacked weights: validates the weight packing, the
    # single-sigmoid gate trick and the fused kernel end to end.
    with jax.default_matmul_precision("highest"):
        ref = jax.block_until_ready(jax.jit(crnn_reference)(x, params))

    assert bool(jnp.all(jnp.isfinite(log_probs)))
    sums = jnp.sum(jnp.exp(log_probs), axis=-1)
    assert bool(jnp.allclose(sums, 1.0, atol=1e-3)), sums
    assert bool(jnp.allclose(log_probs, ref, atol=5e-3, rtol=5e-3)), \
        float(jnp.max(jnp.abs(log_probs - ref)))

    print("KERNEL_OK")
</pallas_src>

<mosaic_0001>
module attributes {stable_mosaic.version = 11 : i64} {
  func.func @_crnn_kernel(%arg0: memref<16x1024xf32, #tpu.memory_space<vmem>>, %arg1: memref<1024x128xf32, #tpu.memory_space<vmem>>, %arg2: memref<1x128xf32, #tpu.memory_space<vmem>>, %arg3: memref<128x32xf32, #tpu.memory_space<vmem>>, %arg4: memref<1x32xf32, #tpu.memory_space<vmem>>, %arg5: memref<32x32xf32, #tpu.memory_space<vmem>>, %arg6: memref<1x32xf32, #tpu.memory_space<vmem>>, %arg7: memref<32x256xf32, #tpu.memory_space<vmem>>, %arg8: memref<1x256xf32, #tpu.memory_space<vmem>>, %arg9: memref<32x128xf32, #tpu.memory_space<vmem>>, %arg10: memref<32x128xf32, #tpu.memory_space<vmem>>, %arg11: memref<64x256xf32, #tpu.memory_space<vmem>>, %arg12: memref<1x256xf32, #tpu.memory_space<vmem>>, %arg13: memref<32x128xf32, #tpu.memory_space<vmem>>, %arg14: memref<32x128xf32, #tpu.memory_space<vmem>>, %arg15: memref<64x128xf32, #tpu.memory_space<vmem>>, %arg16: memref<1x128xf32, #tpu.memory_space<vmem>>, %arg17: memref<16x128xf32, #tpu.memory_space<vmem>>, %arg18: memref<16x256xf32, #tpu.memory_space<vmem>>, %arg19: memref<8x4x128xf32, #tpu.memory_space<vmem>>, %arg20: memref<8x4x32xf32, #tpu.memory_space<vmem>>, %arg21: memref<16x64xf32, #tpu.memory_space<vmem>>, %arg22: memref<16x256xf32, #tpu.memory_space<vmem>>, %arg23: memref<8x4x128xf32, #tpu.memory_space<vmem>>, %arg24: memref<8x4x32xf32, #tpu.memory_space<vmem>>, %arg25: memref<16x64xf32, #tpu.memory_space<vmem>>) attributes {dimension_semantics = [], scalar_prefetch = 0 : i64, scratch_operands = 8 : i64, tpu.core_type = #tpu.core_type<tc>} {
    %c0 = arith.constant 0 : index
    %c0_0 = arith.constant 0 : index
    %0 = vector.load %arg0[%c0, %c0_0] : memref<16x1024xf32, #tpu.memory_space<vmem>>, vector<16x1024xf32>
    %c0_1 = arith.constant 0 : index
    %c0_2 = arith.constant 0 : index
    %1 = vector.load %arg1[%c0_1, %c0_2] : memref<1024x128xf32, #tpu.memory_space<vmem>>, vector<1024x128xf32>
    %cst = arith.constant dense<0.000000e+00> : vector<16x128xf32>
    %2 = tpu.matmul %0, %1, %cst {dimension_numbers = #tpu.dot_dimension_numbers<[1], [0], [0], [1], [0, 0, 1, 1], [], []>} : vector<16x1024xf32>, vector<1024x128xf32>, vector<16x128xf32> -> vector<16x128xf32>
    %c0_3 = arith.constant 0 : index
    %c0_4 = arith.constant 0 : index
    %3 = vector.load %arg2[%c0_3, %c0_4] : memref<1x128xf32, #tpu.memory_space<vmem>>, vector<1x128xf32>
    %4 = vector.broadcast %3 : vector<1x128xf32> to vector<16x128xf32>
    %5 = arith.addf %2, %4 : vector<16x128xf32>
    %cst_5 = arith.constant 0.000000e+00 : f32
    %6 = vector.broadcast %cst_5 : f32 to vector<16x128xf32>
    %7 = arith.maximumf %5, %6 : vector<16x128xf32>
    %c0_6 = arith.constant 0 : index
    %c0_7 = arith.constant 0 : index
    %8 = vector.load %arg3[%c0_6, %c0_7] : memref<128x32xf32, #tpu.memory_space<vmem>>, vector<128x32xf32>
    %cst_8 = arith.constant dense<0.000000e+00> : vector<16x32xf32>
    %9 = tpu.matmul %7, %8, %cst_8 {dimension_numbers = #tpu.dot_dimension_numbers<[1], [0], [0], [1], [0, 0, 1, 1], [], []>} : vector<16x128xf32>, vector<128x32xf32>, vector<16x32xf32> -> vector<16x32xf32>
    %c0_9 = arith.constant 0 : index
    %c0_10 = arith.constant 0 : index
    %10 = vector.load %arg4[%c0_9, %c0_10] : memref<1x32xf32, #tpu.memory_space<vmem>>, vector<1x32xf32>
    %11 = vector.broadcast %10 : vector<1x32xf32> to vector<16x32xf32>
    %12 = arith.addf %9, %11 : vector<16x32xf32>
    %cst_11 = arith.constant 0.000000e+00 : f32
    %13 = vector.broadcast %cst_11 : f32 to vector<16x32xf32>
    %14 = arith.maximumf %12, %13 : vector<16x32xf32>
    %c0_12 = arith.constant 0 : index
    %c0_13 = arith.constant 0 : index
    %15 = vector.load %arg5[%c0_12, %c0_13] : memref<32x32xf32, #tpu.memory_space<vmem>>, vector<32x32xf32>
    %cst_14 = arith.constant dense<0.000000e+00> : vector<16x32xf32>
    %16 = tpu.matmul %14, %15, %cst_14 {dimension_numbers = #tpu.dot_dimension_numbers<[1], [0], [0], [1], [0, 0, 1, 1], [], []>} : vector<16x32xf32>, vector<32x32xf32>, vector<16x32xf32> -> vector<16x32xf32>
    %c0_15 = arith.constant 0 : index
    %c0_16 = arith.constant 0 : index
    %17 = vector.load %arg6[%c0_15, %c0_16] : memref<1x32xf32, #tpu.memory_space<vmem>>, vector<1x32xf32>
    %18 = vector.broadcast %17 : vector<1x32xf32> to vector<16x32xf32>
    %19 = arith.addf %16, %18 : vector<16x32xf32>
    %c0_17 = arith.constant 0 : index
    %c0_18 = arith.constant 0 : index
    %20 = vector.load %arg7[%c0_17, %c0_18] : memref<32x256xf32, #tpu.memory_space<vmem>>, vector<32x256xf32>
    %cst_19 = arith.constant dense<0.000000e+00> : vector<16x256xf32>
    %21 = tpu.matmul %19, %20, %cst_19 {dimension_numbers = #tpu.dot_dimension_numbers<[1], [0], [0], [1], [0, 0, 1, 1], [], []>} : vector<16x32xf32>, vector<32x256xf32>, vector<16x256xf32> -> vector<16x256xf32>
    %c0_20 = arith.constant 0 : index
    %c0_21 = arith.constant 0 : index
    %22 = vector.load %arg8[%c0_20, %c0_21] : memref<1x256xf32, #tpu.memory_space<vmem>>, vector<1x256xf32>
    %23 = vector.broadcast %22 : vector<1x256xf32> to vector<16x256xf32>
    %24 = arith.addf %21, %23 : vector<16x256xf32>
    %c0_22 = arith.constant 0 : index
    %c0_23 = arith.constant 0 : index
    %25 = vector.load %arg9[%c0_22, %c0_23] : memref<32x128xf32, #tpu.memory_space<vmem>>, vector<32x128xf32>
    %c0_24 = arith.constant 0 : index
    %c0_25 = arith.constant 0 : index
    %26 = vector.load %arg10[%c0_24, %c0_25] : memref<32x128xf32, #tpu.memory_space<vmem>>, vector<32x128xf32>
    %c0_26 = arith.constant 0 : index
    %c0_27 = arith.constant 0 : index
    %27 = vector.load %arg18[%c0_26, %c0_27] : memref<16x256xf32, #tpu.memory_space<vmem>>, vector<16x256xf32>
    tpu.vector_store %arg18[%c0_26, %c0_27], %24 {strides = array<i32>} : memref<16x256xf32, #tpu.memory_space<vmem>>, vector<16x256xf32>,
    %c0_28 = arith.constant 0 : index
    %c0_29 = arith.constant 0 : index
    %28 = vector.load %arg18[%c0_28, %c0_29] : memref<16x256xf32, #tpu.memory_space<vmem>>, vector<2x128xf32>
    %c0_30 = arith.constant 0 : index
    %c0_31 = arith.constant 0 : index
    %c0_32 = arith.constant 0 : index
    %29 = vector.load %arg19[%c0_30, %c0_31, %c0_32] : memref<8x4x128xf32, #tpu.memory_space<vmem>>, vector<1x2x128xf32>
    %30 = vector.shape_cast %29 : vector<1x2x128xf32> to vector<2x128xf32>
    %31 = vector.shape_cast %28 : vector<2x128xf32> to vector<1x2x128xf32>
    tpu.vector_store %arg19[%c0_30, %c0_31, %c0_32], %31 {strides = array<i32>} : memref<8x4x128xf32, #tpu.memory_space<vmem>>, vector<1x2x128xf32>,
    %c14 = arith.constant 14 : index
    %c128 = arith.constant 128 : index
    %32 = vector.load %arg18[%c14, %c128] : memref<16x256xf32, #tpu.memory_space<vmem>>, vector<2x128xf32>
    %c0_33 = arith.constant 0 : index
    %c2 = arith.constant 2 : index
    %c0_34 = arith.constant 0 : index
    %33 = vector.load %arg19[%c0_33, %c2, %c0_34] : memref<8x4x128xf32, #tpu.memory_space<vmem>>, vector<1x2x128xf32>
    %34 = vector.shape_cast %33 : vector<1x2x128xf32> to vector<2x128xf32>
    %35 = vector.shape_cast %32 : vector<2x128xf32> to vector<1x2x128xf32>
    tpu.vector_store %arg19[%c0_33, %c2, %c0_34], %35 {strides = array<i32>} : memref<8x4x128xf32, #tpu.memory_space<vmem>>, vector<1x2x128xf32>,
    %c2_35 = arith.constant 2 : index
    %c0_36 = arith.constant 0 : index
    %36 = vector.load %arg18[%c2_35, %c0_36] : memref<16x256xf32, #tpu.memory_space<vmem>>, vector<2x128xf32>
    %c1 = arith.constant 1 : index
    %c0_37 = arith.constant 0 : index
    %c0_38 = arith.constant 0 : index
    %37 = vector.load %arg19[%c1, %c0_37, %c0_38] : memref<8x4x128xf32, #tpu.memory_space<vmem>>, vector<1x2x128xf32>
    %38 = vector.shape_cast %37 : vector<1x2x128xf32> to vector<2x128xf32>
    %39 = vector.shape_cast %36 : vector<2x128xf32> to vector<1x2x128xf32>
    tpu.vector_store %arg19[%c1, %c0_37, %c0_38], %39 {strides = array<i32>} : memref<8x4x128xf32, #tpu.memory_space<vmem>>, vector<1x2x128xf32>,
    %c12 = arith.constant 12 : index
    %c128_39 = arith.constant 128 : index
    %40 = vector.load %arg18[%c12, %c128_39] : memref<16x256xf32, #tpu.memory_space<vmem>>, vector<2x128xf32>
    %c1_40 = arith.constant 1 : index
    %c2_41 = arith.constant 2 : index
    %c0_42 = arith.constant 0 : index
    %41 = vector.load %arg19[%c1_40, %c2_41, %c0_42] : memref<8x4x128xf32, #tpu.memory_space<vmem>>, vector<1x2x128xf32>
    %42 = vector.shape_cast %41 : vector<1x2x128xf32> to vector<2x128xf32>
    %43 = vector.shape_cast %40 : vector<2x128xf32> to vector<1x2x128xf32>
    tpu.vector_store %arg19[%c1_40, %c2_41, %c0_42], %43 {strides = array<i32>} : memref<8x4x128xf32, #tpu.memory_space<vmem>>, vector<1x2x128xf32>,
    %c4 = arith.constant 4 : index
    %c0_43 = arith.constant 0 : index
    %44 = vector.load %arg18[%c4, %c0_43] : memref<16x256xf32, #tpu.memory_space<vmem>>, vector<2x128xf32>
    %c2_44 = arith.constant 2 : index
    %c0_45 = arith.constant 0 : index
    %c0_46 = arith.constant 0 : index
    %45 = vector.load %arg19[%c2_44, %c0_45, %c0_46] : memref<8x4x128xf32, #tpu.memory_space<vmem>>, vector<1x2x128xf32>
    %46 = vector.shape_cast %45 : vector<1x2x128xf32> to vector<2x128xf32>
    %47 = vector.shape_cast %44 : vector<2x128xf32> to vector<1x2x128xf32>
    tpu.vector_store %arg19[%c2_44, %c0_45, %c0_46], %47 {strides = array<i32>} : memref<8x4x128xf32, #tpu.memory_space<vmem>>, vector<1x2x128xf32>,
    %c10 = arith.constant 10 : index
    %c128_47 = arith.constant 128 : index
    %48 = vector.load %arg18[%c10, %c128_47] : memref<16x256xf32, #tpu.memory_space<vmem>>, vector<2x128xf32>
    %c2_48 = arith.constant 2 : index
    %c2_49 = arith.constant 2 : index
    %c0_50 = arith.constant 0 : index
    %49 = vector.load %arg19[%c2_48, %c2_49, %c0_50] : memref<8x4x128xf32, #tpu.memory_space<vmem>>, vector<1x2x128xf32>
    %50 = vector.shape_cast %49 : vector<1x2x128xf32> to vector<2x128xf32>
    %51 = vector.shape_cast %48 : vector<2x128xf32> to vector<1x2x128xf32>
    tpu.vector_store %arg19[%c2_48, %c2_49, %c0_50], %51 {strides = array<i32>} : memref<8x4x128xf32, #tpu.memory_space<vmem>>, vector<1x2x128xf32>,
    %c6 = arith.constant 6 : index
    %c0_51 = arith.constant 0 : index
    %52 = vector.load %arg18[%c6, %c0_51] : memref<16x256xf32, #tpu.memory_space<vmem>>, vector<2x128xf32>
    %c3 = arith.constant 3 : index
    %c0_52 = arith.constant 0 : index
    %c0_53 = arith.constant 0 : index
    %53 = vector.load %arg19[%c3, %c0_52, %c0_53] : memref<8x4x128xf32, #tpu.memory_space<vmem>>, vector<1x2x128xf32>
    %54 = vector.shape_cast %53 : vector<1x2x128xf32> to vector<2x128xf32>
    %55 = vector.shape_cast %52 : vector<2x128xf32> to vector<1x2x128xf32>
    tpu.vector_store %arg19[%c3, %c0_52, %c0_53], %55 {strides = array<i32>} : memref<8x4x128xf32, #tpu.memory_space<vmem>>, vector<1x2x128xf32>,
    %c8 = arith.constant 8 : index
    %c128_54 = arith.constant 128 : index
    %56 = vector.load %arg18[%c8, %c128_54] : memref<16x256xf32, #tpu.memory_space<vmem>>, vector<2x128xf32>
    %c3_55 = arith.constant 3 : index
    %c2_56 = arith.constant 2 : index
    %c0_57 = arith.constant 0 : index
    %57 = vector.load %arg19[%c3_55, %c2_56, %c0_57] : memref<8x4x128xf32, #tpu.memory_space<vmem>>, vector<1x2x128xf32>
    %58 = vector.shape_cast %57 : vector<1x2x128xf32> to vector<2x128xf32>
    %59 = vector.shape_cast %56 : vector<2x128xf32> to vector<1x2x128xf32>
    tpu.vector_store %arg19[%c3_55, %c2_56, %c0_57], %59 {strides = array<i32>} : memref<8x4x128xf32, #tpu.memory_space<vmem>>, vector<1x2x128xf32>,
    %c8_58 = arith.constant 8 : index
    %c0_59 = arith.constant 0 : index
    %60 = vector.load %arg18[%c8_58, %c0_59] : memref<16x256xf32, #tpu.memory_space<vmem>>, vector<2x128xf32>
    %c4_60 = arith.constant 4 : index
    %c0_61 = arith.constant 0 : index
    %c0_62 = arith.constant 0 : index
    %61 = vector.load %arg19[%c4_60, %c0_61, %c0_62] : memref<8x4x128xf32, #tpu.memory_space<vmem>>, vector<1x2x128xf32>
    %62 = vector.shape_cast %61 : vector<1x2x128xf32> to vector<2x128xf32>
    %63 = vector.shape_cast %60 : vector<2x128xf32> to vector<1x2x128xf32>
    tpu.vector_store %arg19[%c4_60, %c0_61, %c0_62], %63 {strides = array<i32>} : memref<8x4x128xf32, #tpu.memory_space<vmem>>, vector<1x2x128xf32>,
    %c6_63 = arith.constant 6 : index
    %c128_64 = arith.constant 128 : index
    %64 = vector.load %arg18[%c6_63, %c128_64] : memref<16x256xf32, #tpu.memory_space<vmem>>, vector<2x128xf32>
    %c4_65 = arith.constant 4 : index
    %c2_66 = arith.constant 2 : index
    %c0_67 = arith.constant 0 : index
    %65 = vector.load %arg19[%c4_65, %c2_66, %c0_67] : memref<8x4x128xf32, #tpu.memory_space<vmem>>, vector<1x2x128xf32>
    %66 = vector.shape_cast %65 : vector<1x2x128xf32> to vector<2x128xf32>
    %67 = vector.shape_cast %64 : vector<2x128xf32> to vector<1x2x128xf32>
    tpu.vector_store %arg19[%c4_65, %c2_66, %c0_67], %67 {strides = array<i32>} : memref<8x4x128xf32, #tpu.memory_space<vmem>>, vector<1x2x128xf32>,
    %c10_68 = arith.constant 10 : index
    %c0_69 = arith.constant 0 : index
    %68 = vector.load %arg18[%c10_68, %c0_69] : memref<16x256xf32, #tpu.memory_space<vmem>>, vector<2x128xf32>
    %c5 = arith.constant 5 : index
    %c0_70 = arith.constant 0 : index
    %c0_71 = arith.constant 0 : index
    %69 = vector.load %arg19[%c5, %c0_70, %c0_71] : memref<8x4x128xf32, #tpu.memory_space<vmem>>, vector<1x2x128xf32>
    %70 = vector.shape_cast %69 : vector<1x2x128xf32> to vector<2x128xf32>
    %71 = vector.shape_cast %68 : vector<2x128xf32> to vector<1x2x128xf32>
    tpu.vector_store %arg19[%c5, %c0_70, %c0_71], %71 {strides = array<i32>} : memref<8x4x128xf32, #tpu.memory_space<vmem>>, vector<1x2x128xf32>,
    %c4_72 = arith.constant 4 : index
    %c128_73 = arith.constant 128 : index
    %72 = vector.load %arg18[%c4_72, %c128_73] : memref<16x256xf32, #tpu.memory_space<vmem>>, vector<2x128xf32>
    %c5_74 = arith.constant 5 : index
    %c2_75 = arith.constant 2 : index
    %c0_76 = arith.constant 0 : index
    %73 = vector.load %arg19[%c5_74, %c2_75, %c0_76] : memref<8x4x128xf32, #tpu.memory_space<vmem>>, vector<1x2x128xf32>
    %74 = vector.shape_cast %73 : vector<1x2x128xf32> to vector<2x128xf32>
    %75 = vector.shape_cast %72 : vector<2x128xf32> to vector<1x2x128xf32>
    tpu.vector_store %arg19[%c5_74, %c2_75, %c0_76], %75 {strides = array<i32>} : memref<8x4x128xf32, #tpu.memory_space<vmem>>, vector<1x2x128xf32>,
    %c12_77 = arith.constant 12 : index
    %c0_78 = arith.constant 0 : index
    %76 = vector.load %arg18[%c12_77, %c0_78] : memref<16x256xf32, #tpu.memory_space<vmem>>, vector<2x128xf32>
    %c6_79 = arith.constant 6 : index
    %c0_80 = arith.constant 0 : index
    %c0_81 = arith.constant 0 : index
    %77 = vector.load %arg19[%c6_79, %c0_80, %c0_81] : memref<8x4x128xf32, #tpu.memory_space<vmem>>, vector<1x2x128xf32>
    %78 = vector.shape_cast %77 : vector<1x2x128xf32> to vector<2x128xf32>
    %79 = vector.shape_cast %76 : vector<2x128xf32> to vector<1x2x128xf32>
    tpu.vector_store %arg19[%c6_79, %c0_80, %c0_81], %79 {strides = array<i32>} : memref<8x4x128xf32, #tpu.memory_space<vmem>>, vector<1x2x128xf32>,
    %c2_82 = arith.constant 2 : index
    %c128_83 = arith.constant 128 : index
    %80 = vector.load %arg18[%c2_82, %c128_83] : memref<16x256xf32, #tpu.memory_space<vmem>>, vector<2x128xf32>
    %c6_84 = arith.constant 6 : index
    %c2_85 = arith.constant 2 : index
    %c0_86 = arith.constant 0 : index
    %81 = vector.load %arg19[%c6_84, %c2_85, %c0_86] : memref<8x4x128xf32, #tpu.memory_space<vmem>>, vector<1x2x128xf32>
    %82 = vector.shape_cast %81 : vector<1x2x128xf32> to vector<2x128xf32>
    %83 = vector.shape_cast %80 : vector<2x128xf32> to vector<1x2x128xf32>
    tpu.vector_store %arg19[%c6_84, %c2_85, %c0_86], %83 {strides = array<i32>} : memref<8x4x128xf32, #tpu.memory_space<vmem>>, vector<1x2x128xf32>,
    %c14_87 = arith.constant 14 : index
    %c0_88 = arith.constant 0 : index
    %84 = vector.load %arg18[%c14_87, %c0_88] : memref<16x256xf32, #tpu.memory_space<vmem>>, vector<2x128xf32>
    %c7 = arith.constant 7 : index
    %c0_89 = arith.constant 0 : index
    %c0_90 = arith.constant 0 : index
    %85 = vector.load %arg19[%c7, %c0_89, %c0_90] : memref<8x4x128xf32, #tpu.memory_space<vmem>>, vector<1x2x128xf32>
    %86 = vector.shape_cast %85 : vector<1x2x128xf32> to vector<2x128xf32>
    %87 = vector.shape_cast %84 : vector<2x128xf32> to vector<1x2x128xf32>
    tpu.vector_store %arg19[%c7, %c0_89, %c0_90], %87 {strides = array<i32>} : memref<8x4x128xf32, #tpu.memory_space<vmem>>, vector<1x2x128xf32>,
    %c0_91 = arith.constant 0 : index
    %c128_92 = arith.constant 128 : index
    %88 = vector.load %arg18[%c0_91, %c128_92] : memref<16x256xf32, #tpu.memory_space<vmem>>, vector<2x128xf32>
    %c7_93 = arith.constant 7 : index
    %c2_94 = arith.constant 2 : index
    %c0_95 = arith.constant 0 : index
    %89 = vector.load %arg19[%c7_93, %c2_94, %c0_95] : memref<8x4x128xf32, #tpu.memory_space<vmem>>, vector<1x2x128xf32>
    %90 = vector.shape_cast %89 : vector<1x2x128xf32> to vector<2x128xf32>
    %91 = vector.shape_cast %88 : vector<2x128xf32> to vector<1x2x128xf32>
    tpu.vector_store %arg19[%c7_93, %c2_94, %c0_95], %91 {strides = array<i32>} : memref<8x4x128xf32, #tpu.memory_space<vmem>>, vector<1x2x128xf32>,
    %92 = tpu.iota {dimensions = array<i32: 0>} : vector<4x1xi32>
    %c2_i32 = arith.constant 2 : i32
    %93 = vector.broadcast %c2_i32 : i32 to vector<4x1xi32>
    %94 = arith.cmpi slt, %92, %93 : vector<4x1xi32>
    %95 = arith.extui %94 : vector<4x1xi1> to vector<4x1xi32>
    %96 = arith.sitofp %95 : vector<4x1xi32> to vector<4x1xf32>
    %c2_i32_96 = arith.constant 2 : i32
    %97 = vector.broadcast %c2_i32_96 : i32 to vector<4x1xi32>
    %98 = arith.cmpi sge, %92, %97 : vector<4x1xi32>
    %99 = arith.extui %98 : vector<4x1xi1> to vector<4x1xi32>
    %100 = arith.sitofp %99 : vector<4x1xi32> to vector<4x1xf32>
    %101 = tpu.iota {dimensions = array<i32: 1>} : vector<4x128xi32>
    %c64_i32 = arith.constant 64 : i32
    %102 = vector.broadcast %c64_i32 : i32 to vector<4x128xi32>
    %103 = arith.cmpi sge, %101, %102 : vector<4x128xi32>
    %c96_i32 = arith.constant 96 : i32
    %104 = vector.broadcast %c96_i32 : i32 to vector<4x128xi32>
    %105 = arith.cmpi slt, %101, %104 : vector<4x128xi32>
    %106 = arith.andi %103, %105 : vector<4x128xi1>
    %cst_97 = arith.constant 2.000000e+00 : f32
    %cst_98 = arith.constant 1.000000e+00 : f32
    %107 = vector.broadcast %cst_97 : f32 to vector<4x128xf32>
    %108 = vector.broadcast %cst_98 : f32 to vector<4x128xf32>
    %109 = arith.select %106, %107, %108 : vector<4x128xi1>, vector<4x128xf32>
    %cst_99 = arith.constant 0.000000e+00 : f32
    %110 = vector.broadcast %cst_99 : f32 to vector<4x32xf32>
    %cst_100 = arith.constant 0.000000e+00 : f32
    %111 = vector.broadcast %cst_100 : f32 to vector<4x32xf32>
    %112 = vector.broadcast %96 : vector<4x1xf32> to vector<4x32xf32>
    %113 = arith.mulf %110, %112 : vector<4x32xf32>
    %cst_101 = arith.constant dense<0.000000e+00> : vector<4x128xf32>
    %114 = tpu.matmul %113, %25, %cst_101 {dimension_numbers = #tpu.dot_dimension_numbers<[1], [0], [0], [1], [0, 0, 1, 1], [], []>} : vector<4x32xf32>, vector<32x128xf32>, vector<4x128xf32> -> vector<4x128xf32>
    %115 = vector.broadcast %100 : vector<4x1xf32> to vector<4x32xf32>
    %116 = arith.mulf %110, %115 : vector<4x32xf32>
    %cst_102 = arith.constant dense<0.000000e+00> : vector<4x128xf32>
    %117 = tpu.matmul %116, %26, %cst_102 {dimension_numbers = #tpu.dot_dimension_numbers<[1], [0], [0], [1], [0, 0, 1, 1], [], []>} : vector<4x32xf32>, vector<32x128xf32>, vector<4x128xf32> -> vector<4x128xf32>
    %118 = arith.addf %114, %117 : vector<4x128xf32>
    %c0_103 = arith.constant 0 : index
    %c0_104 = arith.constant 0 : index
    %c0_105 = arith.constant 0 : index
    %119 = vector.load %arg19[%c0_103, %c0_104, %c0_105] : memref<8x4x128xf32, #tpu.memory_space<vmem>>, vector<1x4x128xf32>
    %120 = vector.shape_cast %119 : vector<1x4x128xf32> to vector<4x128xf32>
    %121 = arith.addf %120, %118 : vector<4x128xf32>
    %122 = arith.mulf %121, %109 : vector<4x128xf32>
    %123 = arith.negf %122 : vector<4x128xf32>
    %124 = math.exp %123 : vector<4x128xf32>
    %cst_106 = arith.constant 1.000000e+00 : f32
    %125 = vector.broadcast %cst_106 : f32 to vector<4x128xf32>
    %126 = arith.addf %125, %124 : vector<4x128xf32>
    %127 = arith.divf %125, %126 : vector<4x128xf32>
    %128 = vector.extract_strided_slice %127 {offsets = [0, 0], sizes = [4, 32], strides = [1, 1]} : vector<4x128xf32> to vector<4x32xf32>
    %129 = vector.extract_strided_slice %127 {offsets = [0, 32], sizes = [4, 32], strides = [1, 1]} : vector<4x128xf32> to vector<4x32xf32>
    %130 = vector.extract_strided_slice %127 {offsets = [0, 64], sizes = [4, 32], strides = [1, 1]} : vector<4x128xf32> to vector<4x32xf32>
    %cst_107 = arith.constant 2.000000e+00 : f32
    %131 = vector.broadcast %cst_107 : f32 to vector<4x32xf32>
    %132 = arith.mulf %131, %130 : vector<4x32xf32>
    %cst_108 = arith.constant 1.000000e+00 : f32
    %133 = vector.broadcast %cst_108 : f32 to vector<4x32xf32>
    %134 = arith.subf %132, %133 : vector<4x32xf32>
    %135 = vector.extract_strided_slice %127 {offsets = [0, 96], sizes = [4, 32], strides = [1, 1]} : vector<4x128xf32> to vector<4x32xf32>
    %136 = arith.mulf %129, %111 : vector<4x32xf32>
    %137 = arith.mulf %128, %134 : vector<4x32xf32>
    %138 = arith.addf %136, %137 : vector<4x32xf32>
    %139 = math.tanh %138 : vector<4x32xf32>
    %140 = arith.mulf %135, %139 : vector<4x32xf32>
    %c0_109 = arith.constant 0 : index
    %c0_110 = arith.constant 0 : index
    %c0_111 = arith.constant 0 : index
    %141 = vector.load %arg20[%c0_109, %c0_110, %c0_111] : memref<8x4x32xf32, #tpu.memory_space<vmem>>, vector<1x4x32xf32>
    %142 = vector.shape_cast %141 : vector<1x4x32xf32> to vector<4x32xf32>
    %143 = vector.shape_cast %140 : vector<4x32xf32> to vector<1x4x32xf32>
    tpu.vector_store %arg20[%c0_109, %c0_110, %c0_111], %143 {strides = array<i32>} : memref<8x4x32xf32, #tpu.memory_space<vmem>>, vector<1x4x32xf32>,
    %144 = vector.broadcast %96 : vector<4x1xf32> to vector<4x32xf32>
    %145 = arith.mulf %140, %144 : vector<4x32xf32>
    %cst_112 = arith.constant dense<0.000000e+00> : vector<4x128xf32>
    %146 = tpu.matmul %145, %25, %cst_112 {dimension_numbers = #tpu.dot_dimension_numbers<[1], [0], [0], [1], [0, 0, 1, 1], [], []>} : vector<4x32xf32>, vector<32x128xf32>, vector<4x128xf32> -> vector<4x128xf32>
    %147 = vector.broadcast %100 : vector<4x1xf32> to vector<4x32xf32>
    %148 = arith.mulf %140, %147 : vector<4x32xf32>
    %cst_113 = arith.constant dense<0.000000e+00> : vector<4x128xf32>
    %149 = tpu.matmul %148, %26, %cst_113 {dimension_numbers = #tpu.dot_dimension_numbers<[1], [0], [0], [1], [0, 0, 1, 1], [], []>} : vector<4x32xf32>, vector<32x128xf32>, vector<4x128xf32> -> vector<4x128xf32>
    %150 = arith.addf %146, %149 : vector<4x128xf32>
    %c1_114 = arith.constant 1 : index
    %c0_115 = arith.constant 0 : index
    %c0_116 = arith.constant 0 : index
    %151 = vector.load %arg19[%c1_114, %c0_115, %c0_116] : memref<8x4x128xf32, #tpu.memory_space<vmem>>, vector<1x4x128xf32>
    %152 = vector.shape_cast %151 : vector<1x4x128xf32> to vector<4x128xf32>
    %153 = arith.addf %152, %150 : vector<4x128xf32>
    %154 = arith.mulf %153, %109 : vector<4x128xf32>
    %155 = arith.negf %154 : vector<4x128xf32>
    %156 = math.exp %155 : vector<4x128xf32>
    %cst_117 = arith.constant 1.000000e+00 : f32
    %157 = vector.broadcast %cst_117 : f32 to vector<4x128xf32>
    %158 = arith.addf %157, %156 : vector<4x128xf32>
    %159 = arith.divf %157, %158 : vector<4x128xf32>
    %160 = vector.extract_strided_slice %159 {offsets = [0, 0], sizes = [4, 32], strides = [1, 1]} : vector<4x128xf32> to vector<4x32xf32>
    %161 = vector.extract_strided_slice %159 {offsets = [0, 32], sizes = [4, 32], strides = [1, 1]} : vector<4x128xf32> to vector<4x32xf32>
    %162 = vector.extract_strided_slice %159 {offsets = [0, 64], sizes = [4, 32], strides = [1, 1]} : vector<4x128xf32> to vector<4x32xf32>
    %cst_118 = arith.constant 2.000000e+00 : f32
    %163 = vector.broadcast %cst_118 : f32 to vector<4x32xf32>
    %164 = arith.mulf %163, %162 : vector<4x32xf32>
    %cst_119 = arith.constant 1.000000e+00 : f32
    %165 = vector.broadcast %cst_119 : f32 to vector<4x32xf32>
    %166 = arith.subf %164, %165 : vector<4x32xf32>
    %167 = vector.extract_strided_slice %159 {offsets = [0, 96], sizes = [4, 32], strides = [1, 1]} : vector<4x128xf32> to vector<4x32xf32>
    %168 = arith.mulf %161, %138 : vector<4x32xf32>
    %169 = arith.mulf %160, %166 : vector<4x32xf32>
    %170 = arith.addf %168, %169 : vector<4x32xf32>
    %171 = math.tanh %170 : vector<4x32xf32>
    %172 = arith.mulf %167, %171 : vector<4x32xf32>
    %c1_120 = arith.constant 1 : index
    %c0_121 = arith.constant 0 : index
    %c0_122 = arith.constant 0 : index
    %173 = vector.load %arg20[%c1_120, %c0_121, %c0_122] : memref<8x4x32xf32, #tpu.memory_space<vmem>>, vector<1x4x32xf32>
    %174 = vector.shape_cast %173 : vector<1x4x32xf32> to vector<4x32xf32>
    %175 = vector.shape_cast %172 : vector<4x32xf32> to vector<1x4x32xf32>
    tpu.vector_store %arg20[%c1_120, %c0_121, %c0_122], %175 {strides = array<i32>} : memref<8x4x32xf32, #tpu.memory_space<vmem>>, vector<1x4x32xf32>,
    %176 = vector.broadcast %96 : vector<4x1xf32> to vector<4x32xf32>
    %177 = arith.mulf %172, %176 : vector<4x32xf32>
    %cst_123 = arith.constant dense<0.000000e+00> : vector<4x128xf32>
    %178 = tpu.matmul %177, %25, %cst_123 {dimension_numbers = #tpu.dot_dimension_numbers<[1], [0], [0], [1], [0, 0, 1, 1], [], []>} : vector<4x32xf32>, vector<32x128xf32>, vector<4x128xf32> -> vector<4x128xf32>
    %179 = vector.broadcast %100 : vector<4x1xf32> to vector<4x32xf32>
    %180 = arith.mulf %172, %179 : vector<4x32xf32>
    %cst_124 = arith.constant dense<0.000000e+00> : vector<4x128xf32>
    %181 = tpu.matmul %180, %26, %cst_124 {dimension_numbers = #tpu.dot_dimension_numbers<[1], [0], [0], [1], [0, 0, 1, 1], [], []>} : vector<4x32xf32>, vector<32x128xf32>, vector<4x128xf32> -> vector<4x128xf32>
    %182 = arith.addf %178, %181 : vector<4x128xf32>
    %c2_125 = arith.constant 2 : index
    %c0_126 = arith.constant 0 : index
    %c0_127 = arith.constant 0 : index
    %183 = vector.load %arg19[%c2_125, %c0_126, %c0_127] : memref<8x4x128xf32, #tpu.memory_space<vmem>>, vector<1x4x128xf32>
    %184 = vector.shape_cast %183 : vector<1x4x128xf32> to vector<4x128xf32>
    %185 = arith.addf %184, %182 : vector<4x128xf32>
    %186 = arith.mulf %185, %109 : vector<4x128xf32>
    %187 = arith.negf %186 : vector<4x128xf32>
    %188 = math.exp %187 : vector<4x128xf32>
    %cst_128 = arith.constant 1.000000e+00 : f32
    %189 = vector.broadcast %cst_128 : f32 to vector<4x128xf32>
    %190 = arith.addf %189, %188 : vector<4x128xf32>
    %191 = arith.divf %189, %190 : vector<4x128xf32>
    %192 = vector.extract_strided_slice %191 {offsets = [0, 0], sizes = [4, 32], strides = [1, 1]} : vector<4x128xf32> to vector<4x32xf32>
    %193 = vector.extract_strided_slice %191 {offsets = [0, 32], sizes = [4, 32], strides = [1, 1]} : vector<4x128xf32> to vector<4x32xf32>
    %194 = vector.extract_strided_slice %191 {offsets = [0, 64], sizes = [4, 32], strides = [1, 1]} : vector<4x128xf32> to vector<4x32xf32>
    %cst_129 = arith.constant 2.000000e+00 : f32
    %195 = vector.broadcast %cst_129 : f32 to vector<4x32xf32>
    %196 = arith.mulf %195, %194 : vector<4x32xf32>
    %cst_130 = arith.constant 1.000000e+00 : f32
    %197 = vector.broadcast %cst_130 : f32 to vector<4x32xf32>
    %198 = arith.subf %196, %197 : vector<4x32xf32>
    %199 = vector.extract_strided_slice %191 {offsets = [0, 96], sizes = [4, 32], strides = [1, 1]} : vector<4x128xf32> to vector<4x32xf32>
    %200 = arith.mulf %193, %170 : vector<4x32xf32>
    %201 = arith.mulf %192, %198 : vector<4x32xf32>
    %202 = arith.addf %200, %201 : vector<4x32xf32>
    %203 = math.tanh %202 : vector<4x32xf32>
    %204 = arith.mulf %199, %203 : vector<4x32xf32>
    %c2_131 = arith.constant 2 : index
    %c0_132 = arith.constant 0 : index
    %c0_133 = arith.constant 0 : index
    %205 = vector.load %arg20[%c2_131, %c0_132, %c0_133] : memref<8x4x32xf32, #tpu.memory_space<vmem>>, vector<1x4x32xf32>
    %206 = vector.shape_cast %205 : vector<1x4x32xf32> to vector<4x32xf32>
    %207 = vector.shape_cast %204 : vector<4x32xf32> to vector<1x4x32xf32>
    tpu.vector_store %arg20[%c2_131, %c0_132, %c0_133], %207 {strides = array<i32>} : memref<8x4x32xf32, #tpu.memory_space<vmem>>, vector<1x4x32xf32>,
    %208 = vector.broadcast %96 : vector<4x1xf32> to vector<4x32xf32>
    %209 = arith.mulf %204, %208 : vector<4x32xf32>
    %cst_134 = arith.constant dense<0.000000e+00> : vector<4x128xf32>
    %210 = tpu.matmul %209, %25, %cst_134 {dimension_numbers = #tpu.dot_dimension_numbers<[1], [0], [0], [1], [0, 0, 1, 1], [], []>} : vector<4x32xf32>, vector<32x128xf32>, vector<4x128xf32> -> vector<4x128xf32>
    %211 = vector.broadcast %100 : vector<4x1xf32> to vector<4x32xf32>
    %212 = arith.mulf %204, %211 : vector<4x32xf32>
    %cst_135 = arith.constant dense<0.000000e+00> : vector<4x128xf32>
    %213 = tpu.matmul %212, %26, %cst_135 {dimension_numbers = #tpu.dot_dimension_numbers<[1], [0], [0], [1], [0, 0, 1, 1], [], []>} : vector<4x32xf32>, vector<32x128xf32>, vector<4x128xf32> -> vector<4x128xf32>
    %214 = arith.addf %210, %213 : vector<4x128xf32>
    %c3_136 = arith.constant 3 : index
    %c0_137 = arith.constant 0 : index
    %c0_138 = arith.constant 0 : index
    %215 = vector.load %arg19[%c3_136, %c0_137, %c0_138] : memref<8x4x128xf32, #tpu.memory_space<vmem>>, vector<1x4x128xf32>
    %216 = vector.shape_cast %215 : vector<1x4x128xf32> to vector<4x128xf32>
    %217 = arith.addf %216, %214 : vector<4x128xf32>
    %218 = arith.mulf %217, %109 : vector<4x128xf32>
    %219 = arith.negf %218 : vector<4x128xf32>
    %220 = math.exp %219 : vector<4x128xf32>
    %cst_139 = arith.constant 1.000000e+00 : f32
    %221 = vector.broadcast %cst_139 : f32 to vector<4x128xf32>
    %222 = arith.addf %221, %220 : vector<4x128xf32>
    %223 = arith.divf %221, %222 : vector<4x128xf32>
    %224 = vector.extract_strided_slice %223 {offsets = [0, 0], sizes = [4, 32], strides = [1, 1]} : vector<4x128xf32> to vector<4x32xf32>
    %225 = vector.extract_strided_slice %223 {offsets = [0, 32], sizes = [4, 32], strides = [1, 1]} : vector<4x128xf32> to vector<4x32xf32>
    %226 = vector.extract_strided_slice %223 {offsets = [0, 64], sizes = [4, 32], strides = [1, 1]} : vector<4x128xf32> to vector<4x32xf32>
    %cst_140 = arith.constant 2.000000e+00 : f32
    %227 = vector.broadcast %cst_140 : f32 to vector<4x32xf32>
    %228 = arith.mulf %227, %226 : vector<4x32xf32>
    %cst_141 = arith.constant 1.000000e+00 : f32
    %229 = vector.broadcast %cst_141 : f32 to vector<4x32xf32>
    %230 = arith.subf %228, %229 : vector<4x32xf32>
    %231 = vector.extract_strided_slice %223 {offsets = [0, 96], sizes = [4, 32], strides = [1, 1]} : vector<4x128xf32> to vector<4x32xf32>
    %232 = arith.mulf %225, %202 : vector<4x32xf32>
    %233 = arith.mulf %224, %230 : vector<4x32xf32>
    %234 = arith.addf %232, %233 : vector<4x32xf32>
    %235 = math.tanh %234 : vector<4x32xf32>
    %236 = arith.mulf %231, %235 : vector<4x32xf32>
    %c3_142 = arith.constant 3 : index
    %c0_143 = arith.constant 0 : index
    %c0_144 = arith.constant 0 : index
    %237 = vector.load %arg20[%c3_142, %c0_143, %c0_144] : memref<8x4x32xf32, #tpu.memory_space<vmem>>, vector<1x4x32xf32>
    %238 = vector.shape_cast %237 : vector<1x4x32xf32> to vector<4x32xf32>
    %239 = vector.shape_cast %236 : vector<4x32xf32> to vector<1x4x32xf32>
    tpu.vector_store %arg20[%c3_142, %c0_143, %c0_144], %239 {strides = array<i32>} : memref<8x4x32xf32, #tpu.memory_space<vmem>>, vector<1x4x32xf32>,
    %240 = vector.broadcast %96 : vector<4x1xf32> to vector<4x32xf32>
    %241 = arith.mulf %236, %240 : vector<4x32xf32>
    %cst_145 = arith.constant dense<0.000000e+00> : vector<4x128xf32>
    %242 = tpu.matmul %241, %25, %cst_145 {dimension_numbers = #tpu.dot_dimension_numbers<[1], [0], [0], [1], [0, 0, 1, 1], [], []>} : vector<4x32xf32>, vector<32x128xf32>, vector<4x128xf32> -> vector<4x128xf32>
    %243 = vector.broadcast %100 : vector<4x1xf32> to vector<4x32xf32>
    %244 = arith.mulf %236, %243 : vector<4x32xf32>
    %cst_146 = arith.constant dense<0.000000e+00> : vector<4x128xf32>
    %245 = tpu.matmul %244, %26, %cst_146 {dimension_numbers = #tpu.dot_dimension_numbers<[1], [0], [0], [1], [0, 0, 1, 1], [], []>} : vector<4x32xf32>, vector<32x128xf32>, vector<4x128xf32> -> vector<4x128xf32>
    %246 = arith.addf %242, %245 : vector<4x128xf32>
    %c4_147 = arith.constant 4 : index
    %c0_148 = arith.constant 0 : index
    %c0_149 = arith.constant 0 : index
    %247 = vector.load %arg19[%c4_147, %c0_148, %c0_149] : memref<8x4x128xf32, #tpu.memory_space<vmem>>, vector<1x4x128xf32>
    %248 = vector.shape_cast %247 : vector<1x4x128xf32> to vector<4x128xf32>
    %249 = arith.addf %248, %246 : vector<4x128xf32>
    %250 = arith.mulf %249, %109 : vector<4x128xf32>
    %251 = arith.negf %250 : vector<4x128xf32>
    %252 = math.exp %251 : vector<4x128xf32>
    %cst_150 = arith.constant 1.000000e+00 : f32
    %253 = vector.broadcast %cst_150 : f32 to vector<4x128xf32>
    %254 = arith.addf %253, %252 : vector<4x128xf32>
    %255 = arith.divf %253, %254 : vector<4x128xf32>
    %256 = vector.extract_strided_slice %255 {offsets = [0, 0], sizes = [4, 32], strides = [1, 1]} : vector<4x128xf32> to vector<4x32xf32>
    %257 = vector.extract_strided_slice %255 {offsets = [0, 32], sizes = [4, 32], strides = [1, 1]} : vector<4x128xf32> to vector<4x32xf32>
    %258 = vector.extract_strided_slice %255 {offsets = [0, 64], sizes = [4, 32], strides = [1, 1]} : vector<4x128xf32> to vector<4x32xf32>
    %cst_151 = arith.constant 2.000000e+00 : f32
    %259 = vector.broadcast %cst_151 : f32 to vector<4x32xf32>
    %260 = arith.mulf %259, %258 : vector<4x32xf32>
    %cst_152 = arith.constant 1.000000e+00 : f32
    %261 = vector.broadcast %cst_152 : f32 to vector<4x32xf32>
    %262 = arith.subf %260, %261 : vector<4x32xf32>
    %263 = vector.extract_strided_slice %255 {offsets = [0, 96], sizes = [4, 32], strides = [1, 1]} : vector<4x128xf32> to vector<4x32xf32>
    %264 = arith.mulf %257, %234 : vector<4x32xf32>
    %265 = arith.mulf %256, %262 : vector<4x32xf32>
    %266 = arith.addf %264, %265 : vector<4x32xf32>
    %267 = math.tanh %266 : vector<4x32xf32>
    %268 = arith.mulf %263, %267 : vector<4x32xf32>
    %c4_153 = arith.constant 4 : index
    %c0_154 = arith.constant 0 : index
    %c0_155 = arith.constant 0 : index
    %269 = vector.load %arg20[%c4_153, %c0_154, %c0_155] : memref<8x4x32xf32, #tpu.memory_space<vmem>>, vector<1x4x32xf32>
    %270 = vector.shape_cast %269 : vector<1x4x32xf32> to vector<4x32xf32>
    %271 = vector.shape_cast %268 : vector<4x32xf32> to vector<1x4x32xf32>
    tpu.vector_store %arg20[%c4_153, %c0_154, %c0_155], %271 {strides = array<i32>} : memref<8x4x32xf32, #tpu.memory_space<vmem>>, vector<1x4x32xf32>,
    %272 = vector.broadcast %96 : vector<4x1xf32> to vector<4x32xf32>
    %273 = arith.mulf %268, %272 : vector<4x32xf32>
    %cst_156 = arith.constant dense<0.000000e+00> : vector<4x128xf32>
    %274 = tpu.matmul %273, %25, %cst_156 {dimension_numbers = #tpu.dot_dimension_numbers<[1], [0], [0], [1], [0, 0, 1, 1], [], []>} : vector<4x32xf32>, vector<32x128xf32>, vector<4x128xf32> -> vector<4x128xf32>
    %275 = vector.broadcast %100 : vector<4x1xf32> to vector<4x32xf32>
    %276 = arith.mulf %268, %275 : vector<4x32xf32>
    %cst_157 = arith.constant dense<0.000000e+00> : vector<4x128xf32>
    %277 = tpu.matmul %276, %26, %cst_157 {dimension_numbers = #tpu.dot_dimension_numbers<[1], [0], [0], [1], [0, 0, 1, 1], [], []>} : vector<4x32xf32>, vector<32x128xf32>, vector<4x128xf32> -> vector<4x128xf32>
    %278 = arith.addf %274, %277 : vector<4x128xf32>
    %c5_158 = arith.constant 5 : index
    %c0_159 = arith.constant 0 : index
    %c0_160 = arith.constant 0 : index
    %279 = vector.load %arg19[%c5_158, %c0_159, %c0_160] : memref<8x4x128xf32, #tpu.memory_space<vmem>>, vector<1x4x128xf32>
    %280 = vector.shape_cast %279 : vector<1x4x128xf32> to vector<4x128xf32>
    %281 = arith.addf %280, %278 : vector<4x128xf32>
    %282 = arith.mulf %281, %109 : vector<4x128xf32>
    %283 = arith.negf %282 : vector<4x128xf32>
    %284 = math.exp %283 : vector<4x128xf32>
    %cst_161 = arith.constant 1.000000e+00 : f32
    %285 = vector.broadcast %cst_161 : f32 to vector<4x128xf32>
    %286 = arith.addf %285, %284 : vector<4x128xf32>
    %287 = arith.divf %285, %286 : vector<4x128xf32>
    %288 = vector.extract_strided_slice %287 {offsets = [0, 0], sizes = [4, 32], strides = [1, 1]} : vector<4x128xf32> to vector<4x32xf32>
    %289 = vector.extract_strided_slice %287 {offsets = [0, 32], sizes = [4, 32], strides = [1, 1]} : vector<4x128xf32> to vector<4x32xf32>
    %290 = vector.extract_strided_slice %287 {offsets = [0, 64], sizes = [4, 32], strides = [1, 1]} : vector<4x128xf32> to vector<4x32xf32>
    %cst_162 = arith.constant 2.000000e+00 : f32
    %291 = vector.broadcast %cst_162 : f32 to vector<4x32xf32>
    %292 = arith.mulf %291, %290 : vector<4x32xf32>
    %cst_163 = arith.constant 1.000000e+00 : f32
    %293 = vector.broadcast %cst_163 : f32 to vector<4x32xf32>
    %294 = arith.subf %292, %293 : vector<4x32xf32>
    %295 = vector.extract_strided_slice %287 {offsets = [0, 96], sizes = [4, 32], strides = [1, 1]} : vector<4x128xf32> to vector<4x32xf32>
    %296 = arith.mulf %289, %266 : vector<4x32xf32>
    %297 = arith.mulf %288, %294 : vector<4x32xf32>
    %298 = arith.addf %296, %297 : vector<4x32xf32>
    %299 = math.tanh %298 : vector<4x32xf32>
    %300 = arith.mulf %295, %299 : vector<4x32xf32>
    %c5_164 = arith.constant 5 : index
    %c0_165 = arith.constant 0 : index
    %c0_166 = arith.constant 0 : index
    %301 = vector.load %arg20[%c5_164, %c0_165, %c0_166] : memref<8x4x32xf32, #tpu.memory_space<vmem>>, vector<1x4x32xf32>
    %302 = vector.shape_cast %301 : vector<1x4x32xf32> to vector<4x32xf32>
    %303 = vector.shape_cast %300 : vector<4x32xf32> to vector<1x4x32xf32>
    tpu.vector_store %arg20[%c5_164, %c0_165, %c0_166], %303 {strides = array<i32>} : memref<8x4x32xf32, #tpu.memory_space<vmem>>, vector<1x4x32xf32>,
    %304 = vector.broadcast %96 : vector<4x1xf32> to vector<4x32xf32>
    %305 = arith.mulf %300, %304 : vector<4x32xf32>
    %cst_167 = arith.constant dense<0.000000e+00> : vector<4x128xf32>
    %306 = tpu.matmul %305, %25, %cst_167 {dimension_numbers = #tpu.dot_dimension_numbers<[1], [0], [0], [1], [0, 0, 1, 1], [], []>} : vector<4x32xf32>, vector<32x128xf32>, vector<4x128xf32> -> vector<4x128xf32>
    %307 = vector.broadcast %100 : vector<4x1xf32> to vector<4x32xf32>
    %308 = arith.mulf %300, %307 : vector<4x32xf32>
    %cst_168 = arith.constant dense<0.000000e+00> : vector<4x128xf32>
    %309 = tpu.matmul %308, %26, %cst_168 {dimension_numbers = #tpu.dot_dimension_numbers<[1], [0], [0], [1], [0, 0, 1, 1], [], []>} : vector<4x32xf32>, vector<32x128xf32>, vector<4x128xf32> -> vector<4x128xf32>
    %310 = arith.addf %306, %309 : vector<4x128xf32>
    %c6_169 = arith.constant 6 : index
    %c0_170 = arith.constant 0 : index
    %c0_171 = arith.constant 0 : index
    %311 = vector.load %arg19[%c6_169, %c0_170, %c0_171] : memref<8x4x128xf32, #tpu.memory_space<vmem>>, vector<1x4x128xf32>
    %312 = vector.shape_cast %311 : vector<1x4x128xf32> to vector<4x128xf32>
    %313 = arith.addf %312, %310 : vector<4x128xf32>
    %314 = arith.mulf %313, %109 : vector<4x128xf32>
    %315 = arith.negf %314 : vector<4x128xf32>
    %316 = math.exp %315 : vector<4x128xf32>
    %cst_172 = arith.constant 1.000000e+00 : f32
    %317 = vector.broadcast %cst_172 : f32 to vector<4x128xf32>
    %318 = arith.addf %317, %316 : vector<4x128xf32>
    %319 = arith.divf %317, %318 : vector<4x128xf32>
    %320 = vector.extract_strided_slice %319 {offsets = [0, 0], sizes = [4, 32], strides = [1, 1]} : vector<4x128xf32> to vector<4x32xf32>
    %321 = vector.extract_strided_slice %319 {offsets = [0, 32], sizes = [4, 32], strides = [1, 1]} : vector<4x128xf32> to vector<4x32xf32>
    %322 = vector.extract_strided_slice %319 {offsets = [0, 64], sizes = [4, 32], strides = [1, 1]} : vector<4x128xf32> to vector<4x32xf32>
    %cst_173 = arith.constant 2.000000e+00 : f32
    %323 = vector.broadcast %cst_173 : f32 to vector<4x32xf32>
    %324 = arith.mulf %323, %322 : vector<4x32xf32>
    %cst_174 = arith.constant 1.000000e+00 : f32
    %325 = vector.broadcast %cst_174 : f32 to vector<4x32xf32>
    %326 = arith.subf %324, %325 : vector<4x32xf32>
    %327 = vector.extract_strided_slice %319 {offsets = [0, 96], sizes = [4, 32], strides = [1, 1]} : vector<4x128xf32> to vector<4x32xf32>
    %328 = arith.mulf %321, %298 : vector<4x32xf32>
    %329 = arith.mulf %320, %326 : vector<4x32xf32>
    %330 = arith.addf %328, %329 : vector<4x32xf32>
    %331 = math.tanh %330 : vector<4x32xf32>
    %332 = arith.mulf %327, %331 : vector<4x32xf32>
    %c6_175 = arith.constant 6 : index
    %c0_176 = arith.constant 0 : index
    %c0_177 = arith.constant 0 : index
    %333 = vector.load %arg20[%c6_175, %c0_176, %c0_177] : memref<8x4x32xf32, #tpu.memory_space<vmem>>, vector<1x4x32xf32>
    %334 = vector.shape_cast %333 : vector<1x4x32xf32> to vector<4x32xf32>
    %335 = vector.shape_cast %332 : vector<4x32xf32> to vector<1x4x32xf32>
    tpu.vector_store %arg20[%c6_175, %c0_176, %c0_177], %335 {strides = array<i32>} : memref<8x4x32xf32, #tpu.memory_space<vmem>>, vector<1x4x32xf32>,
    %336 = vector.broadcast %96 : vector<4x1xf32> to vector<4x32xf32>
    %337 = arith.mulf %332, %336 : vector<4x32xf32>
    %cst_178 = arith.constant dense<0.000000e+00> : vector<4x128xf32>
    %338 = tpu.matmul %337, %25, %cst_178 {dimension_numbers = #tpu.dot_dimension_numbers<[1], [0], [0], [1], [0, 0, 1, 1], [], []>} : vector<4x32xf32>, vector<32x128xf32>, vector<4x128xf32> -> vector<4x128xf32>
    %339 = vector.broadcast %100 : vector<4x1xf32> to vector<4x32xf32>
    %340 = arith.mulf %332, %339 : vector<4x32xf32>
    %cst_179 = arith.constant dense<0.000000e+00> : vector<4x128xf32>
    %341 = tpu.matmul %340, %26, %cst_179 {dimension_numbers = #tpu.dot_dimension_numbers<[1], [0], [0], [1], [0, 0, 1, 1], [], []>} : vector<4x32xf32>, vector<32x128xf32>, vector<4x128xf32> -> vector<4x128xf32>
    %342 = arith.addf %338, %341 : vector<4x128xf32>
    %c7_180 = arith.constant 7 : index
    %c0_181 = arith.constant 0 : index
    %c0_182 = arith.constant 0 : index
    %343 = vector.load %arg19[%c7_180, %c0_181, %c0_182] : memref<8x4x128xf32, #tpu.memory_space<vmem>>, vector<1x4x128xf32>
    %344 = vector.shape_cast %343 : vector<1x4x128xf32> to vector<4x128xf32>
    %345 = arith.addf %344, %342 : vector<4x128xf32>
    %346 = arith.mulf %345, %109 : vector<4x128xf32>
    %347 = arith.negf %346 : vector<4x128xf32>
    %348 = math.exp %347 : vector<4x128xf32>
    %cst_183 = arith.constant 1.000000e+00 : f32
    %349 = vector.broadcast %cst_183 : f32 to vector<4x128xf32>
    %350 = arith.addf %349, %348 : vector<4x128xf32>
    %351 = arith.divf %349, %350 : vector<4x128xf32>
    %352 = vector.extract_strided_slice %351 {offsets = [0, 0], sizes = [4, 32], strides = [1, 1]} : vector<4x128xf32> to vector<4x32xf32>
    %353 = vector.extract_strided_slice %351 {offsets = [0, 32], sizes = [4, 32], strides = [1, 1]} : vector<4x128xf32> to vector<4x32xf32>
    %354 = vector.extract_strided_slice %351 {offsets = [0, 64], sizes = [4, 32], strides = [1, 1]} : vector<4x128xf32> to vector<4x32xf32>
    %cst_184 = arith.constant 2.000000e+00 : f32
    %355 = vector.broadcast %cst_184 : f32 to vector<4x32xf32>
    %356 = arith.mulf %355, %354 : vector<4x32xf32>
    %cst_185 = arith.constant 1.000000e+00 : f32
    %357 = vector.broadcast %cst_185 : f32 to vector<4x32xf32>
    %358 = arith.subf %356, %357 : vector<4x32xf32>
    %359 = vector.extract_strided_slice %351 {offsets = [0, 96], sizes = [4, 32], strides = [1, 1]} : vector<4x128xf32> to vector<4x32xf32>
    %360 = arith.mulf %353, %330 : vector<4x32xf32>
    %361 = arith.mulf %352, %358 : vector<4x32xf32>
    %362 = arith.addf %360, %361 : vector<4x32xf32>
    %363 = math.tanh %362 : vector<4x32xf32>
    %364 = arith.mulf %359, %363 : vector<4x32xf32>
    %c7_186 = arith.constant 7 : index
    %c0_187 = arith.constant 0 : index
    %c0_188 = arith.constant 0 : index
    %365 = vector.load %arg20[%c7_186, %c0_187, %c0_188] : memref<8x4x32xf32, #tpu.memory_space<vmem>>, vector<1x4x32xf32>
    %366 = vector.shape_cast %365 : vector<1x4x32xf32> to vector<4x32xf32>
    %367 = vector.shape_cast %364 : vector<4x32xf32> to vector<1x4x32xf32>
    tpu.vector_store %arg20[%c7_186, %c0_187, %c0_188], %367 {strides = array<i32>} : memref<8x4x32xf32, #tpu.memory_space<vmem>>, vector<1x4x32xf32>,
    %c0_189 = arith.constant 0 : index
    %c0_190 = arith.constant 0 : index
    %c0_191 = arith.constant 0 : index
    %368 = vector.load %arg20[%c0_189, %c0_190, %c0_191] : memref<8x4x32xf32, #tpu.memory_space<vmem>>, vector<1x2x32xf32>
    %369 = vector.shape_cast %368 : vector<1x2x32xf32> to vector<2x32xf32>
    %c0_192 = arith.constant 0 : index
    %c0_193 = arith.constant 0 : index
    %370 = vector.load %arg21[%c0_192, %c0_193] : memref<16x64xf32, #tpu.memory_space<vmem>>, vector<2x32xf32>
    tpu.vector_store %arg21[%c0_192, %c0_193], %369 {strides = array<i32>} : memref<16x64xf32, #tpu.memory_space<vmem>>, vector<2x32xf32>,
    %c7_194 = arith.constant 7 : index
    %c2_195 = arith.constant 2 : index
    %c0_196 = arith.constant 0 : index
    %371 = vector.load %arg20[%c7_194, %c2_195, %c0_196] : memref<8x4x32xf32, #tpu.memory_space<vmem>>, vector<1x2x32xf32>
    %372 = vector.shape_cast %371 : vector<1x2x32xf32> to vector<2x32xf32>
    %c0_197 = arith.constant 0 : index
    %c32 = arith.constant 32 : index
    %373 = vector.load %arg21[%c0_197, %c32] : memref<16x64xf32, #tpu.memory_space<vmem>>, vector<2x32xf32>
    tpu.vector_store %arg21[%c0_197, %c32], %372 {strides = array<i32>} : memref<16x64xf32, #tpu.memory_space<vmem>>, vector<2x32xf32>,
    %c1_198 = arith.constant 1 : index
    %c0_199 = arith.constant 0 : index
    %c0_200 = arith.constant 0 : index
    %374 = vector.load %arg20[%c1_198, %c0_199, %c0_200] : memref<8x4x32xf32, #tpu.memory_space<vmem>>, vector<1x2x32xf32>
    %375 = vector.shape_cast %374 : vector<1x2x32xf32> to vector<2x32xf32>
    %c2_201 = arith.constant 2 : index
    %c0_202 = arith.constant 0 : index
    %376 = vector.load %arg21[%c2_201, %c0_202] : memref<16x64xf32, #tpu.memory_space<vmem>>, vector<2x32xf32>
    tpu.vector_store %arg21[%c2_201, %c0_202], %375 {strides = array<i32>} : memref<16x64xf32, #tpu.memory_space<vmem>>, vector<2x32xf32>,
    %c6_203 = arith.constant 6 : index
    %c2_204 = arith.constant 2 : index
    %c0_205 = arith.constant 0 : index
    %377 = vector.load %arg20[%c6_203, %c2_204, %c0_205] : memref<8x4x32xf32, #tpu.memory_space<vmem>>, vector<1x2x32xf32>
    %378 = vector.shape_cast %377 : vector<1x2x32xf32> to vector<2x32xf32>
    %c2_206 = arith.constant 2 : index
    %c32_207 = arith.constant 32 : index
    %379 = vector.load %arg21[%c2_206, %c32_207] : memref<16x64xf32, #tpu.memory_space<vmem>>, vector<2x32xf32>
    tpu.vector_store %arg21[%c2_206, %c32_207], %378 {strides = array<i32>} : memref<16x64xf32, #tpu.memory_space<vmem>>, vector<2x32xf32>,
    %c2_208 = arith.constant 2 : index
    %c0_209 = arith.constant 0 : index
    %c0_210 = arith.constant 0 : index
    %380 = vector.load %arg20[%c2_208, %c0_209, %c0_210] : memref<8x4x32xf32, #tpu.memory_space<vmem>>, vector<1x2x32xf32>
    %381 = vector.shape_cast %380 : vector<1x2x32xf32> to vector<2x32xf32>
    %c4_211 = arith.constant 4 : index
    %c0_212 = arith.constant 0 : index
    %382 = vector.load %arg21[%c4_211, %c0_212] : memref<16x64xf32, #tpu.memory_space<vmem>>, vector<2x32xf32>
    tpu.vector_store %arg21[%c4_211, %c0_212], %381 {strides = array<i32>} : memref<16x64xf32, #tpu.memory_space<vmem>>, vector<2x32xf32>,
    %c5_213 = arith.constant 5 : index
    %c2_214 = arith.constant 2 : index
    %c0_215 = arith.constant 0 : index
    %383 = vector.load %arg20[%c5_213, %c2_214, %c0_215] : memref<8x4x32xf32, #tpu.memory_space<vmem>>, vector<1x2x32xf32>
    %384 = vector.shape_cast %383 : vector<1x2x32xf32> to vector<2x32xf32>
    %c4_216 = arith.constant 4 : index
    %c32_217 = arith.constant 32 : index
    %385 = vector.load %arg21[%c4_216, %c32_217] : memref<16x64xf32, #tpu.memory_space<vmem>>, vector<2x32xf32>
    tpu.vector_store %arg21[%c4_216, %c32_217], %384 {strides = array<i32>} : memref<16x64xf32, #tpu.memory_space<vmem>>, vector<2x32xf32>,
    %c3_218 = arith.constant 3 : index
    %c0_219 = arith.constant 0 : index
    %c0_220 = arith.constant 0 : index
    %386 = vector.load %arg20[%c3_218, %c0_219, %c0_220] : memref<8x4x32xf32, #tpu.memory_space<vmem>>, vector<1x2x32xf32>
    %387 = vector.shape_cast %386 : vector<1x2x32xf32> to vector<2x32xf32>
    %c6_221 = arith.constant 6 : index
    %c0_222 = arith.constant 0 : index
    %388 = vector.load %arg21[%c6_221, %c0_222] : memref<16x64xf32, #tpu.memory_space<vmem>>, vector<2x32xf32>
    tpu.vector_store %arg21[%c6_221, %c0_222], %387 {strides = array<i32>} : memref<16x64xf32, #tpu.memory_space<vmem>>, vector<2x32xf32>,
    %c4_223 = arith.constant 4 : index
    %c2_224 = arith.constant 2 : index
    %c0_225 = arith.constant 0 : index
    %389 = vector.load %arg20[%c4_223, %c2_224, %c0_225] : memref<8x4x32xf32, #tpu.memory_space<vmem>>, vector<1x2x32xf32>
    %390 = vector.shape_cast %389 : vector<1x2x32xf32> to vector<2x32xf32>
    %c6_226 = arith.constant 6 : index
    %c32_227 = arith.constant 32 : index
    %391 = vector.load %arg21[%c6_226, %c32_227] : memref<16x64xf32, #tpu.memory_space<vmem>>, vector<2x32xf32>
    tpu.vector_store %arg21[%c6_226, %c32_227], %390 {strides = array<i32>} : memref<16x64xf32, #tpu.memory_space<vmem>>, vector<2x32xf32>,
    %c4_228 = arith.constant 4 : index
    %c0_229 = arith.constant 0 : index
    %c0_230 = arith.constant 0 : index
    %392 = vector.load %arg20[%c4_228, %c0_229, %c0_230] : memref<8x4x32xf32, #tpu.memory_space<vmem>>, vector<1x2x32xf32>
    %393 = vector.shape_cast %392 : vector<1x2x32xf32> to vector<2x32xf32>
    %c8_231 = arith.constant 8 : index
    %c0_232 = arith.constant 0 : index
    %394 = vector.load %arg21[%c8_231, %c0_232] : memref<16x64xf32, #tpu.memory_space<vmem>>, vector<2x32xf32>
    tpu.vector_store %arg21[%c8_231, %c0_232], %393 {strides = array<i32>} : memref<16x64xf32, #tpu.memory_space<vmem>>, vector<2x32xf32>,
    %c3_233 = arith.constant 3 : index
    %c2_234 = arith.constant 2 : index
    %c0_235 = arith.constant 0 : index
    %395 = vector.load %arg20[%c3_233, %c2_234, %c0_235] : memref<8x4x32xf32, #tpu.memory_space<vmem>>, vector<1x2x32xf32>
    %396 = vector.shape_cast %395 : vector<1x2x32xf32> to vector<2x32xf32>
    %c8_236 = arith.constant 8 : index
    %c32_237 = arith.constant 32 : index
    %397 = vector.load %arg21[%c8_236, %c32_237] : memref<16x64xf32, #tpu.memory_space<vmem>>, vector<2x32xf32>
    tpu.vector_store %arg21[%c8_236, %c32_237], %396 {strides = array<i32>} : memref<16x64xf32, #tpu.memory_space<vmem>>, vector<2x32xf32>,
    %c5_238 = arith.constant 5 : index
    %c0_239 = arith.constant 0 : index
    %c0_240 = arith.constant 0 : index
    %398 = vector.load %arg20[%c5_238, %c0_239, %c0_240] : memref<8x4x32xf32, #tpu.memory_space<vmem>>, vector<1x2x32xf32>
    %399 = vector.shape_cast %398 : vector<1x2x32xf32> to vector<2x32xf32>
    %c10_241 = arith.constant 10 : index
    %c0_242 = arith.constant 0 : index
    %400 = vector.load %arg21[%c10_241, %c0_242] : memref<16x64xf32, #tpu.memory_space<vmem>>, vector<2x32xf32>
    tpu.vector_store %arg21[%c10_241, %c0_242], %399 {strides = array<i32>} : memref<16x64xf32, #tpu.memory_space<vmem>>, vector<2x32xf32>,
    %c2_243 = arith.constant 2 : index
    %c2_244 = arith.constant 2 : index
    %c0_245 = arith.constant 0 : index
    %401 = vector.load %arg20[%c2_243, %c2_244, %c0_245] : memref<8x4x32xf32, #tpu.memory_space<vmem>>, vector<1x2x32xf32>
    %402 = vector.shape_cast %401 : vector<1x2x32xf32> to vector<2x32xf32>
    %c10_246 = arith.constant 10 : index
    %c32_247 = arith.constant 32 : index
    %403 = vector.load %arg21[%c10_246, %c32_247] : memref<16x64xf32, #tpu.memory_space<vmem>>, vector<2x32xf32>
    tpu.vector_store %arg21[%c10_246, %c32_247], %402 {strides = array<i32>} : memref<16x64xf32, #tpu.memory_space<vmem>>, vector<2x32xf32>,
    %c6_248 = arith.constant 6 : index
    %c0_249 = arith.constant 0 : index
    %c0_250 = arith.constant 0 : index
    %404 = vector.load %arg20[%c6_248, %c0_249, %c0_250] : memref<8x4x32xf32, #tpu.memory_space<vmem>>, vector<1x2x32xf32>
    %405 = vector.shape_cast %404 : vector<1x2x32xf32> to vector<2x32xf32>
    %c12_251 = arith.constant 12 : index
    %c0_252 = arith.constant 0 : index
    %406 = vector.load %arg21[%c12_251, %c0_252] : memref<16x64xf32, #tpu.memory_space<vmem>>, vector<2x32xf32>
    tpu.vector_store %arg21[%c12_251, %c0_252], %405 {strides = array<i32>} : memref<16x64xf32, #tpu.memory_space<vmem>>, vector<2x32xf32>,
    %c1_253 = arith.constant 1 : index
    %c2_254 = arith.constant 2 : index
    %c0_255 = arith.constant 0 : index
    %407 = vector.load %arg20[%c1_253, %c2_254, %c0_255] : memref<8x4x32xf32, #tpu.memory_space<vmem>>, vector<1x2x32xf32>
    %408 = vector.shape_cast %407 : vector<1x2x32xf32> to vector<2x32xf32>
    %c12_256 = arith.constant 12 : index
    %c32_257 = arith.constant 32 : index
    %409 = vector.load %arg21[%c12_256, %c32_257] : memref<16x64xf32, #tpu.memory_space<vmem>>, vector<2x32xf32>
    tpu.vector_store %arg21[%c12_256, %c32_257], %408 {strides = array<i32>} : memref<16x64xf32, #tpu.memory_space<vmem>>, vector<2x32xf32>,
    %c7_258 = arith.constant 7 : index
    %c0_259 = arith.constant 0 : index
    %c0_260 = arith.constant 0 : index
    %410 = vector.load %arg20[%c7_258, %c0_259, %c0_260] : memref<8x4x32xf32, #tpu.memory_space<vmem>>, vector<1x2x32xf32>
    %411 = vector.shape_cast %410 : vector<1x2x32xf32> to vector<2x32xf32>
    %c14_261 = arith.constant 14 : index
    %c0_262 = arith.constant 0 : index
    %412 = vector.load %arg21[%c14_261, %c0_262] : memref<16x64xf32, #tpu.memory_space<vmem>>, vector<2x32xf32>
    tpu.vector_store %arg21[%c14_261, %c0_262], %411 {strides = array<i32>} : memref<16x64xf32, #tpu.memory_space<vmem>>, vector<2x32xf32>,
    %c0_263 = arith.constant 0 : index
    %c2_264 = arith.constant 2 : index
    %c0_265 = arith.constant 0 : index
    %413 = vector.load %arg20[%c0_263, %c2_264, %c0_265] : memref<8x4x32xf32, #tpu.memory_space<vmem>>, vector<1x2x32xf32>
    %414 = vector.shape_cast %413 : vector<1x2x32xf32> to vector<2x32xf32>
    %c14_266 = arith.constant 14 : index
    %c32_267 = arith.constant 32 : index
    %415 = vector.load %arg21[%c14_266, %c32_267] : memref<16x64xf32, #tpu.memory_space<vmem>>, vector<2x32xf32>
    tpu.vector_store %arg21[%c14_266, %c32_267], %414 {strides = array<i32>} : memref<16x64xf32, #tpu.memory_space<vmem>>, vector<2x32xf32>,
    %c0_268 = arith.constant 0 : index
    %c0_269 = arith.constant 0 : index
    %416 = vector.load %arg21[%c0_268, %c0_269] : memref<16x64xf32, #tpu.memory_space<vmem>>, vector<16x64xf32>
    %c0_270 = arith.constant 0 : index
    %c0_271 = arith.constant 0 : index
    %417 = vector.load %arg11[%c0_270, %c0_271] : memref<64x256xf32, #tpu.memory_space<vmem>>, vector<64x256xf32>
    %cst_272 = arith.constant dense<0.000000e+00> : vector<16x256xf32>
    %418 = tpu.matmul %416, %417, %cst_272 {dimension_numbers = #tpu.dot_dimension_numbers<[1], [0], [0], [1], [0, 0, 1, 1], [], []>} : vector<16x64xf32>, vector<64x256xf32>, vector<16x256xf32> -> vector<16x256xf32>
    %c0_273 = arith.constant 0 : index
    %c0_274 = arith.constant 0 : index
    %419 = vector.load %arg12[%c0_273, %c0_274] : memref<1x256xf32, #tpu.memory_space<vmem>>, vector<1x256xf32>
    %420 = vector.broadcast %419 : vector<1x256xf32> to vector<16x256xf32>
    %421 = arith.addf %418, %420 : vector<16x256xf32>
    %c0_275 = arith.constant 0 : index
    %c0_276 = arith.constant 0 : index
    %422 = vector.load %arg13[%c0_275, %c0_276] : memref<32x128xf32, #tpu.memory_space<vmem>>, vector<32x128xf32>
    %c0_277 = arith.constant 0 : index
    %c0_278 = arith.constant 0 : index
    %423 = vector.load %arg14[%c0_277, %c0_278] : memref<32x128xf32, #tpu.memory_space<vmem>>, vector<32x128xf32>
    %c0_279 = arith.constant 0 : index
    %c0_280 = arith.constant 0 : index
    %424 = vector.load %arg22[%c0_279, %c0_280] : memref<16x256xf32, #tpu.memory_space<vmem>>, vector<16x256xf32>
    tpu.vector_store %arg22[%c0_279, %c0_280], %421 {strides = array<i32>} : memref<16x256xf32, #tpu.memory_space<vmem>>, vector<16x256xf32>,
    %c0_281 = arith.constant 0 : index
    %c0_282 = arith.constant 0 : index
    %425 = vector.load %arg22[%c0_281, %c0_282] : memref<16x256xf32, #tpu.memory_space<vmem>>, vector<2x128xf32>
    %c0_283 = arith.constant 0 : index
    %c0_284 = arith.constant 0 : index
    %c0_285 = arith.constant 0 : index
    %426 = vector.load %arg23[%c0_283, %c0_284, %c0_285] : memref<8x4x128xf32, #tpu.memory_space<vmem>>, vector<1x2x128xf32>
    %427 = vector.shape_cast %426 : vector<1x2x128xf32> to vector<2x128xf32>
    %428 = vector.shape_cast %425 : vector<2x128xf32> to vector<1x2x128xf32>
    tpu.vector_store %arg23[%c0_283, %c0_284, %c0_285], %428 {strides = array<i32>} : memref<8x4x128xf32, #tpu.memory_space<vmem>>, vector<1x2x128xf32>,
    %c14_286 = arith.constant 14 : index
    %c128_287 = arith.constant 128 : index
    %429 = vector.load %arg22[%c14_286, %c128_287] : memref<16x256xf32, #tpu.memory_space<vmem>>, vector<2x128xf32>
    %c0_288 = arith.constant 0 : index
    %c2_289 = arith.constant 2 : index
    %c0_290 = arith.constant 0 : index
    %430 = vector.load %arg23[%c0_288, %c2_289, %c0_290] : memref<8x4x128xf32, #tpu.memory_space<vmem>>, vector<1x2x128xf32>
    %431 = vector.shape_cast %430 : vector<1x2x128xf32> to vector<2x128xf32>
    %432 = vector.shape_cast %429 : vector<2x128xf32> to vector<1x2x128xf32>
    tpu.vector_store %arg23[%c0_288, %c2_289, %c0_290], %432 {strides = array<i32>} : memref<8x4x128xf32, #tpu.memory_space<vmem>>, vector<1x2x128xf32>,
    %c2_291 = arith.constant 2 : index
    %c0_292 = arith.constant 0 : index
    %433 = vector.load %arg22[%c2_291, %c0_292] : memref<16x256xf32, #tpu.memory_space<vmem>>, vector<2x128xf32>
    %c1_293 = arith.constant 1 : index
    %c0_294 = arith.constant 0 : index
    %c0_295 = arith.constant 0 : index
    %434 = vector.load %arg23[%c1_293, %c0_294, %c0_295] : memref<8x4x128xf32, #tpu.memory_space<vmem>>, vector<1x2x128xf32>
    %435 = vector.shape_cast %434 : vector<1x2x128xf32> to vector<2x128xf32>
    %436 = vector.shape_cast %433 : vector<2x128xf32> to vector<1x2x128xf32>
    tpu.vector_store %arg23[%c1_293, %c0_294, %c0_295], %436 {strides = array<i32>} : memref<8x4x128xf32, #tpu.memory_space<vmem>>, vector<1x2x128xf32>,
    %c12_296 = arith.constant 12 : index
    %c128_297 = arith.constant 128 : index
    %437 = vector.load %arg22[%c12_296, %c128_297] : memref<16x256xf32, #tpu.memory_space<vmem>>, vector<2x128xf32>
    %c1_298 = arith.constant 1 : index
    %c2_299 = arith.constant 2 : index
    %c0_300 = arith.constant 0 : index
    %438 = vector.load %arg23[%c1_298, %c2_299, %c0_300] : memref<8x4x128xf32, #tpu.memory_space<vmem>>, vector<1x2x128xf32>
    %439 = vector.shape_cast %438 : vector<1x2x128xf32> to vector<2x128xf32>
    %440 = vector.shape_cast %437 : vector<2x128xf32> to vector<1x2x128xf32>
    tpu.vector_store %arg23[%c1_298, %c2_299, %c0_300], %440 {strides = array<i32>} : memref<8x4x128xf32, #tpu.memory_space<vmem>>, vector<1x2x128xf32>,
    %c4_301 = arith.constant 4 : index
    %c0_302 = arith.constant 0 : index
    %441 = vector.load %arg22[%c4_301, %c0_302] : memref<16x256xf32, #tpu.memory_space<vmem>>, vector<2x128xf32>
    %c2_303 = arith.constant 2 : index
    %c0_304 = arith.constant 0 : index
    %c0_305 = arith.constant 0 : index
    %442 = vector.load %arg23[%c2_303, %c0_304, %c0_305] : memref<8x4x128xf32, #tpu.memory_space<vmem>>, vector<1x2x128xf32>
    %443 = vector.shape_cast %442 : vector<1x2x128xf32> to vector<2x128xf32>
    %444 = vector.shape_cast %441 : vector<2x128xf32> to vector<1x2x128xf32>
    tpu.vector_store %arg23[%c2_303, %c0_304, %c0_305], %444 {strides = array<i32>} : memref<8x4x128xf32, #tpu.memory_space<vmem>>, vector<1x2x128xf32>,
    %c10_306 = arith.constant 10 : index
    %c128_307 = arith.constant 128 : index
    %445 = vector.load %arg22[%c10_306, %c128_307] : memref<16x256xf32, #tpu.memory_space<vmem>>, vector<2x128xf32>
    %c2_308 = arith.constant 2 : index
    %c2_309 = arith.constant 2 : index
    %c0_310 = arith.constant 0 : index
    %446 = vector.load %arg23[%c2_308, %c2_309, %c0_310] : memref<8x4x128xf32, #tpu.memory_space<vmem>>, vector<1x2x128xf32>
    %447 = vector.shape_cast %446 : vector<1x2x128xf32> to vector<2x128xf32>
    %448 = vector.shape_cast %445 : vector<2x128xf32> to vector<1x2x128xf32>
    tpu.vector_store %arg23[%c2_308, %c2_309, %c0_310], %448 {strides = array<i32>} : memref<8x4x128xf32, #tpu.memory_space<vmem>>, vector<1x2x128xf32>,
    %c6_311 = arith.constant 6 : index
    %c0_312 = arith.constant 0 : index
    %449 = vector.load %arg22[%c6_311, %c0_312] : memref<16x256xf32, #tpu.memory_space<vmem>>, vector<2x128xf32>
    %c3_313 = arith.constant 3 : index
    %c0_314 = arith.constant 0 : index
    %c0_315 = arith.constant 0 : index
    %450 = vector.load %arg23[%c3_313, %c0_314, %c0_315] : memref<8x4x128xf32, #tpu.memory_space<vmem>>, vector<1x2x128xf32>
    %451 = vector.shape_cast %450 : vector<1x2x128xf32> to vector<2x128xf32>
    %452 = vector.shape_cast %449 : vector<2x128xf32> to vector<1x2x128xf32>
    tpu.vector_store %arg23[%c3_313, %c0_314, %c0_315], %452 {strides = array<i32>} : memref<8x4x128xf32, #tpu.memory_space<vmem>>, vector<1x2x128xf32>,
    %c8_316 = arith.constant 8 : index
    %c128_317 = arith.constant 128 : index
    %453 = vector.load %arg22[%c8_316, %c128_317] : memref<16x256xf32, #tpu.memory_space<vmem>>, vector<2x128xf32>
    %c3_318 = arith.constant 3 : index
    %c2_319 = arith.constant 2 : index
    %c0_320 = arith.constant 0 : index
    %454 = vector.load %arg23[%c3_318, %c2_319, %c0_320] : memref<8x4x128xf32, #tpu.memory_space<vmem>>, vector<1x2x128xf32>
    %455 = vector.shape_cast %454 : vector<1x2x128xf32> to vector<2x128xf32>
    %456 = vector.shape_cast %453 : vector<2x128xf32> to vector<1x2x128xf32>
    tpu.vector_store %arg23[%c3_318, %c2_319, %c0_320], %456 {strides = array<i32>} : memref<8x4x128xf32, #tpu.memory_space<vmem>>, vector<1x2x128xf32>,
    %c8_321 = arith.constant 8 : index
    %c0_322 = arith.constant 0 : index
    %457 = vector.load %arg22[%c8_321, %c0_322] : memref<16x256xf32, #tpu.memory_space<vmem>>, vector<2x128xf32>
    %c4_323 = arith.constant 4 : index
    %c0_324 = arith.constant 0 : index
    %c0_325 = arith.constant 0 : index
    %458 = vector.load %arg23[%c4_323, %c0_324, %c0_325] : memref<8x4x128xf32, #tpu.memory_space<vmem>>, vector<1x2x128xf32>
    %459 = vector.shape_cast %458 : vector<1x2x128xf32> to vector<2x128xf32>
    %460 = vector.shape_cast %457 : vector<2x128xf32> to vector<1x2x128xf32>
    tpu.vector_store %arg23[%c4_323, %c0_324, %c0_325], %460 {strides = array<i32>} : memref<8x4x128xf32, #tpu.memory_space<vmem>>, vector<1x2x128xf32>,
    %c6_326 = arith.constant 6 : index
    %c128_327 = arith.constant 128 : index
    %461 = vector.load %arg22[%c6_326, %c128_327] : memref<16x256xf32, #tpu.memory_space<vmem>>, vector<2x128xf32>
    %c4_328 = arith.constant 4 : index
    %c2_329 = arith.constant 2 : index
    %c0_330 = arith.constant 0 : index
    %462 = vector.load %arg23[%c4_328, %c2_329, %c0_330] : memref<8x4x128xf32, #tpu.memory_space<vmem>>, vector<1x2x128xf32>
    %463 = vector.shape_cast %462 : vector<1x2x128xf32> to vector<2x128xf32>
    %464 = vector.shape_cast %461 : vector<2x128xf32> to vector<1x2x128xf32>
    tpu.vector_store %arg23[%c4_328, %c2_329, %c0_330], %464 {strides = array<i32>} : memref<8x4x128xf32, #tpu.memory_space<vmem>>, vector<1x2x128xf32>,
    %c10_331 = arith.constant 10 : index
    %c0_332 = arith.constant 0 : index
    %465 = vector.load %arg22[%c10_331, %c0_332] : memref<16x256xf32, #tpu.memory_space<vmem>>, vector<2x128xf32>
    %c5_333 = arith.constant 5 : index
    %c0_334 = arith.constant 0 : index
    %c0_335 = arith.constant 0 : index
    %466 = vector.load %arg23[%c5_333, %c0_334, %c0_335] : memref<8x4x128xf32, #tpu.memory_space<vmem>>, vector<1x2x128xf32>
    %467 = vector.shape_cast %466 : vector<1x2x128xf32> to vector<2x128xf32>
    %468 = vector.shape_cast %465 : vector<2x128xf32> to vector<1x2x128xf32>
    tpu.vector_store %arg23[%c5_333, %c0_334, %c0_335], %468 {strides = array<i32>} : memref<8x4x128xf32, #tpu.memory_space<vmem>>, vector<1x2x128xf32>,
    %c4_336 = arith.constant 4 : index
    %c128_337 = arith.constant 128 : index
    %469 = vector.load %arg22[%c4_336, %c128_337] : memref<16x256xf32, #tpu.memory_space<vmem>>, vector<2x128xf32>
    %c5_338 = arith.constant 5 : index
    %c2_339 = arith.constant 2 : index
    %c0_340 = arith.constant 0 : index
    %470 = vector.load %arg23[%c5_338, %c2_339, %c0_340] : memref<8x4x128xf32, #tpu.memory_space<vmem>>, vector<1x2x128xf32>
    %471 = vector.shape_cast %470 : vector<1x2x128xf32> to vector<2x128xf32>
    %472 = vector.shape_cast %469 : vector<2x128xf32> to vector<1x2x128xf32>
    tpu.vector_store %arg23[%c5_338, %c2_339, %c0_340], %472 {strides = array<i32>} : memref<8x4x128xf32, #tpu.memory_space<vmem>>, vector<1x2x128xf32>,
    %c12_341 = arith.constant 12 : index
    %c0_342 = arith.constant 0 : index
    %473 = vector.load %arg22[%c12_341, %c0_342] : memref<16x256xf32, #tpu.memory_space<vmem>>, vector<2x128xf32>
    %c6_343 = arith.constant 6 : index
    %c0_344 = arith.constant 0 : index
    %c0_345 = arith.constant 0 : index
    %474 = vector.load %arg23[%c6_343, %c0_344, %c0_345] : memref<8x4x128xf32, #tpu.memory_space<vmem>>, vector<1x2x128xf32>
    %475 = vector.shape_cast %474 : vector<1x2x128xf32> to vector<2x128xf32>
    %476 = vector.shape_cast %473 : vector<2x128xf32> to vector<1x2x128xf32>
    tpu.vector_store %arg23[%c6_343, %c0_344, %c0_345], %476 {strides = array<i32>} : memref<8x4x128xf32, #tpu.memory_space<vmem>>, vector<1x2x128xf32>,
    %c2_346 = arith.constant 2 : index
    %c128_347 = arith.constant 128 : index
    %477 = vector.load %arg22[%c2_346, %c128_347] : memref<16x256xf32, #tpu.memory_space<vmem>>, vector<2x128xf32>
    %c6_348 = arith.constant 6 : index
    %c2_349 = arith.constant 2 : index
    %c0_350 = arith.constant 0 : index
    %478 = vector.load %arg23[%c6_348, %c2_349, %c0_350] : memref<8x4x128xf32, #tpu.memory_space<vmem>>, vector<1x2x128xf32>
    %479 = vector.shape_cast %478 : vector<1x2x128xf32> to vector<2x128xf32>
    %480 = vector.shape_cast %477 : vector<2x128xf32> to vector<1x2x128xf32>
    tpu.vector_store %arg23[%c6_348, %c2_349, %c0_350], %480 {strides = array<i32>} : memref<8x4x128xf32, #tpu.memory_space<vmem>>, vector<1x2x128xf32>,
    %c14_351 = arith.constant 14 : index
    %c0_352 = arith.constant 0 : index
    %481 = vector.load %arg22[%c14_351, %c0_352] : memref<16x256xf32, #tpu.memory_space<vmem>>, vector<2x128xf32>
    %c7_353 = arith.constant 7 : index
    %c0_354 = arith.constant 0 : index
    %c0_355 = arith.constant 0 : index
    %482 = vector.load %arg23[%c7_353, %c0_354, %c0_355] : memref<8x4x128xf32, #tpu.memory_space<vmem>>, vector<1x2x128xf32>
    %483 = vector.shape_cast %482 : vector<1x2x128xf32> to vector<2x128xf32>
    %484 = vector.shape_cast %481 : vector<2x128xf32> to vector<1x2x128xf32>
    tpu.vector_store %arg23[%c7_353, %c0_354, %c0_355], %484 {strides = array<i32>} : memref<8x4x128xf32, #tpu.memory_space<vmem>>, vector<1x2x128xf32>,
    %c0_356 = arith.constant 0 : index
    %c128_357 = arith.constant 128 : index
    %485 = vector.load %arg22[%c0_356, %c128_357] : memref<16x256xf32, #tpu.memory_space<vmem>>, vector<2x128xf32>
    %c7_358 = arith.constant 7 : index
    %c2_359 = arith.constant 2 : index
    %c0_360 = arith.constant 0 : index
    %486 = vector.load %arg23[%c7_358, %c2_359, %c0_360] : memref<8x4x128xf32, #tpu.memory_space<vmem>>, vector<1x2x128xf32>
    %487 = vector.shape_cast %486 : vector<1x2x128xf32> to vector<2x128xf32>
    %488 = vector.shape_cast %485 : vector<2x128xf32> to vector<1x2x128xf32>
    tpu.vector_store %arg23[%c7_358, %c2_359, %c0_360], %488 {strides = array<i32>} : memref<8x4x128xf32, #tpu.memory_space<vmem>>, vector<1x2x128xf32>,
    %489 = tpu.iota {dimensions = array<i32: 0>} : vector<4x1xi32>
    %c2_i32_361 = arith.constant 2 : i32
    %490 = vector.broadcast %c2_i32_361 : i32 to vector<4x1xi32>
    %491 = arith.cmpi slt, %489, %490 : vector<4x1xi32>
    %492 = arith.extui %491 : vector<4x1xi1> to vector<4x1xi32>
    %493 = arith.sitofp %492 : vector<4x1xi32> to vector<4x1xf32>
    %c2_i32_362 = arith.constant 2 : i32
    %494 = vector.broadcast %c2_i32_362 : i32 to vector<4x1xi32>
    %495 = arith.cmpi sge, %489, %494 : vector<4x1xi32>
    %496 = arith.extui %495 : vector<4x1xi1> to vector<4x1xi32>
    %497 = arith.sitofp %496 : vector<4x1xi32> to vector<4x1xf32>
    %498 = tpu.iota {dimensions = array<i32: 1>} : vector<4x128xi32>
    %c64_i32_363 = arith.constant 64 : i32
    %499 = vector.broadcast %c64_i32_363 : i32 to vector<4x128xi32>
    %500 = arith.cmpi sge, %498, %499 : vector<4x128xi32>
    %c96_i32_364 = arith.constant 96 : i32
    %501 = vector.broadcast %c96_i32_364 : i32 to vector<4x128xi32>
    %502 = arith.cmpi slt, %498, %501 : vector<4x128xi32>
    %503 = arith.andi %500, %502 : vector<4x128xi1>
    %cst_365 = arith.constant 2.000000e+00 : f32
    %cst_366 = arith.constant 1.000000e+00 : f32
    %504 = vector.broadcast %cst_365 : f32 to vector<4x128xf32>
    %505 = vector.broadcast %cst_366 : f32 to vector<4x128xf32>
    %506 = arith.select %503, %504, %505 : vector<4x128xi1>, vector<4x128xf32>
    %cst_367 = arith.constant 0.000000e+00 : f32
    %507 = vector.broadcast %cst_367 : f32 to vector<4x32xf32>
    %cst_368 = arith.constant 0.000000e+00 : f32
    %508 = vector.broadcast %cst_368 : f32 to vector<4x32xf32>
    %509 = vector.broadcast %493 : vector<4x1xf32> to vector<4x32xf32>
    %510 = arith.mulf %507, %509 : vector<4x32xf32>
    %cst_369 = arith.constant dense<0.000000e+00> : vector<4x128xf32>
    %511 = tpu.matmul %510, %422, %cst_369 {dimension_numbers = #tpu.dot_dimension_numbers<[1], [0], [0], [1], [0, 0, 1, 1], [], []>} : vector<4x32xf32>, vector<32x128xf32>, vector<4x128xf32> -> vector<4x128xf32>
    %512 = vector.broadcast %497 : vector<4x1xf32> to vector<4x32xf32>
    %513 = arith.mulf %507, %512 : vector<4x32xf32>
    %cst_370 = arith.constant dense<0.000000e+00> : vector<4x128xf32>
    %514 = tpu.matmul %513, %423, %cst_370 {dimension_numbers = #tpu.dot_dimension_numbers<[1], [0], [0], [1], [0, 0, 1, 1], [], []>} : vector<4x32xf32>, vector<32x128xf32>, vector<4x128xf32> -> vector<4x128xf32>
    %515 = arith.addf %511, %514 : vector<4x128xf32>
    %c0_371 = arith.constant 0 : index
    %c0_372 = arith.constant 0 : index
    %c0_373 = arith.constant 0 : index
    %516 = vector.load %arg23[%c0_371, %c0_372, %c0_373] : memref<8x4x128xf32, #tpu.memory_space<vmem>>, vector<1x4x128xf32>
    %517 = vector.shape_cast %516 : vector<1x4x128xf32> to vector<4x128xf32>
    %518 = arith.addf %517, %515 : vector<4x128xf32>
    %519 = arith.mulf %518, %506 : vector<4x128xf32>
    %520 = arith.negf %519 : vector<4x128xf32>
    %521 = math.exp %520 : vector<4x128xf32>
    %cst_374 = arith.constant 1.000000e+00 : f32
    %522 = vector.broadcast %cst_374 : f32 to vector<4x128xf32>
    %523 = arith.addf %522, %521 : vector<4x128xf32>
    %524 = arith.divf %522, %523 : vector<4x128xf32>
    %525 = vector.extract_strided_slice %524 {offsets = [0, 0], sizes = [4, 32], strides = [1, 1]} : vector<4x128xf32> to vector<4x32xf32>
    %526 = vector.extract_strided_slice %524 {offsets = [0, 32], sizes = [4, 32], strides = [1, 1]} : vector<4x128xf32> to vector<4x32xf32>
    %527 = vector.extract_strided_slice %524 {offsets = [0, 64], sizes = [4, 32], strides = [1, 1]} : vector<4x128xf32> to vector<4x32xf32>
    %cst_375 = arith.constant 2.000000e+00 : f32
    %528 = vector.broadcast %cst_375 : f32 to vector<4x32xf32>
    %529 = arith.mulf %528, %527 : vector<4x32xf32>
    %cst_376 = arith.constant 1.000000e+00 : f32
    %530 = vector.broadcast %cst_376 : f32 to vector<4x32xf32>
    %531 = arith.subf %529, %530 : vector<4x32xf32>
    %532 = vector.extract_strided_slice %524 {offsets = [0, 96], sizes = [4, 32], strides = [1, 1]} : vector<4x128xf32> to vector<4x32xf32>
    %533 = arith.mulf %526, %508 : vector<4x32xf32>
    %534 = arith.mulf %525, %531 : vector<4x32xf32>
    %535 = arith.addf %533, %534 : vector<4x32xf32>
    %536 = math.tanh %535 : vector<4x32xf32>
    %537 = arith.mulf %532, %536 : vector<4x32xf32>
    %c0_377 = arith.constant 0 : index
    %c0_378 = arith.constant 0 : index
    %c0_379 = arith.constant 0 : index
    %538 = vector.load %arg24[%c0_377, %c0_378, %c0_379] : memref<8x4x32xf32, #tpu.memory_space<vmem>>, vector<1x4x32xf32>
    %539 = vector.shape_cast %538 : vector<1x4x32xf32> to vector<4x32xf32>
    %540 = vector.shape_cast %537 : vector<4x32xf32> to vector<1x4x32xf32>
    tpu.vector_store %arg24[%c0_377, %c0_378, %c0_379], %540 {strides = array<i32>} : memref<8x4x32xf32, #tpu.memory_space<vmem>>, vector<1x4x32xf32>,
    %541 = vector.broadcast %493 : vector<4x1xf32> to vector<4x32xf32>
    %542 = arith.mulf %537, %541 : vector<4x32xf32>
    %cst_380 = arith.constant dense<0.000000e+00> : vector<4x128xf32>
    %543 = tpu.matmul %542, %422, %cst_380 {dimension_numbers = #tpu.dot_dimension_numbers<[1], [0], [0], [1], [0, 0, 1, 1], [], []>} : vector<4x32xf32>, vector<32x128xf32>, vector<4x128xf32> -> vector<4x128xf32>
    %544 = vector.broadcast %497 : vector<4x1xf32> to vector<4x32xf32>
    %545 = arith.mulf %537, %544 : vector<4x32xf32>
    %cst_381 = arith.constant dense<0.000000e+00> : vector<4x128xf32>
    %546 = tpu.matmul %545, %423, %cst_381 {dimension_numbers = #tpu.dot_dimension_numbers<[1], [0], [0], [1], [0, 0, 1, 1], [], []>} : vector<4x32xf32>, vector<32x128xf32>, vector<4x128xf32> -> vector<4x128xf32>
    %547 = arith.addf %543, %546 : vector<4x128xf32>
    %c1_382 = arith.constant 1 : index
    %c0_383 = arith.constant 0 : index
    %c0_384 = arith.constant 0 : index
    %548 = vector.load %arg23[%c1_382, %c0_383, %c0_384] : memref<8x4x128xf32, #tpu.memory_space<vmem>>, vector<1x4x128xf32>
    %549 = vector.shape_cast %548 : vector<1x4x128xf32> to vector<4x128xf32>
    %550 = arith.addf %549, %547 : vector<4x128xf32>
    %551 = arith.mulf %550, %506 : vector<4x128xf32>
    %552 = arith.negf %551 : vector<4x128xf32>
    %553 = math.exp %552 : vector<4x128xf32>
    %cst_385 = arith.constant 1.000000e+00 : f32
    %554 = vector.broadcast %cst_385 : f32 to vector<4x128xf32>
    %555 = arith.addf %554, %553 : vector<4x128xf32>
    %556 = arith.divf %554, %555 : vector<4x128xf32>
    %557 = vector.extract_strided_slice %556 {offsets = [0, 0], sizes = [4, 32], strides = [1, 1]} : vector<4x128xf32> to vector<4x32xf32>
    %558 = vector.extract_strided_slice %556 {offsets = [0, 32], sizes = [4, 32], strides = [1, 1]} : vector<4x128xf32> to vector<4x32xf32>
    %559 = vector.extract_strided_slice %556 {offsets = [0, 64], sizes = [4, 32], strides = [1, 1]} : vector<4x128xf32> to vector<4x32xf32>
    %cst_386 = arith.constant 2.000000e+00 : f32
    %560 = vector.broadcast %cst_386 : f32 to vector<4x32xf32>
    %561 = arith.mulf %560, %559 : vector<4x32xf32>
    %cst_387 = arith.constant 1.000000e+00 : f32
    %562 = vector.broadcast %cst_387 : f32 to vector<4x32xf32>
    %563 = arith.subf %561, %562 : vector<4x32xf32>
    %564 = vector.extract_strided_slice %556 {offsets = [0, 96], sizes = [4, 32], strides = [1, 1]} : vector<4x128xf32> to vector<4x32xf32>
    %565 = arith.mulf %558, %535 : vector<4x32xf32>
    %566 = arith.mulf %557, %563 : vector<4x32xf32>
    %567 = arith.addf %565, %566 : vector<4x32xf32>
    %568 = math.tanh %567 : vector<4x32xf32>
    %569 = arith.mulf %564, %568 : vector<4x32xf32>
    %c1_388 = arith.constant 1 : index
    %c0_389 = arith.constant 0 : index
    %c0_390 = arith.constant 0 : index
    %570 = vector.load %arg24[%c1_388, %c0_389, %c0_390] : memref<8x4x32xf32, #tpu.memory_space<vmem>>, vector<1x4x32xf32>
    %571 = vector.shape_cast %570 : vector<1x4x32xf32> to vector<4x32xf32>
    %572 = vector.shape_cast %569 : vector<4x32xf32> to vector<1x4x32xf32>
    tpu.vector_store %arg24[%c1_388, %c0_389, %c0_390], %572 {strides = array<i32>} : memref<8x4x32xf32, #tpu.memory_space<vmem>>, vector<1x4x32xf32>,
    %573 = vector.broadcast %493 : vector<4x1xf32> to vector<4x32xf32>
    %574 = arith.mulf %569, %573 : vector<4x32xf32>
    %cst_391 = arith.constant dense<0.000000e+00> : vector<4x128xf32>
    %575 = tpu.matmul %574, %422, %cst_391 {dimension_numbers = #tpu.dot_dimension_numbers<[1], [0], [0], [1], [0, 0, 1, 1], [], []>} : vector<4x32xf32>, vector<32x128xf32>, vector<4x128xf32> -> vector<4x128xf32>
    %576 = vector.broadcast %497 : vector<4x1xf32> to vector<4x32xf32>
    %577 = arith.mulf %569, %576 : vector<4x32xf32>
    %cst_392 = arith.constant dense<0.000000e+00> : vector<4x128xf32>
    %578 = tpu.matmul %577, %423, %cst_392 {dimension_numbers = #tpu.dot_dimension_numbers<[1], [0], [0], [1], [0, 0, 1, 1], [], []>} : vector<4x32xf32>, vector<32x128xf32>, vector<4x128xf32> -> vector<4x128xf32>
    %579 = arith.addf %575, %578 : vector<4x128xf32>
    %c2_393 = arith.constant 2 : index
    %c0_394 = arith.constant 0 : index
    %c0_395 = arith.constant 0 : index
    %580 = vector.load %arg23[%c2_393, %c0_394, %c0_395] : memref<8x4x128xf32, #tpu.memory_space<vmem>>, vector<1x4x128xf32>
    %581 = vector.shape_cast %580 : vector<1x4x128xf32> to vector<4x128xf32>
    %582 = arith.addf %581, %579 : vector<4x128xf32>
    %583 = arith.mulf %582, %506 : vector<4x128xf32>
    %584 = arith.negf %583 : vector<4x128xf32>
    %585 = math.exp %584 : vector<4x128xf32>
    %cst_396 = arith.constant 1.000000e+00 : f32
    %586 = vector.broadcast %cst_396 : f32 to vector<4x128xf32>
    %587 = arith.addf %586, %585 : vector<4x128xf32>
    %588 = arith.divf %586, %587 : vector<4x128xf32>
    %589 = vector.extract_strided_slice %588 {offsets = [0, 0], sizes = [4, 32], strides = [1, 1]} : vector<4x128xf32> to vector<4x32xf32>
    %590 = vector.extract_strided_slice %588 {offsets = [0, 32], sizes = [4, 32], strides = [1, 1]} : vector<4x128xf32> to vector<4x32xf32>
    %591 = vector.extract_strided_slice %588 {offsets = [0, 64], sizes = [4, 32], strides = [1, 1]} : vector<4x128xf32> to vector<4x32xf32>
    %cst_397 = arith.constant 2.000000e+00 : f32
    %592 = vector.broadcast %cst_397 : f32 to vector<4x32xf32>
    %593 = arith.mulf %592, %591 : vector<4x32xf32>
    %cst_398 = arith.constant 1.000000e+00 : f32
    %594 = vector.broadcast %cst_398 : f32 to vector<4x32xf32>
    %595 = arith.subf %593, %594 : vector<4x32xf32>
    %596 = vector.extract_strided_slice %588 {offsets = [0, 96], sizes = [4, 32], strides = [1, 1]} : vector<4x128xf32> to vector<4x32xf32>
    %597 = arith.mulf %590, %567 : vector<4x32xf32>
    %598 = arith.mulf %589, %595 : vector<4x32xf32>
    %599 = arith.addf %597, %598 : vector<4x32xf32>
    %600 = math.tanh %599 : vector<4x32xf32>
    %601 = arith.mulf %596, %600 : vector<4x32xf32>
    %c2_399 = arith.constant 2 : index
    %c0_400 = arith.constant 0 : index
    %c0_401 = arith.constant 0 : index
    %602 = vector.load %arg24[%c2_399, %c0_400, %c0_401] : memref<8x4x32xf32, #tpu.memory_space<vmem>>, vector<1x4x32xf32>
    %603 = vector.shape_cast %602 : vector<1x4x32xf32> to vector<4x32xf32>
    %604 = vector.shape_cast %601 : vector<4x32xf32> to vector<1x4x32xf32>
    tpu.vector_store %arg24[%c2_399, %c0_400, %c0_401], %604 {strides = array<i32>} : memref<8x4x32xf32, #tpu.memory_space<vmem>>, vector<1x4x32xf32>,
    %605 = vector.broadcast %493 : vector<4x1xf32> to vector<4x32xf32>
    %606 = arith.mulf %601, %605 : vector<4x32xf32>
    %cst_402 = arith.constant dense<0.000000e+00> : vector<4x128xf32>
    %607 = tpu.matmul %606, %422, %cst_402 {dimension_numbers = #tpu.dot_dimension_numbers<[1], [0], [0], [1], [0, 0, 1, 1], [], []>} : vector<4x32xf32>, vector<32x128xf32>, vector<4x128xf32> -> vector<4x128xf32>
    %608 = vector.broadcast %497 : vector<4x1xf32> to vector<4x32xf32>
    %609 = arith.mulf %601, %608 : vector<4x32xf32>
    %cst_403 = arith.constant dense<0.000000e+00> : vector<4x128xf32>
    %610 = tpu.matmul %609, %423, %cst_403 {dimension_numbers = #tpu.dot_dimension_numbers<[1], [0], [0], [1], [0, 0, 1, 1], [], []>} : vector<4x32xf32>, vector<32x128xf32>, vector<4x128xf32> -> vector<4x128xf32>
    %611 = arith.addf %607, %610 : vector<4x128xf32>
    %c3_404 = arith.constant 3 : index
    %c0_405 = arith.constant 0 : index
    %c0_406 = arith.constant 0 : index
    %612 = vector.load %arg23[%c3_404, %c0_405, %c0_406] : memref<8x4x128xf32, #tpu.memory_space<vmem>>, vector<1x4x128xf32>
    %613 = vector.shape_cast %612 : vector<1x4x128xf32> to vector<4x128xf32>
    %614 = arith.addf %613, %611 : vector<4x128xf32>
    %615 = arith.mulf %614, %506 : vector<4x128xf32>
    %616 = arith.negf %615 : vector<4x128xf32>
    %617 = math.exp %616 : vector<4x128xf32>
    %cst_407 = arith.constant 1.000000e+00 : f32
    %618 = vector.broadcast %cst_407 : f32 to vector<4x128xf32>
    %619 = arith.addf %618, %617 : vector<4x128xf32>
    %620 = arith.divf %618, %619 : vector<4x128xf32>
    %621 = vector.extract_strided_slice %620 {offsets = [0, 0], sizes = [4, 32], strides = [1, 1]} : vector<4x128xf32> to vector<4x32xf32>
    %622 = vector.extract_strided_slice %620 {offsets = [0, 32], sizes = [4, 32], strides = [1, 1]} : vector<4x128xf32> to vector<4x32xf32>
    %623 = vector.extract_strided_slice %620 {offsets = [0, 64], sizes = [4, 32], strides = [1, 1]} : vector<4x128xf32> to vector<4x32xf32>
    %cst_408 = arith.constant 2.000000e+00 : f32
    %624 = vector.broadcast %cst_408 : f32 to vector<4x32xf32>
    %625 = arith.mulf %624, %623 : vector<4x32xf32>
    %cst_409 = arith.constant 1.000000e+00 : f32
    %626 = vector.broadcast %cst_409 : f32 to vector<4x32xf32>
    %627 = arith.subf %625, %626 : vector<4x32xf32>
    %628 = vector.extract_strided_slice %620 {offsets = [0, 96], sizes = [4, 32], strides = [1, 1]} : vector<4x128xf32> to vector<4x32xf32>
    %629 = arith.mulf %622, %599 : vector<4x32xf32>
    %630 = arith.mulf %621, %627 : vector<4x32xf32>
    %631 = arith.addf %629, %630 : vector<4x32xf32>
    %632 = math.tanh %631 : vector<4x32xf32>
    %633 = arith.mulf %628, %632 : vector<4x32xf32>
    %c3_410 = arith.constant 3 : index
    %c0_411 = arith.constant 0 : index
    %c0_412 = arith.constant 0 : index
    %634 = vector.load %arg24[%c3_410, %c0_411, %c0_412] : memref<8x4x32xf32, #tpu.memory_space<vmem>>, vector<1x4x32xf32>
    %635 = vector.shape_cast %634 : vector<1x4x32xf32> to vector<4x32xf32>
    %636 = vector.shape_cast %633 : vector<4x32xf32> to vector<1x4x32xf32>
    tpu.vector_store %arg24[%c3_410, %c0_411, %c0_412], %636 {strides = array<i32>} : memref<8x4x32xf32, #tpu.memory_space<vmem>>, vector<1x4x32xf32>,
    %637 = vector.broadcast %493 : vector<4x1xf32> to vector<4x32xf32>
    %638 = arith.mulf %633, %637 : vector<4x32xf32>
    %cst_413 = arith.constant dense<0.000000e+00> : vector<4x128xf32>
    %639 = tpu.matmul %638, %422, %cst_413 {dimension_numbers = #tpu.dot_dimension_numbers<[1], [0], [0], [1], [0, 0, 1, 1], [], []>} : vector<4x32xf32>, vector<32x128xf32>, vector<4x128xf32> -> vector<4x128xf32>
    %640 = vector.broadcast %497 : vector<4x1xf32> to vector<4x32xf32>
    %641 = arith.mulf %633, %640 : vector<4x32xf32>
    %cst_414 = arith.constant dense<0.000000e+00> : vector<4x128xf32>
    %642 = tpu.matmul %641, %423, %cst_414 {dimension_numbers = #tpu.dot_dimension_numbers<[1], [0], [0], [1], [0, 0, 1, 1], [], []>} : vector<4x32xf32>, vector<32x128xf32>, vector<4x128xf32> -> vector<4x128xf32>
    %643 = arith.addf %639, %642 : vector<4x128xf32>
    %c4_415 = arith.constant 4 : index
    %c0_416 = arith.constant 0 : index
    %c0_417 = arith.constant 0 : index
    %644 = vector.load %arg23[%c4_415, %c0_416, %c0_417] : memref<8x4x128xf32, #tpu.memory_space<vmem>>, vector<1x4x128xf32>
    %645 = vector.shape_cast %644 : vector<1x4x128xf32> to vector<4x128xf32>
    %646 = arith.addf %645, %643 : vector<4x128xf32>
    %647 = arith.mulf %646, %506 : vector<4x128xf32>
    %648 = arith.negf %647 : vector<4x128xf32>
    %649 = math.exp %648 : vector<4x128xf32>
    %cst_418 = arith.constant 1.000000e+00 : f32
    %650 = vector.broadcast %cst_418 : f32 to vector<4x128xf32>
    %651 = arith.addf %650, %649 : vector<4x128xf32>
    %652 = arith.divf %650, %651 : vector<4x128xf32>
    %653 = vector.extract_strided_slice %652 {offsets = [0, 0], sizes = [4, 32], strides = [1, 1]} : vector<4x128xf32> to vector<4x32xf32>
    %654 = vector.extract_strided_slice %652 {offsets = [0, 32], sizes = [4, 32], strides = [1, 1]} : vector<4x128xf32> to vector<4x32xf32>
    %655 = vector.extract_strided_slice %652 {offsets = [0, 64], sizes = [4, 32], strides = [1, 1]} : vector<4x128xf32> to vector<4x32xf32>
    %cst_419 = arith.constant 2.000000e+00 : f32
    %656 = vector.broadcast %cst_419 : f32 to vector<4x32xf32>
    %657 = arith.mulf %656, %655 : vector<4x32xf32>
    %cst_420 = arith.constant 1.000000e+00 : f32
    %658 = vector.broadcast %cst_420 : f32 to vector<4x32xf32>
    %659 = arith.subf %657, %658 : vector<4x32xf32>
    %660 = vector.extract_strided_slice %652 {offsets = [0, 96], sizes = [4, 32], strides = [1, 1]} : vector<4x128xf32> to vector<4x32xf32>
    %661 = arith.mulf %654, %631 : vector<4x32xf32>
    %662 = arith.mulf %653, %659 : vector<4x32xf32>
    %663 = arith.addf %661, %662 : vector<4x32xf32>
    %664 = math.tanh %663 : vector<4x32xf32>
    %665 = arith.mulf %660, %664 : vector<4x32xf32>
    %c4_421 = arith.constant 4 : index
    %c0_422 = arith.constant 0 : index
    %c0_423 = arith.constant 0 : index
    %666 = vector.load %arg24[%c4_421, %c0_422, %c0_423] : memref<8x4x32xf32, #tpu.memory_space<vmem>>, vector<1x4x32xf32>
    %667 = vector.shape_cast %666 : vector<1x4x32xf32> to vector<4x32xf32>
    %668 = vector.shape_cast %665 : vector<4x32xf32> to vector<1x4x32xf32>
    tpu.vector_store %arg24[%c4_421, %c0_422, %c0_423], %668 {strides = array<i32>} : memref<8x4x32xf32, #tpu.memory_space<vmem>>, vector<1x4x32xf32>,
    %669 = vector.broadcast %493 : vector<4x1xf32> to vector<4x32xf32>
    %670 = arith.mulf %665, %669 : vector<4x32xf32>
    %cst_424 = arith.constant dense<0.000000e+00> : vector<4x128xf32>
    %671 = tpu.matmul %670, %422, %cst_424 {dimension_numbers = #tpu.dot_dimension_numbers<[1], [0], [0], [1], [0, 0, 1, 1], [], []>} : vector<4x32xf32>, vector<32x128xf32>, vector<4x128xf32> -> vector<4x128xf32>
    %672 = vector.broadcast %497 : vector<4x1xf32> to vector<4x32xf32>
    %673 = arith.mulf %665, %672 : vector<4x32xf32>
    %cst_425 = arith.constant dense<0.000000e+00> : vector<4x128xf32>
    %674 = tpu.matmul %673, %423, %cst_425 {dimension_numbers = #tpu.dot_dimension_numbers<[1], [0], [0], [1], [0, 0, 1, 1], [], []>} : vector<4x32xf32>, vector<32x128xf32>, vector<4x128xf32> -> vector<4x128xf32>
    %675 = arith.addf %671, %674 : vector<4x128xf32>
    %c5_426 = arith.constant 5 : index
    %c0_427 = arith.constant 0 : index
    %c0_428 = arith.constant 0 : index
    %676 = vector.load %arg23[%c5_426, %c0_427, %c0_428] : memref<8x4x128xf32, #tpu.memory_space<vmem>>, vector<1x4x128xf32>
    %677 = vector.shape_cast %676 : vector<1x4x128xf32> to vector<4x128xf32>
    %678 = arith.addf %677, %675 : vector<4x128xf32>
    %679 = arith.mulf %678, %506 : vector<4x128xf32>
    %680 = arith.negf %679 : vector<4x128xf32>
    %681 = math.exp %680 : vector<4x128xf32>
    %cst_429 = arith.constant 1.000000e+00 : f32
    %682 = vector.broadcast %cst_429 : f32 to vector<4x128xf32>
    %683 = arith.addf %682, %681 : vector<4x128xf32>
    %684 = arith.divf %682, %683 : vector<4x128xf32>
    %685 = vector.extract_strided_slice %684 {offsets = [0, 0], sizes = [4, 32], strides = [1, 1]} : vector<4x128xf32> to vector<4x32xf32>
    %686 = vector.extract_strided_slice %684 {offsets = [0, 32], sizes = [4, 32], strides = [1, 1]} : vector<4x128xf32> to vector<4x32xf32>
    %687 = vector.extract_strided_slice %684 {offsets = [0, 64], sizes = [4, 32], strides = [1, 1]} : vector<4x128xf32> to vector<4x32xf32>
    %cst_430 = arith.constant 2.000000e+00 : f32
    %688 = vector.broadcast %cst_430 : f32 to vector<4x32xf32>
    %689 = arith.mulf %688, %687 : vector<4x32xf32>
    %cst_431 = arith.constant 1.000000e+00 : f32
    %690 = vector.broadcast %cst_431 : f32 to vector<4x32xf32>
    %691 = arith.subf %689, %690 : vector<4x32xf32>
    %692 = vector.extract_strided_slice %684 {offsets = [0, 96], sizes = [4, 32], strides = [1, 1]} : vector<4x128xf32> to vector<4x32xf32>
    %693 = arith.mulf %686, %663 : vector<4x32xf32>
    %694 = arith.mulf %685, %691 : vector<4x32xf32>
    %695 = arith.addf %693, %694 : vector<4x32xf32>
    %696 = math.tanh %695 : vector<4x32xf32>
    %697 = arith.mulf %692, %696 : vector<4x32xf32>
    %c5_432 = arith.constant 5 : index
    %c0_433 = arith.constant 0 : index
    %c0_434 = arith.constant 0 : index
    %698 = vector.load %arg24[%c5_432, %c0_433, %c0_434] : memref<8x4x32xf32, #tpu.memory_space<vmem>>, vector<1x4x32xf32>
    %699 = vector.shape_cast %698 : vector<1x4x32xf32> to vector<4x32xf32>
    %700 = vector.shape_cast %697 : vector<4x32xf32> to vector<1x4x32xf32>
    tpu.vector_store %arg24[%c5_432, %c0_433, %c0_434], %700 {strides = array<i32>} : memref<8x4x32xf32, #tpu.memory_space<vmem>>, vector<1x4x32xf32>,
    %701 = vector.broadcast %493 : vector<4x1xf32> to vector<4x32xf32>
    %702 = arith.mulf %697, %701 : vector<4x32xf32>
    %cst_435 = arith.constant dense<0.000000e+00> : vector<4x128xf32>
    %703 = tpu.matmul %702, %422, %cst_435 {dimension_numbers = #tpu.dot_dimension_numbers<[1], [0], [0], [1], [0, 0, 1, 1], [], []>} : vector<4x32xf32>, vector<32x128xf32>, vector<4x128xf32> -> vector<4x128xf32>
    %704 = vector.broadcast %497 : vector<4x1xf32> to vector<4x32xf32>
    %705 = arith.mulf %697, %704 : vector<4x32xf32>
    %cst_436 = arith.constant dense<0.000000e+00> : vector<4x128xf32>
    %706 = tpu.matmul %705, %423, %cst_436 {dimension_numbers = #tpu.dot_dimension_numbers<[1], [0], [0], [1], [0, 0, 1, 1], [], []>} : vector<4x32xf32>, vector<32x128xf32>, vector<4x128xf32> -> vector<4x128xf32>
    %707 = arith.addf %703, %706 : vector<4x128xf32>
    %c6_437 = arith.constant 6 : index
    %c0_438 = arith.constant 0 : index
    %c0_439 = arith.constant 0 : index
    %708 = vector.load %arg23[%c6_437, %c0_438, %c0_439] : memref<8x4x128xf32, #tpu.memory_space<vmem>>, vector<1x4x128xf32>
    %709 = vector.shape_cast %708 : vector<1x4x128xf32> to vector<4x128xf32>
    %710 = arith.addf %709, %707 : vector<4x128xf32>
    %711 = arith.mulf %710, %506 : vector<4x128xf32>
    %712 = arith.negf %711 : vector<4x128xf32>
    %713 = math.exp %712 : vector<4x128xf32>
    %cst_440 = arith.constant 1.000000e+00 : f32
    %714 = vector.broadcast %cst_440 : f32 to vector<4x128xf32>
    %715 = arith.addf %714, %713 : vector<4x128xf32>
    %716 = arith.divf %714, %715 : vector<4x128xf32>
    %717 = vector.extract_strided_slice %716 {offsets = [0, 0], sizes = [4, 32], strides = [1, 1]} : vector<4x128xf32> to vector<4x32xf32>
    %718 = vector.extract_strided_slice %716 {offsets = [0, 32], sizes = [4, 32], strides = [1, 1]} : vector<4x128xf32> to vector<4x32xf32>
    %719 = vector.extract_strided_slice %716 {offsets = [0, 64], sizes = [4, 32], strides = [1, 1]} : vector<4x128xf32> to vector<4x32xf32>
    %cst_441 = arith.constant 2.000000e+00 : f32
    %720 = vector.broadcast %cst_441 : f32 to vector<4x32xf32>
    %721 = arith.mulf %720, %719 : vector<4x32xf32>
    %cst_442 = arith.constant 1.000000e+00 : f32
    %722 = vector.broadcast %cst_442 : f32 to vector<4x32xf32>
    %723 = arith.subf %721, %722 : vector<4x32xf32>
    %724 = vector.extract_strided_slice %716 {offsets = [0, 96], sizes = [4, 32], strides = [1, 1]} : vector<4x128xf32> to vector<4x32xf32>
    %725 = arith.mulf %718, %695 : vector<4x32xf32>
    %726 = arith.mulf %717, %723 : vector<4x32xf32>
    %727 = arith.addf %725, %726 : vector<4x32xf32>
    %728 = math.tanh %727 : vector<4x32xf32>
    %729 = arith.mulf %724, %728 : vector<4x32xf32>
    %c6_443 = arith.constant 6 : index
    %c0_444 = arith.constant 0 : index
    %c0_445 = arith.constant 0 : index
    %730 = vector.load %arg24[%c6_443, %c0_444, %c0_445] : memref<8x4x32xf32, #tpu.memory_space<vmem>>, vector<1x4x32xf32>
    %731 = vector.shape_cast %730 : vector<1x4x32xf32> to vector<4x32xf32>
    %732 = vector.shape_cast %729 : vector<4x32xf32> to vector<1x4x32xf32>
    tpu.vector_store %arg24[%c6_443, %c0_444, %c0_445], %732 {strides = array<i32>} : memref<8x4x32xf32, #tpu.memory_space<vmem>>, vector<1x4x32xf32>,
    %733 = vector.broadcast %493 : vector<4x1xf32> to vector<4x32xf32>
    %734 = arith.mulf %729, %733 : vector<4x32xf32>
    %cst_446 = arith.constant dense<0.000000e+00> : vector<4x128xf32>
    %735 = tpu.matmul %734, %422, %cst_446 {dimension_numbers = #tpu.dot_dimension_numbers<[1], [0], [0], [1], [0, 0, 1, 1], [], []>} : vector<4x32xf32>, vector<32x128xf32>, vector<4x128xf32> -> vector<4x128xf32>
    %736 = vector.broadcast %497 : vector<4x1xf32> to vector<4x32xf32>
    %737 = arith.mulf %729, %736 : vector<4x32xf32>
    %cst_447 = arith.constant dense<0.000000e+00> : vector<4x128xf32>
    %738 = tpu.matmul %737, %423, %cst_447 {dimension_numbers = #tpu.dot_dimension_numbers<[1], [0], [0], [1], [0, 0, 1, 1], [], []>} : vector<4x32xf32>, vector<32x128xf32>, vector<4x128xf32> -> vector<4x128xf32>
    %739 = arith.addf %735, %738 : vector<4x128xf32>
    %c7_448 = arith.constant 7 : index
    %c0_449 = arith.constant 0 : index
    %c0_450 = arith.constant 0 : index
    %740 = vector.load %arg23[%c7_448, %c0_449, %c0_450] : memref<8x4x128xf32, #tpu.memory_space<vmem>>, vector<1x4x128xf32>
    %741 = vector.shape_cast %740 : vector<1x4x128xf32> to vector<4x128xf32>
    %742 = arith.addf %741, %739 : vector<4x128xf32>
    %743 = arith.mulf %742, %506 : vector<4x128xf32>
    %744 = arith.negf %743 : vector<4x128xf32>
    %745 = math.exp %744 : vector<4x128xf32>
    %cst_451 = arith.constant 1.000000e+00 : f32
    %746 = vector.broadcast %cst_451 : f32 to vector<4x128xf32>
    %747 = arith.addf %746, %745 : vector<4x128xf32>
    %748 = arith.divf %746, %747 : vector<4x128xf32>
    %749 = vector.extract_strided_slice %748 {offsets = [0, 0], sizes = [4, 32], strides = [1, 1]} : vector<4x128xf32> to vector<4x32xf32>
    %750 = vector.extract_strided_slice %748 {offsets = [0, 32], sizes = [4, 32], strides = [1, 1]} : vector<4x128xf32> to vector<4x32xf32>
    %751 = vector.extract_strided_slice %748 {offsets = [0, 64], sizes = [4, 32], strides = [1, 1]} : vector<4x128xf32> to vector<4x32xf32>
    %cst_452 = arith.constant 2.000000e+00 : f32
    %752 = vector.broadcast %cst_452 : f32 to vector<4x32xf32>
    %753 = arith.mulf %752, %751 : vector<4x32xf32>
    %cst_453 = arith.constant 1.000000e+00 : f32
    %754 = vector.broadcast %cst_453 : f32 to vector<4x32xf32>
    %755 = arith.subf %753, %754 : vector<4x32xf32>
    %756 = vector.extract_strided_slice %748 {offsets = [0, 96], sizes = [4, 32], strides = [1, 1]} : vector<4x128xf32> to vector<4x32xf32>
    %757 = arith.mulf %750, %727 : vector<4x32xf32>
    %758 = arith.mulf %749, %755 : vector<4x32xf32>
    %759 = arith.addf %757, %758 : vector<4x32xf32>
    %760 = math.tanh %759 : vector<4x32xf32>
    %761 = arith.mulf %756, %760 : vector<4x32xf32>
    %c7_454 = arith.constant 7 : index
    %c0_455 = arith.constant 0 : index
    %c0_456 = arith.constant 0 : index
    %762 = vector.load %arg24[%c7_454, %c0_455, %c0_456] : memref<8x4x32xf32, #tpu.memory_space<vmem>>, vector<1x4x32xf32>
    %763 = vector.shape_cast %762 : vector<1x4x32xf32> to vector<4x32xf32>
    %764 = vector.shape_cast %761 : vector<4x32xf32> to vector<1x4x32xf32>
    tpu.vector_store %arg24[%c7_454, %c0_455, %c0_456], %764 {strides = array<i32>} : memref<8x4x32xf32, #tpu.memory_space<vmem>>, vector<1x4x32xf32>,
    %c0_457 = arith.constant 0 : index
    %c0_458 = arith.constant 0 : index
    %c0_459 = arith.constant 0 : index
    %765 = vector.load %arg24[%c0_457, %c0_458, %c0_459] : memref<8x4x32xf32, #tpu.memory_space<vmem>>, vector<1x2x32xf32>
    %766 = vector.shape_cast %765 : vector<1x2x32xf32> to vector<2x32xf32>
    %c0_460 = arith.constant 0 : index
    %c0_461 = arith.constant 0 : index
    %767 = vector.load %arg25[%c0_460, %c0_461] : memref<16x64xf32, #tpu.memory_space<vmem>>, vector<2x32xf32>
    tpu.vector_store %arg25[%c0_460, %c0_461], %766 {strides = array<i32>} : memref<16x64xf32, #tpu.memory_space<vmem>>, vector<2x32xf32>,
    %c7_462 = arith.constant 7 : index
    %c2_463 = arith.constant 2 : index
    %c0_464 = arith.constant 0 : index
    %768 = vector.load %arg24[%c7_462, %c2_463, %c0_464] : memref<8x4x32xf32, #tpu.memory_space<vmem>>, vector<1x2x32xf32>
    %769 = vector.shape_cast %768 : vector<1x2x32xf32> to vector<2x32xf32>
    %c0_465 = arith.constant 0 : index
    %c32_466 = arith.constant 32 : index
    %770 = vector.load %arg25[%c0_465, %c32_466] : memref<16x64xf32, #tpu.memory_space<vmem>>, vector<2x32xf32>
    tpu.vector_store %arg25[%c0_465, %c32_466], %769 {strides = array<i32>} : memref<16x64xf32, #tpu.memory_space<vmem>>, vector<2x32xf32>,
    %c1_467 = arith.constant 1 : index
    %c0_468 = arith.constant 0 : index
    %c0_469 = arith.constant 0 : index
    %771 = vector.load %arg24[%c1_467, %c0_468, %c0_469] : memref<8x4x32xf32, #tpu.memory_space<vmem>>, vector<1x2x32xf32>
    %772 = vector.shape_cast %771 : vector<1x2x32xf32> to vector<2x32xf32>
    %c2_470 = arith.constant 2 : index
    %c0_471 = arith.constant 0 : index
    %773 = vector.load %arg25[%c2_470, %c0_471] : memref<16x64xf32, #tpu.memory_space<vmem>>, vector<2x32xf32>
    tpu.vector_store %arg25[%c2_470, %c0_471], %772 {strides = array<i32>} : memref<16x64xf32, #tpu.memory_space<vmem>>, vector<2x32xf32>,
    %c6_472 = arith.constant 6 : index
    %c2_473 = arith.constant 2 : index
    %c0_474 = arith.constant 0 : index
    %774 = vector.load %arg24[%c6_472, %c2_473, %c0_474] : memref<8x4x32xf32, #tpu.memory_space<vmem>>, vector<1x2x32xf32>
    %775 = vector.shape_cast %774 : vector<1x2x32xf32> to vector<2x32xf32>
    %c2_475 = arith.constant 2 : index
    %c32_476 = arith.constant 32 : index
    %776 = vector.load %arg25[%c2_475, %c32_476] : memref<16x64xf32, #tpu.memory_space<vmem>>, vector<2x32xf32>
    tpu.vector_store %arg25[%c2_475, %c32_476], %775 {strides = array<i32>} : memref<16x64xf32, #tpu.memory_space<vmem>>, vector<2x32xf32>,
    %c2_477 = arith.constant 2 : index
    %c0_478 = arith.constant 0 : index
    %c0_479 = arith.constant 0 : index
    %777 = vector.load %arg24[%c2_477, %c0_478, %c0_479] : memref<8x4x32xf32, #tpu.memory_space<vmem>>, vector<1x2x32xf32>
    %778 = vector.shape_cast %777 : vector<1x2x32xf32> to vector<2x32xf32>
    %c4_480 = arith.constant 4 : index
    %c0_481 = arith.constant 0 : index
    %779 = vector.load %arg25[%c4_480, %c0_481] : memref<16x64xf32, #tpu.memory_space<vmem>>, vector<2x32xf32>
    tpu.vector_store %arg25[%c4_480, %c0_481], %778 {strides = array<i32>} : memref<16x64xf32, #tpu.memory_space<vmem>>, vector<2x32xf32>,
    %c5_482 = arith.constant 5 : index
    %c2_483 = arith.constant 2 : index
    %c0_484 = arith.constant 0 : index
    %780 = vector.load %arg24[%c5_482, %c2_483, %c0_484] : memref<8x4x32xf32, #tpu.memory_space<vmem>>, vector<1x2x32xf32>
    %781 = vector.shape_cast %780 : vector<1x2x32xf32> to vector<2x32xf32>
    %c4_485 = arith.constant 4 : index
    %c32_486 = arith.constant 32 : index
    %782 = vector.load %arg25[%c4_485, %c32_486] : memref<16x64xf32, #tpu.memory_space<vmem>>, vector<2x32xf32>
    tpu.vector_store %arg25[%c4_485, %c32_486], %781 {strides = array<i32>} : memref<16x64xf32, #tpu.memory_space<vmem>>, vector<2x32xf32>,
    %c3_487 = arith.constant 3 : index
    %c0_488 = arith.constant 0 : index
    %c0_489 = arith.constant 0 : index
    %783 = vector.load %arg24[%c3_487, %c0_488, %c0_489] : memref<8x4x32xf32, #tpu.memory_space<vmem>>, vector<1x2x32xf32>
    %784 = vector.shape_cast %783 : vector<1x2x32xf32> to vector<2x32xf32>
    %c6_490 = arith.constant 6 : index
    %c0_491 = arith.constant 0 : index
    %785 = vector.load %arg25[%c6_490, %c0_491] : memref<16x64xf32, #tpu.memory_space<vmem>>, vector<2x32xf32>
    tpu.vector_store %arg25[%c6_490, %c0_491], %784 {strides = array<i32>} : memref<16x64xf32, #tpu.memory_space<vmem>>, vector<2x32xf32>,
    %c4_492 = arith.constant 4 : index
    %c2_493 = arith.constant 2 : index
    %c0_494 = arith.constant 0 : index
    %786 = vector.load %arg24[%c4_492, %c2_493, %c0_494] : memref<8x4x32xf32, #tpu.memory_space<vmem>>, vector<1x2x32xf32>
    %787 = vector.shape_cast %786 : vector<1x2x32xf32> to vector<2x32xf32>
    %c6_495 = arith.constant 6 : index
    %c32_496 = arith.constant 32 : index
    %788 = vector.load %arg25[%c6_495, %c32_496] : memref<16x64xf32, #tpu.memory_space<vmem>>, vector<2x32xf32>
    tpu.vector_store %arg25[%c6_495, %c32_496], %787 {strides = array<i32>} : memref<16x64xf32, #tpu.memory_space<vmem>>, vector<2x32xf32>,
    %c4_497 = arith.constant 4 : index
    %c0_498 = arith.constant 0 : index
    %c0_499 = arith.constant 0 : index
    %789 = vector.load %arg24[%c4_497, %c0_498, %c0_499] : memref<8x4x32xf32, #tpu.memory_space<vmem>>, vector<1x2x32xf32>
    %790 = vector.shape_cast %789 : vector<1x2x32xf32> to vector<2x32xf32>
    %c8_500 = arith.constant 8 : index
    %c0_501 = arith.constant 0 : index
    %791 = vector.load %arg25[%c8_500, %c0_501] : memref<16x64xf32, #tpu.memory_space<vmem>>, vector<2x32xf32>
    tpu.vector_store %arg25[%c8_500, %c0_501], %790 {strides = array<i32>} : memref<16x64xf32, #tpu.memory_space<vmem>>, vector<2x32xf32>,
    %c3_502 = arith.constant 3 : index
    %c2_503 = arith.constant 2 : index
    %c0_504 = arith.constant 0 : index
    %792 = vector.load %arg24[%c3_502, %c2_503, %c0_504] : memref<8x4x32xf32, #tpu.memory_space<vmem>>, vector<1x2x32xf32>
    %793 = vector.shape_cast %792 : vector<1x2x32xf32> to vector<2x32xf32>
    %c8_505 = arith.constant 8 : index
    %c32_506 = arith.constant 32 : index
    %794 = vector.load %arg25[%c8_505, %c32_506] : memref<16x64xf32, #tpu.memory_space<vmem>>, vector<2x32xf32>
    tpu.vector_store %arg25[%c8_505, %c32_506], %793 {strides = array<i32>} : memref<16x64xf32, #tpu.memory_space<vmem>>, vector<2x32xf32>,
    %c5_507 = arith.constant 5 : index
    %c0_508 = arith.constant 0 : index
    %c0_509 = arith.constant 0 : index
    %795 = vector.load %arg24[%c5_507, %c0_508, %c0_509] : memref<8x4x32xf32, #tpu.memory_space<vmem>>, vector<1x2x32xf32>
    %796 = vector.shape_cast %795 : vector<1x2x32xf32> to vector<2x32xf32>
    %c10_510 = arith.constant 10 : index
    %c0_511 = arith.constant 0 : index
    %797 = vector.load %arg25[%c10_510, %c0_511] : memref<16x64xf32, #tpu.memory_space<vmem>>, vector<2x32xf32>
    tpu.vector_store %arg25[%c10_510, %c0_511], %796 {strides = array<i32>} : memref<16x64xf32, #tpu.memory_space<vmem>>, vector<2x32xf32>,
    %c2_512 = arith.constant 2 : index
    %c2_513 = arith.constant 2 : index
    %c0_514 = arith.constant 0 : index
    %798 = vector.load %arg24[%c2_512, %c2_513, %c0_514] : memref<8x4x32xf32, #tpu.memory_space<vmem>>, vector<1x2x32xf32>
    %799 = vector.shape_cast %798 : vector<1x2x32xf32> to vector<2x32xf32>
    %c10_515 = arith.constant 10 : index
    %c32_516 = arith.constant 32 : index
    %800 = vector.load %arg25[%c10_515, %c32_516] : memref<16x64xf32, #tpu.memory_space<vmem>>, vector<2x32xf32>
    tpu.vector_store %arg25[%c10_515, %c32_516], %799 {strides = array<i32>} : memref<16x64xf32, #tpu.memory_space<vmem>>, vector<2x32xf32>,
    %c6_517 = arith.constant 6 : index
    %c0_518 = arith.constant 0 : index
    %c0_519 = arith.constant 0 : index
    %801 = vector.load %arg24[%c6_517, %c0_518, %c0_519] : memref<8x4x32xf32, #tpu.memory_space<vmem>>, vector<1x2x32xf32>
    %802 = vector.shape_cast %801 : vector<1x2x32xf32> to vector<2x32xf32>
    %c12_520 = arith.constant 12 : index
    %c0_521 = arith.constant 0 : index
    %803 = vector.load %arg25[%c12_520, %c0_521] : memref<16x64xf32, #tpu.memory_space<vmem>>, vector<2x32xf32>
    tpu.vector_store %arg25[%c12_520, %c0_521], %802 {strides = array<i32>} : memref<16x64xf32, #tpu.memory_space<vmem>>, vector<2x32xf32>,
    %c1_522 = arith.constant 1 : index
    %c2_523 = arith.constant 2 : index
    %c0_524 = arith.constant 0 : index
    %804 = vector.load %arg24[%c1_522, %c2_523, %c0_524] : memref<8x4x32xf32, #tpu.memory_space<vmem>>, vector<1x2x32xf32>
    %805 = vector.shape_cast %804 : vector<1x2x32xf32> to vector<2x32xf32>
    %c12_525 = arith.constant 12 : index
    %c32_526 = arith.constant 32 : index
    %806 = vector.load %arg25[%c12_525, %c32_526] : memref<16x64xf32, #tpu.memory_space<vmem>>, vector<2x32xf32>
    tpu.vector_store %arg25[%c12_525, %c32_526], %805 {strides = array<i32>} : memref<16x64xf32, #tpu.memory_space<vmem>>, vector<2x32xf32>,
    %c7_527 = arith.constant 7 : index
    %c0_528 = arith.constant 0 : index
    %c0_529 = arith.constant 0 : index
    %807 = vector.load %arg24[%c7_527, %c0_528, %c0_529] : memref<8x4x32xf32, #tpu.memory_space<vmem>>, vector<1x2x32xf32>
    %808 = vector.shape_cast %807 : vector<1x2x32xf32> to vector<2x32xf32>
    %c14_530 = arith.constant 14 : index
    %c0_531 = arith.constant 0 : index
    %809 = vector.load %arg25[%c14_530, %c0_531] : memref<16x64xf32, #tpu.memory_space<vmem>>, vector<2x32xf32>
    tpu.vector_store %arg25[%c14_530, %c0_531], %808 {strides = array<i32>} : memref<16x64xf32, #tpu.memory_space<vmem>>, vector<2x32xf32>,
    %c0_532 = arith.constant 0 : index
    %c2_533 = arith.constant 2 : index
    %c0_534 = arith.constant 0 : index
    %810 = vector.load %arg24[%c0_532, %c2_533, %c0_534] : memref<8x4x32xf32, #tpu.memory_space<vmem>>, vector<1x2x32xf32>
    %811 = vector.shape_cast %810 : vector<1x2x32xf32> to vector<2x32xf32>
    %c14_535 = arith.constant 14 : index
    %c32_536 = arith.constant 32 : index
    %812 = vector.load %arg25[%c14_535, %c32_536] : memref<16x64xf32, #tpu.memory_space<vmem>>, vector<2x32xf32>
    tpu.vector_store %arg25[%c14_535, %c32_536], %811 {strides = array<i32>} : memref<16x64xf32, #tpu.memory_space<vmem>>, vector<2x32xf32>,
    %c0_537 = arith.constant 0 : index
    %c0_538 = arith.constant 0 : index
    %813 = vector.load %arg25[%c0_537, %c0_538] : memref<16x64xf32, #tpu.memory_space<vmem>>, vector<16x64xf32>
    %c0_539 = arith.constant 0 : index
    %c0_540 = arith.constant 0 : index
    %814 = vector.load %arg15[%c0_539, %c0_540] : memref<64x128xf32, #tpu.memory_space<vmem>>, vector<64x128xf32>
    %cst_541 = arith.constant dense<0.000000e+00> : vector<16x128xf32>
    %815 = tpu.matmul %813, %814, %cst_541 {dimension_numbers = #tpu.dot_dimension_numbers<[1], [0], [0], [1], [0, 0, 1, 1], [], []>} : vector<16x64xf32>, vector<64x128xf32>, vector<16x128xf32> -> vector<16x128xf32>
    %c0_542 = arith.constant 0 : index
    %c0_543 = arith.constant 0 : index
    %816 = vector.load %arg16[%c0_542, %c0_543] : memref<1x128xf32, #tpu.memory_space<vmem>>, vector<1x128xf32>
    %817 = vector.broadcast %816 : vector<1x128xf32> to vector<16x128xf32>
    %818 = arith.addf %815, %817 : vector<16x128xf32>
    %819 = tpu.iota {dimensions = array<i32: 1>} : vector<16x128xi32>
    %c16_i32 = arith.constant 16 : i32
    %820 = vector.broadcast %c16_i32 : i32 to vector<16x128xi32>
    %821 = arith.cmpi slt, %819, %820 : vector<16x128xi32>
    %cst_544 = arith.constant -1.000000e+09 : f32
    %822 = vector.broadcast %cst_544 : f32 to vector<16x128xf32>
    %823 = arith.select %821, %818, %822 : vector<16x128xi1>, vector<16x128xf32>
    %cst_545 = arith.constant dense<0xFF800000> : vector<16xf32>
    %824 = vector.multi_reduction <maximumf>, %823, %cst_545 [1] : vector<16x128xf32> to vector<16xf32>
    %825 = vector.shape_cast %824 : vector<16xf32> to vector<16x1xf32>
    %826 = vector.broadcast %825 : vector<16x1xf32> to vector<16x128xf32>
    %827 = arith.subf %823, %826 : vector<16x128xf32>
    %828 = math.exp %827 : vector<16x128xf32>
    %cst_546 = arith.constant dense<0.000000e+00> : vector<16xf32>
    %829 = vector.multi_reduction <add>, %828, %cst_546 [1] : vector<16x128xf32> to vector<16xf32>
    %830 = vector.shape_cast %829 : vector<16xf32> to vector<16x1xf32>
    %831 = math.log %830 : vector<16x1xf32>
    %832 = vector.broadcast %831 : vector<16x1xf32> to vector<16x128xf32>
    %833 = arith.subf %827, %832 : vector<16x128xf32>
    %c0_547 = arith.constant 0 : index
    %c0_548 = arith.constant 0 : index
    %834 = vector.load %arg17[%c0_547, %c0_548] : memref<16x128xf32, #tpu.memory_space<vmem>>, vector<16x128xf32>
    tpu.vector_store %arg17[%c0_547, %c0_548], %833 {strides = array<i32>} : memref<16x128xf32, #tpu.memory_space<vmem>>, vector<16x128xf32>,
    return
  }
}

</mosaic_0001>

<bundles_post_ra>
// kernel: crnn_forward.1
= control target key start
LH: loop header
LB: loop body
LE: loop exit
PB: predicated region body
PF: predicated region fallthrough
CT: control target
= control target key end

     0   :  { %s3976_s0 = inlined_call_operand.vmem [shape: f32[16,1024], index: 0, kind: input, shape index: {}]   ;;  %s3977_s1 = inlined_call_operand.vmem [shape: f32[1024,128], index: 1, kind: input, shape index: {}]   ;;  %s3978_s2 = inlined_call_operand.vmem [shape: f32[1,128], index: 2, kind: input, shape index: {}]   ;;  %s3979_s3 = inlined_call_operand.vmem [shape: f32[128,32], index: 3, kind: input, shape index: {}]   ;;  %s3980_s4 = inlined_call_operand.vmem [shape: f32[1,32], index: 4, kind: input, shape index: {}]   ;;  %s3981_s5 = inlined_call_operand.vmem [shape: f32[32,32], index: 5, kind: input, shape index: {}]   ;;  %s3982_s6 = inlined_call_operand.vmem [shape: f32[1,32], index: 6, kind: input, shape index: {}]   ;;  %s3983_s7 = inlined_call_operand.vmem [shape: f32[32,256], index: 7, kind: input, shape index: {}]   ;;  %s3984_s8 = inlined_call_operand.vmem [shape: f32[1,256], index: 8, kind: input, shape index: {}]   ;;  %s3985_s9 = inlined_call_operand.vmem [shape: f32[32,128], index: 9, kind: input, shape index: {}]   ;;  %s3986_s10 = inlined_call_operand.vmem [shape: f32[32,128], index: 10, kind: input, shape index: {}]   ;;  %s3987_s11 = inlined_call_operand.vmem [shape: f32[64,256], index: 11, kind: input, shape index: {}]   ;;  %s3988_s12 = inlined_call_operand.vmem [shape: f32[1,256], index: 12, kind: input, shape index: {}]   ;;  %s3989_s13 = inlined_call_operand.vmem [shape: f32[32,128], index: 13, kind: input, shape index: {}]   ;;  %s3990_s14 = inlined_call_operand.vmem [shape: f32[32,128], index: 14, kind: input, shape index: {}]   ;;  %s3991_s15 = inlined_call_operand.vmem [shape: f32[64,128], index: 15, kind: input, shape index: {}]   ;;  %s3992_s16 = inlined_call_operand.vmem [shape: f32[1,128], index: 16, kind: input, shape index: {}]   ;;  %s3993_s17 = inlined_call_operand.hbm [shape: f32[16,128], index: 17, kind: output, shape index: {}]  }
   0x1   :  { %3996 = sst [smem:[#allocation13_spill]] %s3976_s0 }
   0x2   :  { %3997 = sst [smem:[#allocation14_spill]] %s3977_s1 }
   0x3   :  { %s3998_s26 = sld [smem:[#allocation14_spill]] }
   0x4   :  { %s3999_s19 = sld [smem:[#allocation13_spill]] }
   0x9   :  { %v88_v0 = vld [vmem:[%s3998_s26 + $0x78] sm:$0xff]  ;;  %v87_v2 = vld [vmem:[%s3998_s26 + $0x70] sm:$0xff]  ;;  %v86_v6 = vld [vmem:[%s3998_s26 + $0x68] sm:$0xff] }
   0xa   :  { %v120_v1 = vld [vmem:[%s3998_s26 + $0x178] sm:$0xff]  ;;  %205 = vmatpush.msra.mxu0 %v88_v0  ;;  %v119_v4 = vld [vmem:[%s3998_s26 + $0x170] sm:$0xff]  ;;  %v118_v8 = vld [vmem:[%s3998_s26 + $0x168] sm:$0xff] }
   0xb   :  { %251 = vmatpush.msra.mxu2 %v120_v1  ;;  %v104_v3 = vld [vmem:[%s3998_s26 + $0xf8] sm:$0xff]  ;;  %v103_v7 = vld [vmem:[%s3998_s26 + $0xf0] sm:$0xff]  ;;  %v102_v10 = vld [vmem:[%s3998_s26 + $0xe8] sm:$0xff] }
   0xc   :  { %v136_v5 = vld [vmem:[%s3998_s26 + $0x1f8] sm:$0xff]  ;;  %228 = vmatpush.msra.mxu1 %v104_v3  ;;  %206 = vmatpush.msra.mxu0 %v87_v2  ;;  %v135_v9 = vld [vmem:[%s3998_s26 + $0x1f0] sm:$0xff]  ;;  %v85_v11 = vld [vmem:[%s3998_s26 + $0x60] sm:$0xff] }
   0xd   :  { %274 = vmatpush.msra.mxu3 %v136_v5  ;;  %252 = vmatpush.msra.mxu2 %v119_v4  ;;  %v117_v12 = vld [vmem:[%s3998_s26 + $0x160] sm:$0xff]  ;;  %v134_v13 = vld [vmem:[%s3998_s26 + $0x1e8] sm:$0xff]  ;;  %v84_v16 = vld [vmem:[%s3998_s26 + $0x58] sm:$0xff] }
   0xe   :  { %229 = vmatpush.msra.mxu1 %v103_v7  ;;  %207 = vmatpush.msra.mxu0 %v86_v6  ;;  %v101_v14 = vld [vmem:[%s3998_s26 + $0xe0] sm:$0xff]  ;;  %v116_v17 = vld [vmem:[%s3998_s26 + $0x158] sm:$0xff]  ;;  %v83_v20 = vld [vmem:[%s3998_s26 + $0x50] sm:$0xff] }
   0xf   :  { %275 = vmatpush.msra.mxu3 %v135_v9  ;;  %253 = vmatpush.msra.mxu2 %v118_v8  ;;  %v133_v15 = vld [vmem:[%s3998_s26 + $0x1e0] sm:$0xff]  ;;  %v100_v18 = vld [vmem:[%s3998_s26 + $0xd8] sm:$0xff]  ;;  %v115_v21 = vld [vmem:[%s3998_s26 + $0x150] sm:$0xff] }
  0x10   :  { %230 = vmatpush.msra.mxu1 %v102_v10  ;;  %208 = vmatpush.msra.mxu0 %v85_v11  ;;  %v132_v19 = vld [vmem:[%s3998_s26 + $0x1d8] sm:$0xff]  ;;  %v99_v22 = vld [vmem:[%s3998_s26 + $0xd0] sm:$0xff]  ;;  %v82_v24 = vld [vmem:[%s3998_s26 + $0x48] sm:$0xff] }
  0x11   :  { %276 = vmatpush.msra.mxu3 %v134_v13  ;;  %254 = vmatpush.msra.mxu2 %v117_v12  ;;  %v131_v23 = vld [vmem:[%s3998_s26 + $0x1d0] sm:$0xff]  ;;  %v114_v25 = vld [vmem:[%s3998_s26 + $0x148] sm:$0xff]  ;;  %v81_v28 = vld [vmem:[%s3998_s26 + $0x40] sm:$0xff] }
  0x12   :  { %231 = vmatpush.msra.mxu1 %v101_v14  ;;  %209 = vmatpush.msra.mxu0 %v84_v16  ;;  %v98_v26 = vld [vmem:[%s3998_s26 + $0xc8] sm:$0xff]  ;;  %v113_v29 = vld [vmem:[%s3998_s26 + $0x140] sm:$0xff]  ;;  %v80_v32 = vld [vmem:[%s3998_s26 + $0x38] sm:$0xff] }
  0x13   :  { %277 = vmatpush.msra.mxu3 %v133_v15  ;;  %255 = vmatpush.msra.mxu2 %v116_v17  ;;  %v130_v27 = vld [vmem:[%s3998_s26 + $0x1c8] sm:$0xff]  ;;  %v97_v30 = vld [vmem:[%s3998_s26 + $0xc0] sm:$0xff]  ;;  %v112_v33 = vld [vmem:[%s3998_s26 + $0x138] sm:$0xff] }
  0x14   :  { %232 = vmatpush.msra.mxu1 %v100_v18  ;;  %210 = vmatpush.msra.mxu0 %v83_v20  ;;  %v129_v31 = vld [vmem:[%s3998_s26 + $0x1c0] sm:$0xff]  ;;  %v96_v34 = vld [vmem:[%s3998_s26 + $0xb8] sm:$0xff]  ;;  %v79_v36 = vld [vmem:[%s3998_s26 + $0x30] sm:$0xff] }
  0x15   :  { %278 = vmatpush.msra.mxu3 %v132_v19  ;;  %256 = vmatpush.msra.mxu2 %v115_v21  ;;  %v128_v35 = vld [vmem:[%s3998_s26 + $0x1b8] sm:$0xff]  ;;  %v111_v37 = vld [vmem:[%s3998_s26 + $0x130] sm:$0xff]  ;;  %v78_v40 = vld [vmem:[%s3998_s26 + $0x28] sm:$0xff] }
  0x16   :  { %233 = vmatpush.msra.mxu1 %v99_v22  ;;  %211 = vmatpush.msra.mxu0 %v82_v24  ;;  %v95_v38 = vld [vmem:[%s3998_s26 + $0xb0] sm:$0xff]  ;;  %v110_v41 = vld [vmem:[%s3998_s26 + $0x128] sm:$0xff]  ;;  %v77_v44 = vld [vmem:[%s3998_s26 + $0x20] sm:$0xff] }
  0x17   :  { %279 = vmatpush.msra.mxu3 %v131_v23  ;;  %257 = vmatpush.msra.mxu2 %v114_v25  ;;  %v127_v39 = vld [vmem:[%s3998_s26 + $0x1b0] sm:$0xff]  ;;  %v94_v42 = vld [vmem:[%s3998_s26 + $0xa8] sm:$0xff]  ;;  %v109_v45 = vld [vmem:[%s3998_s26 + $0x120] sm:$0xff] }
  0x18   :  { %234 = vmatpush.msra.mxu1 %v98_v26  ;;  %212 = vmatpush.msra.mxu0 %v81_v28  ;;  %v126_v43 = vld [vmem:[%s3998_s26 + $0x1a8] sm:$0xff]  ;;  %v93_v46 = vld [vmem:[%s3998_s26 + $0xa0] sm:$0xff]  ;;  %v76_v48 = vld [vmem:[%s3998_s26 + $0x18] sm:$0xff] }
  0x19   :  { %280 = vmatpush.msra.mxu3 %v130_v27  ;;  %258 = vmatpush.msra.mxu2 %v113_v29  ;;  %v125_v47 = vld [vmem:[%s3998_s26 + $0x1a0] sm:$0xff]  ;;  %v108_v49 = vld [vmem:[%s3998_s26 + $0x118] sm:$0xff]  ;;  %v75_v52 = vld [vmem:[%s3998_s26 + $0x10] sm:$0xff] }
  0x1a   :  { %235 = vmatpush.msra.mxu1 %v97_v30  ;;  %213 = vmatpush.msra.mxu0 %v80_v32  ;;  %v92_v50 = vld [vmem:[%s3998_s26 + $0x98] sm:$0xff]  ;;  %v107_v53 = vld [vmem:[%s3998_s26 + $0x110] sm:$0xff]  ;;  %v74_v56 = vld [vmem:[%s3998_s26 + $0x8] sm:$0xff] }
  0x1b   :  { %281 = vmatpush.msra.mxu3 %v129_v31  ;;  %259 = vmatpush.msra.mxu2 %v112_v33  ;;  %v124_v51 = vld [vmem:[%s3998_s26 + $0x198] sm:$0xff]  ;;  %v91_v54 = vld [vmem:[%s3998_s26 + $0x90] sm:$0xff]  ;;  %v106_v57 = vld [vmem:[%s3998_s26 + $0x108] sm:$0xff] }
  0x1c   :  { %236 = vmatpush.msra.mxu1 %v96_v34  ;;  %214 = vmatpush.msra.mxu0 %v79_v36  ;;  %v123_v55 = vld [vmem:[%s3998_s26 + $0x190] sm:$0xff]  ;;  %v90_v58 = vld [vmem:[%s3998_s26 + $0x88] sm:$0xff]  ;;  %v73_v60 = vld [vmem:[%s3998_s26] sm:$0xff] }
  0x1d   :  { %282 = vmatpush.msra.mxu3 %v128_v35  ;;  %260 = vmatpush.msra.mxu2 %v111_v37  ;;  %v122_v59 = vld [vmem:[%s3998_s26 + $0x188] sm:$0xff]  ;;  %v105_v61 = vld [vmem:[%s3998_s26 + $0x100] sm:$0xff]  ;;  %v152_v62 = vld [vmem:[%s3998_s26 + $0x278] sm:$0xff] }
  0x1e   :  { %237 = vmatpush.msra.mxu1 %v95_v38  ;;  %215 = vmatpush.msra.mxu0 %v78_v40  ;;  %v184_v63 = vld [vmem:[%s3998_s26 + $0x378] sm:$0xff]  ;;  %v89_v0 = vld [vmem:[%s3998_s26 + $0x80] sm:$0xff]  ;;  %v151_v2 = vld [vmem:[%s3998_s26 + $0x270] sm:$0xff] }
  0x1f   :  { %283 = vmatpush.msra.mxu3 %v127_v39  ;;  %261 = vmatpush.msra.mxu2 %v110_v41  ;;  %v121_v1 = vld [vmem:[%s3998_s26 + $0x180] sm:$0xff]  ;;  %v168_v3 = vld [vmem:[%s3998_s26 + $0x2f8] sm:$0xff]  ;;  %v183_v4 = vld [vmem:[%s3998_s26 + $0x370] sm:$0xff] }
  0x20   :  { %238 = vmatpush.msra.mxu1 %v94_v42  ;;  %216 = vmatpush.msra.mxu0 %v77_v44  ;;  %v200_v5 = vld [vmem:[%s3998_s26 + $0x3f8] sm:$0xff]  ;;  %v150_v6 = vld [vmem:[%s3998_s26 + $0x268] sm:$0xff]  ;;  %v167_v7 = vld [vmem:[%s3998_s26 + $0x2f0] sm:$0xff] }
  0x21   :  { %284 = vmatpush.msra.mxu3 %v126_v43  ;;  %262 = vmatpush.msra.mxu2 %v109_v45  ;;  %v182_v8 = vld [vmem:[%s3998_s26 + $0x368] sm:$0xff]  ;;  %v199_v9 = vld [vmem:[%s3998_s26 + $0x3f0] sm:$0xff]  ;;  %v149_v10 = vld [vmem:[%s3998_s26 + $0x260] sm:$0xff] }
  0x22   :  { %239 = vmatpush.msra.mxu1 %v93_v46  ;;  %217 = vmatpush.msra.mxu0 %v76_v48  ;;  %v166_v11 = vld [vmem:[%s3998_s26 + $0x2e8] sm:$0xff]  ;;  %v181_v12 = vld [vmem:[%s3998_s26 + $0x360] sm:$0xff]  ;;  %v148_v14 = vld [vmem:[%s3998_s26 + $0x258] sm:$0xff] }
  0x23   :  { %285 = vmatpush.msra.mxu3 %v125_v47  ;;  %263 = vmatpush.msra.mxu2 %v108_v49  ;;  %v198_v13 = vld [vmem:[%s3998_s26 + $0x3e8] sm:$0xff]  ;;  %v165_v15 = vld [vmem:[%s3998_s26 + $0x2e0] sm:$0xff]  ;;  %v180_v16 = vld [vmem:[%s3998_s26 + $0x358] sm:$0xff] }
  0x24   :  { %240 = vmatpush.msra.mxu1 %v92_v50  ;;  %218 = vmatpush.msra.mxu0 %v75_v52  ;;  %v197_v17 = vld [vmem:[%s3998_s26 + $0x3e0] sm:$0xff]  ;;  %v147_v18 = vld [vmem:[%s3998_s26 + $0x250] sm:$0xff]  ;;  %v164_v19 = vld [vmem:[%s3998_s26 + $0x2d8] sm:$0xff] }
  0x25   :  { %286 = vmatpush.msra.mxu3 %v124_v51  ;;  %264 = vmatpush.msra.mxu2 %v107_v53  ;;  %v179_v20 = vld [vmem:[%s3998_s26 + $0x350] sm:$0xff]  ;;  %v196_v21 = vld [vmem:[%s3998_s26 + $0x3d8] sm:$0xff]  ;;  %v146_v22 = vld [vmem:[%s3998_s26 + $0x248] sm:$0xff] }
  0x26   :  { %241 = vmatpush.msra.mxu1 %v91_v54  ;;  %219 = vmatpush.msra.mxu0 %v74_v56  ;;  %v163_v23 = vld [vmem:[%s3998_s26 + $0x2d0] sm:$0xff]  ;;  %v178_v24 = vld [vmem:[%s3998_s26 + $0x348] sm:$0xff]  ;;  %v145_v26 = vld [vmem:[%s3998_s26 + $0x240] sm:$0xff] }
  0x27   :  { %287 = vmatpush.msra.mxu3 %v123_v55  ;;  %265 = vmatpush.msra.mxu2 %v106_v57  ;;  %v195_v25 = vld [vmem:[%s3998_s26 + $0x3d0] sm:$0xff]  ;;  %v162_v27 = vld [vmem:[%s3998_s26 + $0x2c8] sm:$0xff]  ;;  %v177_v28 = vld [vmem:[%s3998_s26 + $0x340] sm:$0xff] }
  0x28   :  { %242 = vmatpush.msra.mxu1 %v90_v58  ;;  %220 = vmatpush.msra.mxu0 %v73_v60  ;;  %v194_v29 = vld [vmem:[%s3998_s26 + $0x3c8] sm:$0xff]  ;;  %v57_v30 = vld [vmem:[%s3999_s19] sm:$0xff]  ;;  %v59_v31 = vld [vmem:[%s3999_s19 + $0x10] sm:$0xff] }
  0x29   :  { %288 = vmatpush.msra.mxu3 %v122_v59  ;;  %266 = vmatpush.msra.mxu2 %v105_v61  ;;  %v144_v32 = vld [vmem:[%s3998_s26 + $0x238] sm:$0xff]  ;;  %v161_v33 = vld [vmem:[%s3998_s26 + $0x2c0] sm:$0xff]  ;;  %v58_v36 = vld [vmem:[%s3999_s19 + $0x8] sm:$0xff] }
  0x2a   :  { %297 = vmatpush.msrb.mxu0 %v152_v62  ;;  %243 = vmatpush.msra.mxu1 %v89_v0  ;;  %v176_v34 = vld [vmem:[%s3998_s26 + $0x338] sm:$0xff]  ;;  %v193_v35 = vld [vmem:[%s3998_s26 + $0x3c0] sm:$0xff]  ;;  %v143_v38 = vld [vmem:[%s3998_s26 + $0x230] sm:$0xff] }
  0x2b   :  { %343 = vmatpush.msrb.mxu2 %v184_v63  ;;  %289 = vmatpush.msra.mxu3 %v121_v1  ;;  %v60_v37 = vld [vmem:[%s3999_s19 + $0x18] sm:$0xff]  ;;  %v175_v40 = vld [vmem:[%s3998_s26 + $0x330] sm:$0xff] }
  0x2c   :  { %298 = vmatpush.msrb.mxu0 %v151_v2  ;;  %320 = vmatpush.msrb.mxu1 %v168_v3  ;;  %v160_v39 = vld [vmem:[%s3998_s26 + $0x2b8] sm:$0xff] }
  0x2d   :  { %344 = vmatpush.msrb.mxu2 %v183_v4  ;;  %366 = vmatpush.msrb.mxu3 %v200_v5  ;;  %v192_v41 = vld [vmem:[%s3998_s26 + $0x3b8] sm:$0xff] }
  0x2e   :  { %299 = vmatpush.msrb.mxu0 %v150_v6  ;;  %321 = vmatpush.msrb.mxu1 %v167_v7 }
  0x2f   :  { %345 = vmatpush.msrb.mxu2 %v182_v8  ;;  %367 = vmatpush.msrb.mxu3 %v199_v9 }
  0x30   :  { %300 = vmatpush.msrb.mxu0 %v149_v10  ;;  %322 = vmatpush.msrb.mxu1 %v166_v11 }
  0x31   :  { %346 = vmatpush.msrb.mxu2 %v181_v12  ;;  %368 = vmatpush.msrb.mxu3 %v198_v13 }
  0x32   :  { %301 = vmatpush.msrb.mxu0 %v148_v14  ;;  %323 = vmatpush.msrb.mxu1 %v165_v15 }
  0x33   :  { %347 = vmatpush.msrb.mxu2 %v180_v16  ;;  %369 = vmatpush.msrb.mxu3 %v197_v17 }
  0x34   :  { %302 = vmatpush.msrb.mxu0 %v147_v18  ;;  %324 = vmatpush.msrb.mxu1 %v164_v19 }
  0x35   :  { %348 = vmatpush.msrb.mxu2 %v179_v20  ;;  %370 = vmatpush.msrb.mxu3 %v196_v21 }
  0x36   :  { %303 = vmatpush.msrb.mxu0 %v146_v22  ;;  %325 = vmatpush.msrb.mxu1 %v163_v23 }
  0x37   :  { %349 = vmatpush.msrb.mxu2 %v178_v24  ;;  %371 = vmatpush.msrb.mxu3 %v195_v25 }
  0x38   :  { %304 = vmatpush.msrb.mxu0 %v145_v26  ;;  %326 = vmatpush.msrb.mxu1 %v162_v27 }
  0x39   :  { %350 = vmatpush.msrb.mxu2 %v177_v28  ;;  %372 = vmatpush.msrb.mxu3 %v194_v29 }
  0x3a   :  { %221 = vmatmul.f32.vlgmr.msra.gmra.mxu0 %v57_v30  ;;  %267 = vmatmul.f32.vlgmr.msra.gmra.mxu2 %v59_v31 }
  0x3b   :  { %305 = vmatpush.msrb.mxu0 %v144_v32  ;;  %327 = vmatpush.msrb.mxu1 %v161_v33 }
  0x3c   :  { %351 = vmatpush.msrb.mxu2 %v176_v34  ;;  %373 = vmatpush.msrb.mxu3 %v193_v35 }
  0x3d   :  { %22 = vsyncpa [#allocation11], 0  ;;  %244 = vmatmul.f32.vlgmr.msra.gmra.mxu1 %v58_v36  ;;  %290 = vmatmul.f32.vlgmr.msra.gmra.mxu3 %v60_v37  ;;  %v142_v42 = vld [vmem:[%s3998_s26 + $0x228] sm:$0xff]  ;;  %v159_v43 = vld [vmem:[%s3998_s26 + $0x2b0] sm:$0xff]  ;;  %vm444_vm0 = vcmask 261120  }
  0x3e   :  { %306 = vmatpush.msrb.mxu0 %v143_v38  ;;  %328 = vmatpush.msrb.mxu1 %v160_v39  ;;  %v174_v44 = vld [vmem:[%s3998_s26 + $0x328] sm:$0xff]  ;;  %v191_v45 = vld [vmem:[%s3998_s26 + $0x3b0] sm:$0xff]  ;;  %v141_v46 = vld [vmem:[%s3998_s26 + $0x220] sm:$0xff] }
  0x3f   :  { %352 = vmatpush.msrb.mxu2 %v175_v40  ;;  %374 = vmatpush.msrb.mxu3 %v192_v41  ;;  %v158_v47 = vld [vmem:[%s3998_s26 + $0x2a8] sm:$0xff]  ;;  %v173_v48 = vld [vmem:[%s3998_s26 + $0x320] sm:$0xff]  ;;  %v67_v51 = vld [vmem:[%s3999_s19 + $0x50] sm:$0xff] }
  0x40   :  { %307 = vmatpush.msrb.mxu0 %v142_v42  ;;  %329 = vmatpush.msrb.mxu1 %v159_v43  ;;  %v190_v49 = vld [vmem:[%s3998_s26 + $0x3a8] sm:$0xff]  ;;  %v65_v50 = vld [vmem:[%s3999_s19 + $0x40] sm:$0xff]  ;;  %v140_v52 = vld [vmem:[%s3998_s26 + $0x218] sm:$0xff] }
  0x41   :  { %353 = vmatpush.msrb.mxu2 %v174_v44  ;;  %375 = vmatpush.msrb.mxu3 %v191_v45  ;;  %v157_v53 = vld [vmem:[%s3998_s26 + $0x2a0] sm:$0xff]  ;;  %v172_v54 = vld [vmem:[%s3998_s26 + $0x318] sm:$0xff]  ;;  %v66_v56 = vld [vmem:[%s3999_s19 + $0x48] sm:$0xff] }
  0x42   :  { %308 = vmatpush.msrb.mxu0 %v141_v46  ;;  %330 = vmatpush.msrb.mxu1 %v158_v47  ;;  %v189_v55 = vld [vmem:[%s3998_s26 + $0x3a0] sm:$0xff]  ;;  %v68_v57 = vld [vmem:[%s3999_s19 + $0x58] sm:$0xff]  ;;  %v139_v58 = vld [vmem:[%s3998_s26 + $0x210] sm:$0xff] }
  0x43   :  { %354 = vmatpush.msrb.mxu2 %v173_v48  ;;  %376 = vmatpush.msrb.mxu3 %v190_v49  ;;  %v156_v59 = vld [vmem:[%s3998_s26 + $0x298] sm:$0xff]  ;;  %v171_v60 = vld [vmem:[%s3998_s26 + $0x310] sm:$0xff]  ;;  %v138_v62 = vld [vmem:[%s3998_s26 + $0x208] sm:$0xff] }
  0x44   :  { %224 = vmatmul.f32.gmra.mxu0 %v65_v50  ;;  %270 = vmatmul.f32.gmra.mxu2 %v67_v51  ;;  %v188_v61 = vld [vmem:[%s3998_s26 + $0x398] sm:$0xff]  ;;  %v155_v63 = vld [vmem:[%s3998_s26 + $0x290] sm:$0xff]  ;;  %v170_v0 = vld [vmem:[%s3998_s26 + $0x308] sm:$0xff] }
  0x45   :  { %309 = vmatpush.msrb.mxu0 %v140_v52  ;;  %331 = vmatpush.msrb.mxu1 %v157_v53  ;;  %v187_v1 = vld [vmem:[%s3998_s26 + $0x390] sm:$0xff]  ;;  %v137_v2 = vld [vmem:[%s3998_s26 + $0x200] sm:$0xff]  ;;  %v154_v3 = vld [vmem:[%s3998_s26 + $0x288] sm:$0xff] }
  0x46   :  { %355 = vmatpush.msrb.mxu2 %v172_v54  ;;  %377 = vmatpush.msrb.mxu3 %v189_v55  ;;  %v169_v4 = vld [vmem:[%s3998_s26 + $0x300] sm:$0xff]  ;;  %v186_v5 = vld [vmem:[%s3998_s26 + $0x388] sm:$0xff]  ;;  %v63_v7 = vld [vmem:[%s3999_s19 + $0x30] sm:$0xff] }
  0x47   :  { %247 = vmatmul.f32.gmra.mxu1 %v66_v56  ;;  %293 = vmatmul.f32.gmra.mxu3 %v68_v57  ;;  %v61_v6 = vld [vmem:[%s3999_s19 + $0x20] sm:$0xff]  ;;  %v62_v10 = vld [vmem:[%s3999_s19 + $0x28] sm:$0xff]  ;;  %v64_v11 = vld [vmem:[%s3999_s19 + $0x38] sm:$0xff] }
  0x48   :  { %310 = vmatpush.msrb.mxu0 %v139_v58  ;;  %332 = vmatpush.msrb.mxu1 %v156_v59  ;;  %v153_v8 = vld [vmem:[%s3998_s26 + $0x280] sm:$0xff]  ;;  %v406_v12 = vld [vmem:[%s3979_s3 + $0x78] sm:$0xff]  ;;  %v71_v14 = vld [vmem:[%s3999_s19 + $0x70] sm:$0xff] }
  0x49   :  { %356 = vmatpush.msrb.mxu2 %v171_v60  ;;  %378 = vmatpush.msrb.mxu3 %v188_v61  ;;  %v185_v9 = vld [vmem:[%s3998_s26 + $0x380] sm:$0xff]  ;;  %v70_v15 = vld [vmem:[%s3999_s19 + $0x68] sm:$0xff]  ;;  %v72_v16 = vld [vmem:[%s3999_s19 + $0x78] sm:$0xff] }
  0x4a   :  { %311 = vmatpush.msrb.mxu0 %v138_v62  ;;  %333 = vmatpush.msrb.mxu1 %v155_v63  ;;  %v69_v13 = vld [vmem:[%s3999_s19 + $0x60] sm:$0xff]  ;;  %v405_v17 = vld [vmem:[%s3979_s3 + $0x70] sm:$0xff]  ;;  %v404_v18 = vld [vmem:[%s3979_s3 + $0x68] sm:$0xff]  ;;  %s2738_s19 = smov 32  }
  0x4b   :  { %357 = vmatpush.msrb.mxu2 %v170_v0  ;;  %379 = vmatpush.msrb.mxu3 %v187_v1  ;;  %v403_v19 = vld [vmem:[%s3979_s3 + $0x60] sm:$0xff]  ;;  %v402_v20 = vld [vmem:[%s3979_s3 + $0x58] sm:$0xff]  ;;  %v401_v21 = vld [vmem:[%s3979_s3 + $0x50] sm:$0xff] }
  0x4c   :  { %312 = vmatpush.msrb.mxu0 %v137_v2  ;;  %334 = vmatpush.msrb.mxu1 %v154_v3  ;;  %v400_v22 = vld [vmem:[%s3979_s3 + $0x48] sm:$0xff]  ;;  %v399_v23 = vld [vmem:[%s3979_s3 + $0x40] sm:$0xff]  ;;  %v398_v24 = vld [vmem:[%s3979_s3 + $0x38] sm:$0xff] }
  0x4d   :  { %358 = vmatpush.msrb.mxu2 %v169_v4  ;;  %380 = vmatpush.msrb.mxu3 %v186_v5  ;;  %v397_v25 = vld [vmem:[%s3979_s3 + $0x30] sm:$0xff]  ;;  %v396_v26 = vld [vmem:[%s3979_s3 + $0x28] sm:$0xff]  ;;  %v395_v27 = vld [vmem:[%s3979_s3 + $0x20] sm:$0xff] }
  0x4e   :  { %313 = vmatmul.f32.vlgmr.msrb.gmra.mxu0 %v61_v6  ;;  %359 = vmatmul.f32.vlgmr.msrb.gmra.mxu2 %v63_v7  ;;  %v394_v28 = vld [vmem:[%s3979_s3 + $0x18] sm:$0xff]  ;;  %v393_v29 = vld [vmem:[%s3979_s3 + $0x10] sm:$0xff]  ;;  %v392_v30 = vld [vmem:[%s3979_s3 + $0x8] sm:$0xff] }
  0x4f   :  { %335 = vmatpush.msrb.mxu1 %v153_v8  ;;  %381 = vmatpush.msrb.mxu3 %v185_v9  ;;  %v391_v31 = vld [vmem:[%s3979_s3] sm:$0xff]  ;;  %v439_v38 = vld [vmem:[%s3981_s5 + $0x18] sm:$0xff]  ;;  %v438_v39 = vld [vmem:[%s3981_s5 + $0x10] sm:$0xff]  ;;  %s2741_s3 = smov 8  }
  0x50   :  { %336 = vmatmul.f32.vlgmr.msrb.gmra.mxu1 %v62_v10  ;;  %382 = vmatmul.f32.vlgmr.msrb.gmra.mxu3 %v64_v11  ;;  %v2601_v33 = vld [vmem:[%s3978_s2] ss:$0 sm:$0xff]  ;;  %v437_v42 = vld [vmem:[%s3981_s5 + $0x8] sm:$0xff]  ;;  %v481_v7 = vld [vmem:[%s3983_s7 + $0x38] sm:$0xff] }
  0x51   :  { %411 = vmatpush.msra.mxu0 %v406_v12  ;;  %463 = vmatpush.msra.mxu1 %v439_v38  ;;  %v436_v6 = vld [vmem:[%s3981_s5] sm:$0xff]  ;;  %v479_v8 = vld [vmem:[%s3983_s7 + $0x28] sm:$0xff]  ;;  %v480_v9 = vld [vmem:[%s3983_s7 + $0x30] sm:$0xff] }
  0x52   :  { %529 = vmatpush.msra.mxu3 %v481_v7  ;;  %506 = vmatpush.msra.mxu2 %v480_v9  ;;  %v478_v10 = vld [vmem:[%s3983_s7 + $0x20] sm:$0xff]  ;;  %v477_v11 = vld [vmem:[%s3983_s7 + $0x18] sm:$0xff]  ;;  %v475_v12 = vld [vmem:[%s3983_s7 + $0x8] sm:$0xff]  ;;  %v2736_v9 = vmov 1.0  }
  0x53   :  { %412 = vmatpush.msra.mxu0 %v405_v17  ;;  %464 = vmatpush.msra.mxu1 %v438_v39 }
  0x54   :  { %530 = vmatpush.msra.mxu3 %v479_v8  ;;  %507 = vmatpush.msra.mxu2 %v478_v10 }
  0x55   :  { %413 = vmatpush.msra.mxu0 %v404_v18  ;;  %465 = vmatpush.msra.mxu1 %v437_v42  ;;  %v482_v42 = vld [vmem:[%s3984_s8] sm:$0x3]  ;;  %s2737_s8 = smov 64  }
  0x56   :  { %316 = vmatmul.f32.gmra.mxu0 %v69_v13  ;;  %362 = vmatmul.f32.gmra.mxu2 %v71_v14  ;;  %v2602_v13 = vld [vmem:[%s3980_s4] ss:$0 sm:$0xff] }
  0x57   :  { %414 = vmatpush.msra.mxu0 %v403_v19  ;;  %466 = vmatpush.msra.mxu1 %v436_v6 }
  0x58   :  { %339 = vmatmul.f32.gmra.mxu1 %v70_v15  ;;  %385 = vmatmul.f32.gmra.mxu3 %v72_v16 }
  0x59   :  { %415 = vmatpush.msra.mxu0 %v402_v20  ;;  %531 = vmatpush.msra.mxu3 %v477_v11  ;;  %v476_v20 = vld [vmem:[%s3983_s7 + $0x10] sm:$0xff] }
  0x5a   :  { %508 = vmatpush.msra.mxu2 %v476_v20 }
  0x5b   :  { %416 = vmatpush.msra.mxu0 %v401_v21  ;;  %532 = vmatpush.msra.mxu3 %v475_v12  ;;  %v474_v21 = vld [vmem:[%s3983_s7] sm:$0xff] }
  0x5c   :  { %509 = vmatpush.msra.mxu2 %v474_v21 }
  0x5d   :  { %417 = vmatpush.msra.mxu0 %v400_v22  ;;  %v3359_v22 = vld [vmem:[%s3985_s9 + $0x18] sm:$0xff] }
  0x5e   :  { %645 = vmatpush.msrb.mxu2 %v3359_v22 }
  0x5f   :  { %418 = vmatpush.msra.mxu0 %v399_v23  ;;  %v3364_v23 = vld [vmem:[%s3985_s9 + $0x10] sm:$0xff] }
  0x60   :  { %646 = vmatpush.msrb.mxu2 %v3364_v23 }
  0x61   :  { %419 = vmatpush.msra.mxu0 %v398_v24  ;;  %v3369_v24 = vld [vmem:[%s3986_s10 + $0x18] sm:$0xff] }
  0x62   :  { %622 = vmatpush.msrb.mxu1 %v3369_v24  ;;  %719 = vmatpush.msrb.mxu3 %v3369_v24 }
  0x63   :  { %420 = vmatpush.msra.mxu0 %v397_v25  ;;  %v3376_v25 = vld [vmem:[%s3986_s10 + $0x10] sm:$0xff] }
  0x64   :  { %623 = vmatpush.msrb.mxu1 %v3376_v25  ;;  %720 = vmatpush.msrb.mxu3 %v3376_v25 }
  0x65   :  { %421 = vmatpush.msra.mxu0 %v396_v26  ;;  %v3381_v26 = vld [vmem:[%s3985_s9 + $0x8] sm:$0xff] }
  0x66   :  { %647 = vmatpush.msrb.mxu2 %v3381_v26 }
  0x67   :  { %422 = vmatpush.msra.mxu0 %v395_v27  ;;  %v3386_v27 = vld [vmem:[%s3986_s10 + $0x8] sm:$0xff] }
  0x68   :  { %624 = vmatpush.msrb.mxu1 %v3386_v27  ;;  %721 = vmatpush.msrb.mxu3 %v3386_v27 }
  0x69   :  { %423 = vmatpush.msra.mxu0 %v394_v28  ;;  %v591_v28 = vlaneseq }
  0x6b   :  { %424 = vmatpush.msra.mxu0 %v393_v29  ;;  %v3395_v29 = vld [vmem:[%s3985_s9] sm:$0xff] }
  0x6c   :  { %648 = vmatpush.msrb.mxu2 %v3395_v29 }
  0x6d   :  { %425 = vmatpush.msra.mxu0 %v392_v30  ;;  %v592_v30 = vshrl.u32 %v591_v28, 7 }
  0x6f   :  { %426 = vmatpush.msra.mxu0 %v391_v31  ;;  %v3408_v31 = vld [vmem:[%s3986_s10] sm:$0xff]  ;;  %vm596_vm1 = vcmp.ge.s32.totalorder %v592_v30, 2  ;;  %vm593_vm2 = vcmp.lt.s32.totalorder %v592_v30, 2  ;;  %s2504_s10 = sshll.u32 %s3993_s17, 4  ;;  %s2505_s10 = int_to_ptr.hbm [resolvable:$true] %s2504_s10 }
  0x70   :  { %625 = vmatpush.msrb.mxu1 %v3408_v31  ;;  %722 = vmatpush.msrb.mxu3 %v3408_v31 }
  0x71   :  { %1313 = vmatpush.msrb.mxu0 %v3369_v24 }
  0x73   :  { %1314 = vmatpush.msrb.mxu0 %v3376_v25 }
  0x75   :  { %1315 = vmatpush.msrb.mxu0 %v3386_v27 }
  0x77   :  { %1316 = vmatpush.msrb.mxu0 %v3408_v31 }
  0xb7   :  { %v222_v32 = vpop.f32.mrf.mxu0 }
  0xb8   :  { %v223_v36 = vadd.f32 %v2601_v33, %v222_v32  ;;  %v2735_v32 = vmov 0.0  }
  0xba   :  { %v245_v34 = vpop.f32.mrf.mxu1 }
  0xbb   :  { %v246_v41 = vadd.f32 %v245_v34, %v223_v36 }
  0xbd   :  { %v268_v35 = vpop.f32.mrf.mxu2 }
  0xbe   :  { %v269_v44 = vadd.f32 %v268_v35, %v246_v41  ;;  %v2603_v35 = vld [vmem:[%s3982_s6] ss:$0 sm:$0xff]  ;;  %s2740_s6 = smov 128  }
  0xc0   :  { %v291_v37 = vpop.f32.mrf.mxu3 }
  0xc1   :  { %v225_v40 = vpop.f32.mrf.mxu0  ;;  %v292_v47 = vadd.f32 %v291_v37, %v269_v44  ;;  %v485_v44 = vperm.slane %v482_v42, 1 }
  0xc2   :  { %v226_v45 = vadd.f32 %v2601_v33, %v225_v40  ;;  %v3411_v33 = vsel %vm596_vm1, 1.0, %v2735_v32  ;;  %v3443_v40 = vsel %vm593_vm2, 1.0, %v2735_v32 }
  0xc3   :  { %v3415_v34 = vmul.f32 0.0, %v3411_v33  ;;  %v3446_v41 = vmul.f32 0.0, %v3443_v40 }
  0xc4   :  { %v248_v43 = vpop.f32.mrf.mxu1 }
  0xc5   :  { %v249_v48 = vadd.f32 %v248_v43, %v226_v45  ;;  %v484_v43 = vperm.slane %v482_v42, 0 }
  0xc7   :  { %v271_v46 = vpop.f32.mrf.mxu2 }
  0xc8   :  { %v272_v53 = vadd.f32 %v271_v46, %v249_v48 }
  0xca   :  { %v294_v49 = vpop.f32.mrf.mxu3 }
  0xcb   :  { %v314_v50 = vpop.f32.mrf.mxu0  ;;  %v295_v56 = vadd.f32 %v294_v49, %v272_v53 }
  0xcc   :  { %v315_v51 = vadd.f32 %v314_v50, %v292_v47 }
  0xcd   :  { %v337_v52 = vpop.f32.mrf.mxu1 }
  0xce   :  { %v338_v54 = vadd.f32 %v337_v52, %v315_v51 }
  0xd1   :  { %v360_v55 = vpop.f32.mrf.mxu2 }
  0xd2   :  { %v361_v57 = vadd.f32 %v360_v55, %v338_v54 }
  0xd3   :  { %v317_v58 = vpop.f32.mrf.mxu0  ;;  %v383_v59 = vpop.f32.mrf.mxu3 }
  0xd4   :  { %v318_v60 = vadd.f32 %v317_v58, %v295_v56  ;;  %v384_v61 = vadd.f32 %v383_v59, %v361_v57 }
  0xd5   :  { %v340_v62 = vpop.f32.mrf.mxu1 }
  0xd6   :  { %v389_v63 = vmax.f32 %v384_v61, 0.0  ;;  %v341_v0 = vadd.f32 %v340_v62, %v318_v60 }
  0xd8   :  { %427 = vmatmul.f32.vlgmr.msra.gmra.mxu0 %v389_v63 }
  0xd9   :  { %v363_v1 = vpop.f32.mrf.mxu2 }
  0xda   :  { %v364_v2 = vadd.f32 %v363_v1, %v341_v0 }
  0xdb   :  { %v386_v3 = vpop.f32.mrf.mxu3 }
  0xdc   :  { %v387_v4 = vadd.f32 %v386_v3, %v364_v2  ;;  %v3458_v2 = vand.u32 127, %v591_v28 }
  0xde   :  { %v390_v5 = vmax.f32 %v387_v4, 0.0  ;;  %vm601_vm3 = vcmp.ge.s32.totalorder %v3458_v2, 64  ;;  %vm602_vm4 = vcmp.lt.s32.totalorder %v3458_v2, 96 }
  0xdf   :  { %vm603_vm5 = vmand %vm601_vm3, %vm602_vm4 }
  0xe0   :  { %430 = vmatmul.f32.gmra.mxu0 %v390_v5  ;;  %v3462_v10 = vsel %vm603_vm5, 2.0, %v2736_v9 }
 0x155   :  { %v428_v14 = vpop.f32.mrf.mxu0 }
 0x156   :  { %v429_v15 = vadd.f32 %v2602_v13, %v428_v14 }
 0x158   :  { %v434_v16 = vmax.f32 %v429_v15, 0.0 }
 0x15a   :  { %2516 = vmatmul.msk.f32.vlgmr.msra.gmra.mxu1 %vm444_vm0, %v434_v16 }
 0x15b   :  { %744 = vmatpush.msra.mxu1 %v3359_v22 }
 0x15d   :  { %v431_v17 = vpop.f32.mrf.mxu0  ;;  %745 = vmatpush.msra.mxu1 %v3364_v23 }
 0x15e   :  { %v432_v18 = vadd.f32 %v2602_v13, %v431_v17 }
 0x15f   :  { %746 = vmatpush.msra.mxu1 %v3381_v26 }
 0x160   :  { %v435_v19 = vmax.f32 %v432_v18, 0.0 }
 0x161   :  { %747 = vmatpush.msra.mxu1 %v3395_v29 }
 0x162   :  { %2517 = vmatmul.msk.f32.gmra.mxu1 %vm444_vm0, %v435_v19 }
 0x16a   :  { %2524 = vmatmul.msk.f32.vlgmr.msrb.gmra.mxu1 %vm444_vm0, %v3415_v34 }
 0x16b   :  { %917 = vmatpush.msrb.mxu1 %v3369_v24 }
 0x16d   :  { %918 = vmatpush.msrb.mxu1 %v3376_v25 }
 0x16f   :  { %919 = vmatpush.msrb.mxu1 %v3386_v27 }
 0x171   :  { %920 = vmatpush.msrb.mxu1 %v3408_v31 }
 0x1d7   :  { %v468_v36 = vpop.f32.mrf.mxu1 }
 0x1d8   :  { %v469_v37 = vadd.f32 %v2603_v35, %v468_v36 }
 0x1da   :  { %2518 = vmatmul.msk.f32.vlgmr.msra.gmra.mxu2 %vm444_vm0, %v469_v37  ;;  %2520 = vmatmul.msk.f32.vlgmr.msra.gmra.mxu3 %vm444_vm0, %v469_v37 }
 0x1db   :  { %818 = vmatpush.msra.mxu2 %v3369_v24  ;;  %843 = vmatpush.msra.mxu3 %v3359_v22 }
 0x1dd   :  { %819 = vmatpush.msra.mxu2 %v3376_v25  ;;  %844 = vmatpush.msra.mxu3 %v3364_v23 }
 0x1df   :  { %v471_v38 = vpop.f32.mrf.mxu1  ;;  %820 = vmatpush.msra.mxu2 %v3386_v27  ;;  %845 = vmatpush.msra.mxu3 %v3381_v26 }
 0x1e0   :  { %v472_v39 = vadd.f32 %v2603_v35, %v471_v38 }
 0x1e1   :  { %821 = vmatpush.msra.mxu2 %v3408_v31  ;;  %846 = vmatpush.msra.mxu3 %v3395_v29 }
 0x1e2   :  { %2519 = vmatmul.msk.f32.gmra.mxu2 %vm444_vm0, %v472_v39  ;;  %2521 = vmatmul.msk.f32.gmra.mxu3 %vm444_vm0, %v472_v39 }
 0x1e7   :  { %v627_v6 = vpop.f32.mrf.mxu1 }
 0x1ea   :  { %2525 = vmatmul.msk.f32.vlgmr.msrb.gmra.mxu2 %vm444_vm0, %v3446_v41 }
 0x1eb   :  { %1016 = vmatpush.msrb.mxu2 %v3369_v24 }
 0x1ed   :  { %1017 = vmatpush.msrb.mxu2 %v3376_v25 }
 0x1ef   :  { %1018 = vmatpush.msrb.mxu2 %v3386_v27 }
 0x1f1   :  { %1019 = vmatpush.msrb.mxu2 %v3408_v31 }
 0x25d   :  { %v511_v45 = vpop.f32.mrf.mxu2  ;;  %v534_v46 = vpop.f32.mrf.mxu3 }
 0x25e   :  { %v512_v47 = vadd.f32 %v511_v45, %v484_v43  ;;  %v535_v48 = vadd.f32 %v534_v46, %v485_v44 }
 0x260   :  { %548 = vst [vmem:[#allocation2 + $0x10] sm:$0xff] %v512_v47 }
 0x261   :  { %549 = vst [vmem:[#allocation2] sm:$0xff] %v535_v48 }
 0x265   :  { %v514_v54 = vpop.f32.mrf.mxu2  ;;  %v537_v56 = vpop.f32.mrf.mxu3 }
 0x266   :  { %v515_v59 = vadd.f32 %v514_v54, %v484_v43  ;;  %v538_v60 = vadd.f32 %v537_v56, %v485_v44 }
 0x267   :  { %v552_v49 = vld [vmem:[#allocation2 + $0x10] sm:$0x3]  ;;  %v556_v50 = vld [vmem:[#allocation2 + $0x10] sm:$0xc]  ;;  %v561_v51 = vld [vmem:[#allocation2 + $0x10] sm:$0x30] }
 0x268   :  { %553 = vst [vmem:[#allocation3] sm:$0x3] %v552_v49  ;;  %v566_v52 = vld [vmem:[#allocation2 + $0x10] sm:$0xc0]  ;;  %v574_v53 = vld [vmem:[#allocation2] sm:$0xc0] }
 0x269   :  { %558 = vst [vmem:[#allocation3 + $0x2] sm:$0xc] %v556_v50  ;;  %v579_v55 = vld [vmem:[#allocation2] sm:$0x30]  ;;  %v584_v57 = vld [vmem:[#allocation2] sm:$0xc] }
 0x26a   :  { %563 = vst [vmem:[#allocation3 + $0x4] sm:$0x30] %v561_v51  ;;  %v589_v58 = vld [vmem:[#allocation2] sm:$0x3] }
 0x26b   :  { %568 = vst [vmem:[#allocation3 + $0x6] sm:$0xc0] %v566_v52 }
 0x26c   :  { %575 = vst [vmem:[#allocation3 + $0xc] sm:$0xc0] %v574_v53 }
 0x26d   :  { %580 = vst [vmem:[#allocation3 + $0x12] sm:$0x30] %v579_v55  ;;  %v650_v7 = vpop.f32.mrf.mxu2 }
 0x26e   :  { %585 = vst [vmem:[#allocation3 + $0x18] sm:$0xc] %v584_v57  ;;  %v651_v8 = vadd.f32 %v650_v7, %v627_v6 }
 0x26f   :  { %590 = vst [vmem:[#allocation3 + $0x1e] sm:$0x3] %v589_v58 }
 0x270   :  { %550 = vst [vmem:[#allocation2 + $0x18] sm:$0xff] %v515_v59 }
 0x271   :  { %551 = vst [vmem:[#allocation2 + $0x8] sm:$0xff] %v538_v60 }
 0x277   :  { %v571_v61 = vld [vmem:[#allocation2 + $0x18] sm:$0x3]  ;;  %v576_v62 = vld [vmem:[#allocation2 + $0x18] sm:$0xc]  ;;  %v581_v63 = vld [vmem:[#allocation2 + $0x18] sm:$0x30] }
 0x278   :  { %573 = vst [vmem:[#allocation3 + $0x10] sm:$0x3] %v571_v61  ;;  %v586_v0 = vld [vmem:[#allocation2 + $0x18] sm:$0xc0]  ;;  %v554_v1 = vld [vmem:[#allocation2 + $0x8] sm:$0xc0] }
 0x279   :  { %578 = vst [vmem:[#allocation3 + $0x12] sm:$0xc] %v576_v62  ;;  %v559_v3 = vld [vmem:[#allocation2 + $0x8] sm:$0x30]  ;;  %v564_v4 = vld [vmem:[#allocation2 + $0x8] sm:$0xc] }
 0x27a   :  { %583 = vst [vmem:[#allocation3 + $0x14] sm:$0x30] %v581_v63  ;;  %v569_v5 = vld [vmem:[#allocation2 + $0x8] sm:$0x3] }
 0x27b   :  { %588 = vst [vmem:[#allocation3 + $0x16] sm:$0xc0] %v586_v0 }
 0x27c   :  { %555 = vst [vmem:[#allocation3 - $0x4] sm:$0xc0] %v554_v1 }
 0x27d   :  { %560 = vst [vmem:[#allocation3 + $0x2] sm:$0x30] %v559_v3 }
 0x27e   :  { %565 = vst [vmem:[#allocation3 + $0x8] sm:$0xc] %v564_v4 }
 0x27f   :  { %570 = vst [vmem:[#allocation3 + $0xe] sm:$0x3] %v569_v5 }
 0x283   :  { %v653_v11 = vld [vmem:[#allocation3] sm:$0xf] }
 0x284   :  { %v654_v12 = vadd.f32 %v653_v11, %v651_v8  ;;  %v752_v56 = vld [vmem:[#allocation3 + $0x4] sm:$0xf] }
 0x286   :  { %v655_v13 = vmul.f32 %v654_v12, %v3462_v10 }
 0x288   :  { %v2526_v14 = vmul.f32 -1.442695, %v655_v13 }
 0x28a   :  { %2605 = vpow2.f32 %v2526_v14 }
 0x290   :  { %v2606_v15 = vpop.eup %2605 }
 0x291   :  { %v659_v16 = vadd.f32 1.0, %v2606_v15 }
 0x293   :  { %2607 = vrcp.f32 %v659_v16  ;;  %v671_v20 = vand.u32 2147483648, %v659_v16  ;;  %v669_v28 = vand.u32 2147483647, %v659_v16  ;;  %vm665_vm7 = vweird.f32 %v659_v16 }
 0x295   :  { %v672_v32 = vor.u32 1.1754944e-38, %v671_v20  ;;  %vm670_vm9 = vcmp.eq.f32.partialorder %v669_v28, 8.507059e+37 }
 0x299   :  { %v2608_v17 = vpop.eup %2607 }
 0x29a   :  { %v661_v18 = vmul.f32 %v2608_v17, %v659_v16  ;;  %vm666_vm6 = vweird.f32 %v2608_v17 }
 0x29b   :  { %vm667_vm8 = vmor %vm665_vm7, %vm666_vm6 }
 0x29c   :  { %v662_v19 = vsub.f32 1.0, %v661_v18 }
 0x29e   :  { %v663_v21 = vmul.f32 %v2608_v17, %v662_v19 }
 0x2a0   :  { %v664_v30 = vadd.f32 %v2608_v17, %v663_v21 }
 0x2a2   :  { %v668_v35 = vsel %vm667_vm8, %v2608_v17, %v664_v30 }
 0x2a3   :  { %v673_v36 = vsel %vm670_vm9, %v672_v32, %v668_v35 }
 0x2a4   :  { %v675_v37 = vmul.f32 2.0, %v673_v36  ;;  %v677_v43 = vmul.f32 0.0, %v673_v36 }
 0x2a6   :  { %v2527_v38 = vadd.f32 -1.0, %v675_v37  ;;  %v851_v37 = vld [vmem:[#allocation3 + $0x8] sm:$0xf] }
 0x2a8   :  { %679 = vrot.lane.b32.xlu0 %v2527_v38, %s2737_s8 }
 0x31a   :  { %v680_v39 = vpop.permute.xlu0 %679 }
 0x31b   :  { %v682_v42 = vmul.f32 %v680_v39, %v673_v36 }
 0x31d   :  { %684 = vrot.lane.b32.xlu0 %v682_v42, %s2738_s19 }
 0x38f   :  { %v685_v44 = vpop.permute.xlu0 %684 }
 0x390   :  { %v687_v45 = vadd.f32 %v685_v44, %v677_v43 }
 0x392   :  { %2609 = vtanh.f32 %v687_v45 }
 0x398   :  { %v2610_v46 = vpop.eup %2609 }
 0x399   :  { %690 = vrot.lane.b32.xlu1 %v2610_v46, %s2737_s8 }
 0x40b   :  { %v691_v47 = vpop.permute.xlu1 %690 }
 0x40c   :  { %v3468_v48 = vmul.f32 %v691_v47, %v673_v36 }
 0x40e   :  { %v701_v49 = vmul.f32 %v3411_v33, %v3468_v48  ;;  %v700_v50 = vmul.f32 %v3443_v40, %v3468_v48 }
 0x410   :  { %703 = vrot.lane.b32.xlu1 %v701_v49, %s2738_s19  ;;  %728 = vrot.lane.b32.xlu2 %v700_v50, %s2738_s19 }
 0x46a   :  { %v729_v51 = vpop.permute.xlu2 %728 }
 0x46b   :  { %2529 = vmatmul.msk.f32.vlgmr.msra.gmra.mxu1 %vm444_vm0, %v729_v51 }
 0x46c   :  { %942 = vmatpush.msra.mxu1 %v3359_v22 }
 0x46e   :  { %943 = vmatpush.msra.mxu1 %v3364_v23 }
 0x470   :  { %944 = vmatpush.msra.mxu1 %v3381_v26 }
 0x472   :  { %945 = vmatpush.msra.mxu1 %v3395_v29 }
 0x482   :  { %v704_v52 = vpop.permute.xlu1 %703 }
 0x483   :  { %2528 = vmatmul.msk.f32.vlgmr.msrb.gmra.mxu3 %vm444_vm0, %v704_v52 }
 0x484   :  { %1041 = vmatpush.msrb.mxu3 %v3359_v22 }
 0x486   :  { %1042 = vmatpush.msrb.mxu3 %v3364_v23 }
 0x488   :  { %1043 = vmatpush.msrb.mxu3 %v3381_v26 }
 0x48a   :  { %1044 = vmatpush.msrb.mxu3 %v3395_v29 }
 0x4e8   :  { %v749_v53 = vpop.f32.mrf.mxu1 }
 0x506   :  { %v724_v54 = vpop.f32.mrf.mxu3 }
 0x507   :  { %v750_v55 = vadd.f32 %v749_v53, %v724_v54 }
 0x509   :  { %v753_v57 = vadd.f32 %v752_v56, %v750_v55 }
 0x50b   :  { %v754_v58 = vmul.f32 %v753_v57, %v3462_v10 }
 0x50d   :  { %v2530_v59 = vmul.f32 -1.442695, %v754_v58 }
 0x50f   :  { %2611 = vpow2.f32 %v2530_v59 }
 0x515   :  { %v2612_v60 = vpop.eup %2611 }
 0x516   :  { %v758_v61 = vadd.f32 1.0, %v2612_v60 }
 0x518   :  { %2613 = vrcp.f32 %v758_v61  ;;  %v770_v1 = vand.u32 2147483648, %v758_v61  ;;  %v768_v4 = vand.u32 2147483647, %v758_v61  ;;  %vm764_vm11 = vweird.f32 %v758_v61 }
 0x51a   :  { %v771_v6 = vor.u32 1.1754944e-38, %v770_v1  ;;  %vm769_vm13 = vcmp.eq.f32.partialorder %v768_v4, 8.507059e+37 }
 0x51e   :  { %v2614_v62 = vpop.eup %2613 }
 0x51f   :  { %v760_v63 = vmul.f32 %v2614_v62, %v758_v61  ;;  %vm765_vm10 = vweird.f32 %v2614_v62 }
 0x520   :  { %vm766_vm12 = vmor %vm764_vm11, %vm765_vm10 }
 0x521   :  { %v761_v0 = vsub.f32 1.0, %v760_v63 }
 0x523   :  { %v762_v3 = vmul.f32 %v2614_v62, %v761_v0 }
 0x525   :  { %v763_v5 = vadd.f32 %v2614_v62, %v762_v3 }
 0x527   :  { %v767_v7 = vsel %vm766_vm12, %v2614_v62, %v763_v5 }
 0x528   :  { %v772_v8 = vsel %vm769_vm13, %v771_v6, %v767_v7 }
 0x529   :  { %v774_v9 = vmul.f32 2.0, %v772_v8  ;;  %v776_v14 = vmul.f32 %v772_v8, %v687_v45 }
 0x52b   :  { %v2531_v11 = vadd.f32 -1.0, %v774_v9 }
 0x52d   :  { %778 = vrot.lane.b32.xlu2 %v2531_v11, %s2737_s8  ;;  %v950_v11 = vld [vmem:[#allocation3 + $0xc] sm:$0xf] }
 0x587   :  { %v779_v12 = vpop.permute.xlu2 %778 }
 0x588   :  { %v781_v13 = vmul.f32 %v779_v12, %v772_v8 }
 0x58a   :  { %783 = vrot.lane.b32.xlu0 %v781_v13, %s2738_s19 }
 0x5fc   :  { %v784_v15 = vpop.permute.xlu0 %783 }
 0x5fd   :  { %v786_v16 = vadd.f32 %v784_v15, %v776_v14 }
 0x5ff   :  { %2615 = vtanh.f32 %v786_v16 }
 0x605   :  { %v2616_v17 = vpop.eup %2615 }
 0x606   :  { %789 = vrot.lane.b32.xlu1 %v2616_v17, %s2737_s8 }
 0x678   :  { %v790_v18 = vpop.permute.xlu1 %789 }
 0x679   :  { %v3490_v19 = vmul.f32 %v790_v18, %v772_v8 }
 0x67b   :  { %v800_v20 = vmul.f32 %v3411_v33, %v3490_v19  ;;  %v799_v21 = vmul.f32 %v3443_v40, %v3490_v19 }
 0x67d   :  { %802 = vrot.lane.b32.xlu2 %v800_v20, %s2738_s19  ;;  %827 = vrot.lane.b32.xlu0 %v799_v21, %s2738_s19 }
 0x6d7   :  { %v803_v28 = vpop.permute.xlu2 %802 }
 0x6d8   :  { %2532 = vmatmul.msk.f32.vlgmr.msra.gmra.mxu2 %vm444_vm0, %v803_v28 }
 0x6d9   :  { %1115 = vmatpush.msra.mxu2 %v3369_v24 }
 0x6db   :  { %1116 = vmatpush.msra.mxu2 %v3376_v25 }
 0x6dd   :  { %1117 = vmatpush.msra.mxu2 %v3386_v27 }
 0x6df   :  { %1118 = vmatpush.msra.mxu2 %v3408_v31 }
 0x6ef   :  { %v828_v30 = vpop.permute.xlu0 %827 }
 0x6f0   :  { %2533 = vmatmul.msk.f32.vlgmr.msra.gmra.mxu3 %vm444_vm0, %v828_v30 }
 0x6f1   :  { %1239 = vmatpush.msra.mxu3 %v3359_v22 }
 0x6f3   :  { %1240 = vmatpush.msra.mxu3 %v3364_v23 }
 0x6f5   :  { %1241 = vmatpush.msra.mxu3 %v3381_v26 }
 0x6f7   :  { %1242 = vmatpush.msra.mxu3 %v3395_v29 }
 0x75b   :  { %v823_v32 = vpop.f32.mrf.mxu2 }
 0x773   :  { %v848_v35 = vpop.f32.mrf.mxu3 }
 0x774   :  { %v849_v36 = vadd.f32 %v848_v35, %v823_v32 }
 0x776   :  { %v852_v38 = vadd.f32 %v851_v37, %v849_v36 }
 0x778   :  { %v853_v39 = vmul.f32 %v852_v38, %v3462_v10 }
 0x77a   :  { %v2534_v42 = vmul.f32 -1.442695, %v853_v39 }
 0x77c   :  { %2617 = vpow2.f32 %v2534_v42 }
 0x782   :  { %v2618_v43 = vpop.eup %2617 }
 0x783   :  { %v857_v44 = vadd.f32 1.0, %v2618_v43 }
 0x785   :  { %2619 = vrcp.f32 %v857_v44  ;;  %v869_v49 = vand.u32 2147483648, %v857_v44  ;;  %v867_v51 = vand.u32 2147483647, %v857_v44  ;;  %vm863_vm15 = vweird.f32 %v857_v44 }
 0x787   :  { %v870_v53 = vor.u32 1.1754944e-38, %v869_v49  ;;  %vm868_vm2 = vcmp.eq.f32.partialorder %v867_v51, 8.507059e+37 }
 0x78b   :  { %v2620_v45 = vpop.eup %2619 }
 0x78c   :  { %v859_v46 = vmul.f32 %v2620_v45, %v857_v44  ;;  %vm864_vm14 = vweird.f32 %v2620_v45 }
 0x78d   :  { %vm865_vm1 = vmor %vm863_vm15, %vm864_vm14 }
 0x78e   :  { %v860_v47 = vsub.f32 1.0, %v859_v46 }
 0x790   :  { %v861_v50 = vmul.f32 %v2620_v45, %v860_v47 }
 0x792   :  { %v862_v52 = vadd.f32 %v2620_v45, %v861_v50 }
 0x794   :  { %v866_v54 = vsel %vm865_vm1, %v2620_v45, %v862_v52 }
 0x795   :  { %v871_v55 = vsel %vm868_vm2, %v870_v53, %v866_v54  ;;  %v1049_v54 = vld [vmem:[#allocation3 + $0x10] sm:$0xf] }
 0x796   :  { %v873_v56 = vmul.f32 2.0, %v871_v55  ;;  %v875_v60 = vmul.f32 %v871_v55, %v786_v16 }
 0x798   :  { %v2535_v57 = vadd.f32 -1.0, %v873_v56 }
 0x79a   :  { %877 = vrot.lane.b32.xlu1 %v2535_v57, %s2737_s8 }
 0x80c   :  { %v878_v58 = vpop.permute.xlu1 %877 }
 0x80d   :  { %v880_v59 = vmul.f32 %v878_v58, %v871_v55 }
 0x80f   :  { %882 = vrot.lane.b32.xlu2 %v880_v59, %s2738_s19 }
 0x869   :  { %v883_v61 = vpop.permute.xlu2 %882 }
 0x86a   :  { %v885_v62 = vadd.f32 %v883_v61, %v875_v60 }
 0x86c   :  { %2621 = vtanh.f32 %v885_v62 }
 0x872   :  { %v2622_v63 = vpop.eup %2621 }
 0x873   :  { %888 = vrot.lane.b32.xlu0 %v2622_v63, %s2737_s8 }
 0x8e5   :  { %v889_v0 = vpop.permute.xlu0 %888 }
 0x8e6   :  { %v3512_v1 = vmul.f32 %v889_v0, %v871_v55 }
 0x8e8   :  { %v899_v3 = vmul.f32 %v3411_v33, %v3512_v1  ;;  %v898_v4 = vmul.f32 %v3443_v40, %v3512_v1 }
 0x8ea   :  { %901 = vrot.lane.b32.xlu1 %v899_v3, %s2738_s19  ;;  %926 = vrot.lane.b32.xlu2 %v898_v4, %s2738_s19 }
 0x944   :  { %v927_v6 = vpop.permute.xlu2 %926 }
 0x95c   :  { %v902_v5 = vpop.permute.xlu1 %901 }
 0x95d   :  { %2536 = vmatmul.msk.f32.vlgmr.msrb.gmra.mxu1 %vm444_vm0, %v902_v5 }
 0x95e   :  { %1140 = vmatpush.msrb.mxu1 %v3359_v22 }
 0x960   :  { %1141 = vmatpush.msrb.mxu1 %v3364_v23 }
 0x962   :  { %1142 = vmatpush.msrb.mxu1 %v3381_v26 }
 0x964   :  { %1143 = vmatpush.msrb.mxu1 %v3395_v29 }
 0x965   :  { %2537 = vmatmul.msk.f32.vlgmr.msra.gmra.mxu1 %vm444_vm0, %v927_v6 }
 0x966   :  { %1338 = vmatpush.msra.mxu1 %v3359_v22 }
 0x968   :  { %1339 = vmatpush.msra.mxu1 %v3364_v23 }
 0x96a   :  { %1340 = vmatpush.msra.mxu1 %v3381_v26 }
 0x96c   :  { %1341 = vmatpush.msra.mxu1 %v3395_v29 }
 0x9da   :  { %v922_v7 = vpop.f32.mrf.mxu1 }
 0x9e2   :  { %v947_v8 = vpop.f32.mrf.mxu1 }
 0x9e3   :  { %v948_v9 = vadd.f32 %v947_v8, %v922_v7 }
 0x9e5   :  { %v951_v12 = vadd.f32 %v950_v11, %v948_v9 }
 0x9e7   :  { %v952_v13 = vmul.f32 %v951_v12, %v3462_v10 }
 0x9e9   :  { %v2538_v14 = vmul.f32 -1.442695, %v952_v13 }
 0x9eb   :  { %2623 = vpow2.f32 %v2538_v14 }
 0x9f1   :  { %v2624_v15 = vpop.eup %2623 }
 0x9f2   :  { %v956_v16 = vadd.f32 1.0, %v2624_v15 }
 0x9f4   :  { %2625 = vrcp.f32 %v956_v16  ;;  %v968_v23 = vand.u32 2147483648, %v956_v16  ;;  %v966_v26 = vand.u32 2147483647, %v956_v16  ;;  %vm962_vm4 = vweird.f32 %v956_v16 }
 0x9f6   :  { %v969_v21 = vor.u32 1.1754944e-38, %v968_v23  ;;  %vm967_vm6 = vcmp.eq.f32.partialorder %v966_v26, 8.507059e+37  ;;  %v1148_v26 = vld [vmem:[#allocation3 + $0x14] sm:$0xf] }
 0x9fa   :  { %v2626_v17 = vpop.eup %2625 }
 0x9fb   :  { %v958_v22 = vmul.f32 %v2626_v17, %v956_v16  ;;  %vm963_vm3 = vweird.f32 %v2626_v17 }
 0x9fc   :  { %vm964_vm5 = vmor %vm962_vm4, %vm963_vm3 }
 0x9fd   :  { %v959_v18 = vsub.f32 1.0, %v958_v22 }
 0x9ff   :  { %v960_v20 = vmul.f32 %v2626_v17, %v959_v18 }
 0xa01   :  { %v961_v29 = vadd.f32 %v2626_v17, %v960_v20 }
 0xa03   :  { %v965_v28 = vsel %vm964_vm5, %v2626_v17, %v961_v29 }
 0xa04   :  { %v970_v30 = vsel %vm967_vm6, %v969_v21, %v965_v28 }
 0xa05   :  { %v972_v32 = vmul.f32 2.0, %v970_v30  ;;  %v974_v38 = vmul.f32 %v970_v30, %v885_v62 }
 0xa07   :  { %v2539_v35 = vadd.f32 -1.0, %v972_v32 }
 0xa09   :  { %976 = vrot.lane.b32.xlu0 %v2539_v35, %s2737_s8 }
 0xa7b   :  { %v977_v36 = vpop.permute.xlu0 %976 }
 0xa7c   :  { %v979_v37 = vmul.f32 %v977_v36, %v970_v30 }
 0xa7e   :  { %981 = vrot.lane.b32.xlu1 %v979_v37, %s2738_s19 }
 0xaf0   :  { %v982_v39 = vpop.permute.xlu1 %981 }
 0xaf1   :  { %v984_v42 = vadd.f32 %v982_v39, %v974_v38 }
 0xaf3   :  { %2627 = vtanh.f32 %v984_v42 }
 0xaf9   :  { %v2628_v43 = vpop.eup %2627 }
 0xafa   :  { %987 = vrot.lane.b32.xlu2 %v2628_v43, %s2737_s8 }
 0xb54   :  { %v988_v44 = vpop.permute.xlu2 %987 }
 0xb55   :  { %v3534_v45 = vmul.f32 %v988_v44, %v970_v30 }
 0xb57   :  { %v998_v46 = vmul.f32 %v3411_v33, %v3534_v45  ;;  %v997_v47 = vmul.f32 %v3443_v40, %v3534_v45 }
 0xb59   :  { %1000 = vrot.lane.b32.xlu0 %v998_v46, %s2738_s19  ;;  %1025 = vrot.lane.b32.xlu1 %v997_v47, %s2738_s19 }
 0xbcb   :  { %v1001_v49 = vpop.permute.xlu0 %1000  ;;  %v1026_v50 = vpop.permute.xlu1 %1025 }
 0xbcc   :  { %2540 = vmatmul.msk.f32.vlgmr.msrb.gmra.mxu2 %vm444_vm0, %v1001_v49  ;;  %2541 = vmatmul.msk.f32.vlgmr.msrb.gmra.mxu3 %vm444_vm0, %v1026_v50 }
 0xbcd   :  { %1214 = vmatpush.msrb.mxu2 %v3369_v24 }
 0xbcf   :  { %1215 = vmatpush.msrb.mxu2 %v3376_v25 }
 0xbd1   :  { %1216 = vmatpush.msrb.mxu2 %v3386_v27 }
 0xbd3   :  { %1217 = vmatpush.msrb.mxu2 %v3408_v31 }
 0xc4f   :  { %v1021_v51 = vpop.f32.mrf.mxu2  ;;  %v1046_v52 = vpop.f32.mrf.mxu3 }
 0xc50   :  { %v1047_v53 = vadd.f32 %v1046_v52, %v1021_v51 }
 0xc52   :  { %v1050_v55 = vadd.f32 %v1049_v54, %v1047_v53 }
 0xc54   :  { %v1051_v56 = vmul.f32 %v1050_v55, %v3462_v10 }
 0xc56   :  { %v2542_v57 = vmul.f32 -1.442695, %v1051_v56 }
 0xc58   :  { %2629 = vpow2.f32 %v2542_v57 }
 0xc5e   :  { %v2630_v58 = vpop.eup %2629 }
 0xc5f   :  { %v1055_v59 = vadd.f32 1.0, %v2630_v58 }
 0xc61   :  { %2631 = vrcp.f32 %v1055_v59  ;;  %v1067_v25 = vand.u32 2147483648, %v1055_v59  ;;  %v1065_v27 = vand.u32 2147483647, %v1055_v59  ;;  %vm1061_vm8 = vweird.f32 %v1055_v59 }
 0xc63   :  { %v1068_v63 = vor.u32 1.1754944e-38, %v1067_v25  ;;  %vm1066_vm10 = vcmp.eq.f32.partialorder %v1065_v27, 8.507059e+37 }
 0xc67   :  { %v2632_v60 = vpop.eup %2631 }
 0xc68   :  { %v1057_v24 = vmul.f32 %v2632_v60, %v1055_v59  ;;  %vm1062_vm7 = vweird.f32 %v2632_v60 }
 0xc69   :  { %vm1063_vm9 = vmor %vm1061_vm8, %vm1062_vm7  ;;  %vm698_vm8 = vcmask 257024  }
 0xc6a   :  { %v1058_v61 = vsub.f32 1.0, %v1057_v24 }
 0xc6c   :  { %v1059_v62 = vmul.f32 %v2632_v60, %v1058_v61 }
 0xc6e   :  { %v1060_v31 = vadd.f32 %v2632_v60, %v1059_v62 }
 0xc70   :  { %v1064_v0 = vsel %vm1063_vm9, %v2632_v60, %v1060_v31  ;;  %v1247_v31 = vld [vmem:[#allocation3 + $0x18] sm:$0xf]  ;;  %vm1394_vm9 = vcmask 254976  }
 0xc71   :  { %v1069_v3 = vsel %vm1066_vm10, %v1068_v63, %v1064_v0  ;;  %vm1401_vm10 = vcmask 517376  }
 0xc72   :  { %v1071_v4 = vmul.f32 2.0, %v1069_v3  ;;  %v1073_v8 = vmul.f32 %v1069_v3, %v984_v42 }
 0xc74   :  { %v2543_v5 = vadd.f32 -1.0, %v1071_v4 }
 0xc76   :  { %1075 = vrot.lane.b32.xlu2 %v2543_v5, %s2737_s8 }
 0xcd0   :  { %v1076_v6 = vpop.permute.xlu2 %1075 }
 0xcd1   :  { %v1078_v7 = vmul.f32 %v1076_v6, %v1069_v3 }
 0xcd3   :  { %1080 = vrot.lane.b32.xlu0 %v1078_v7, %s2738_s19 }
 0xd45   :  { %v1081_v9 = vpop.permute.xlu0 %1080 }
 0xd46   :  { %v1083_v11 = vadd.f32 %v1081_v9, %v1073_v8 }
 0xd48   :  { %2633 = vtanh.f32 %v1083_v11 }
 0xd4e   :  { %v2634_v12 = vpop.eup %2633 }
 0xd4f   :  { %1086 = vrot.lane.b32.xlu1 %v2634_v12, %s2737_s8 }
 0xdc1   :  { %v1087_v13 = vpop.permute.xlu1 %1086 }
 0xdc2   :  { %v3552_v14 = vmul.f32 %v1087_v13, %v1069_v3 }
 0xdc4   :  { %v1097_v15 = vmul.f32 %v3411_v33, %v3552_v14  ;;  %v1096_v16 = vmul.f32 %v3443_v40, %v3552_v14 }
 0xdc6   :  { %1099 = vrot.lane.b32.xlu2 %v1097_v15, %s2738_s19  ;;  %1124 = vrot.lane.b32.xlu0 %v1096_v16, %s2738_s19 }
 0xe20   :  { %v1100_v17 = vpop.permute.xlu2 %1099 }
 0xe21   :  { %2544 = vmatmul.msk.f32.vlgmr.msra.gmra.mxu2 %vm444_vm0, %v1100_v17 }
 0xe38   :  { %v1125_v22 = vpop.permute.xlu0 %1124 }
 0xe39   :  { %2545 = vmatmul.msk.f32.vlgmr.msrb.gmra.mxu1 %vm444_vm0, %v1125_v22 }
 0xea4   :  { %v1120_v18 = vpop.f32.mrf.mxu2 }
 0xeb6   :  { %v1145_v23 = vpop.f32.mrf.mxu1 }
 0xeb7   :  { %v1146_v20 = vadd.f32 %v1145_v23, %v1120_v18 }
 0xeb9   :  { %v1149_v29 = vadd.f32 %v1148_v26, %v1146_v20 }
 0xebb   :  { %v1150_v21 = vmul.f32 %v1149_v29, %v3462_v10 }
 0xebd   :  { %v2546_v28 = vmul.f32 -1.442695, %v1150_v21 }
 0xebf   :  { %2635 = vpow2.f32 %v2546_v28 }
 0xec5   :  { %v2636_v30 = vpop.eup %2635 }
 0xec6   :  { %v1154_v32 = vadd.f32 1.0, %v2636_v30 }
 0xec8   :  { %2637 = vrcp.f32 %v1154_v32  ;;  %v1166_v38 = vand.u32 2147483648, %v1154_v32  ;;  %v1164_v42 = vand.u32 2147483647, %v1154_v32  ;;  %vm1160_vm12 = vweird.f32 %v1154_v32 }
 0xeca   :  { %v1167_v44 = vor.u32 1.1754944e-38, %v1166_v38  ;;  %vm1165_vm14 = vcmp.eq.f32.partialorder %v1164_v42, 8.507059e+37 }
 0xece   :  { %v2638_v35 = vpop.eup %2637 }
 0xecf   :  { %v1156_v36 = vmul.f32 %v2638_v35, %v1154_v32  ;;  %vm1161_vm11 = vweird.f32 %v2638_v35 }
 0xed0   :  { %vm1162_vm13 = vmor %vm1160_vm12, %vm1161_vm11  ;;  %vm1483_vm11 = vcmask 523264  }
 0xed1   :  { %v1157_v37 = vsub.f32 1.0, %v1156_v36 }
 0xed3   :  { %v1158_v39 = vmul.f32 %v2638_v35, %v1157_v37 }
 0xed5   :  { %v1159_v43 = vadd.f32 %v2638_v35, %v1158_v39 }
 0xed7   :  { %v1163_v46 = vsel %vm1162_vm13, %v2638_v35, %v1159_v43 }
 0xed8   :  { %v1168_v47 = vsel %vm1165_vm14, %v1167_v44, %v1163_v46  ;;  %v1346_v44 = vld [vmem:[#allocation3 + $0x1c] sm:$0xf] }
 0xed9   :  { %v1170_v49 = vmul.f32 2.0, %v1168_v47  ;;  %v1172_v53 = vmul.f32 %v1168_v47, %v1083_v11 }
 0xedb   :  { %v2547_v50 = vadd.f32 -1.0, %v1170_v49 }
 0xedd   :  { %1174 = vrot.lane.b32.xlu1 %v2547_v50, %s2737_s8 }
 0xf4f   :  { %v1175_v51 = vpop.permute.xlu1 %1174 }
 0xf50   :  { %v1177_v52 = vmul.f32 %v1175_v51, %v1168_v47 }
 0xf52   :  { %1179 = vrot.lane.b32.xlu2 %v1177_v52, %s2738_s19 }
 0xfac   :  { %v1180_v54 = vpop.permute.xlu2 %1179 }
 0xfad   :  { %v1182_v55 = vadd.f32 %v1180_v54, %v1172_v53 }
 0xfaf   :  { %2639 = vtanh.f32 %v1182_v55 }
 0xfb5   :  { %v2640_v56 = vpop.eup %2639 }
 0xfb6   :  { %1185 = vrot.lane.b32.xlu0 %v2640_v56, %s2737_s8 }
0x1028   :  { %v1186_v57 = vpop.permute.xlu0 %1185 }
0x1029   :  { %v3566_v58 = vmul.f32 %v1186_v57, %v1168_v47 }
0x102b   :  { %v1196_v59 = vmul.f32 %v3411_v33, %v3566_v58  ;;  %v1195_v60 = vmul.f32 %v3443_v40, %v3566_v58 }
0x102d   :  { %1198 = vrot.lane.b32.xlu1 %v1196_v59, %s2738_s19  ;;  %1223 = vrot.lane.b32.xlu2 %v1195_v60, %s2738_s19 }
0x1087   :  { %v1224_v24 = vpop.permute.xlu2 %1223 }
0x1088   :  { %2549 = vmatmul.msk.f32.vlgmr.msra.gmra.mxu3 %vm444_vm0, %v1224_v24 }
0x109f   :  { %v1199_v61 = vpop.permute.xlu1 %1198 }
0x10a0   :  { %2548 = vmatmul.msk.f32.vlgmr.msrb.gmra.mxu2 %vm444_vm0, %v1199_v61 }
0x110b   :  { %v1244_v25 = vpop.f32.mrf.mxu3 }
0x1123   :  { %v1219_v62 = vpop.f32.mrf.mxu2 }
0x1124   :  { %v1245_v27 = vadd.f32 %v1244_v25, %v1219_v62 }
0x1126   :  { %v1248_v63 = vadd.f32 %v1247_v31, %v1245_v27 }
0x1128   :  { %v1249_v0 = vmul.f32 %v1248_v63, %v3462_v10 }
0x112a   :  { %v2550_v3 = vmul.f32 -1.442695, %v1249_v0 }
0x112c   :  { %2641 = vpow2.f32 %v2550_v3 }
0x1132   :  { %v2642_v4 = vpop.eup %2641 }
0x1133   :  { %v1253_v5 = vadd.f32 1.0, %v2642_v4 }
0x1135   :  { %2643 = vrcp.f32 %v1253_v5  ;;  %v1265_v9 = vand.u32 2147483648, %v1253_v5  ;;  %v1263_v12 = vand.u32 2147483647, %v1253_v5  ;;  %vm1259_vm1 = vweird.f32 %v1253_v5 }
0x1137   :  { %v1266_v15 = vor.u32 1.1754944e-38, %v1265_v9  ;;  %vm1264_vm3 = vcmp.eq.f32.partialorder %v1263_v12, 8.507059e+37 }
0x113b   :  { %v2644_v6 = vpop.eup %2643 }
0x113c   :  { %v1255_v7 = vmul.f32 %v2644_v6, %v1253_v5  ;;  %vm1260_vm15 = vweird.f32 %v2644_v6 }
0x113d   :  { %vm1261_vm2 = vmor %vm1259_vm1, %vm1260_vm15 }
0x113e   :  { %v1256_v8 = vsub.f32 1.0, %v1255_v7 }
0x1140   :  { %v1257_v11 = vmul.f32 %v2644_v6, %v1256_v8 }
0x1142   :  { %v1258_v13 = vadd.f32 %v2644_v6, %v1257_v11 }
0x1144   :  { %v1262_v16 = vsel %vm1261_vm2, %v2644_v6, %v1258_v13 }
0x1145   :  { %v1267_v17 = vsel %vm1264_vm3, %v1266_v15, %v1262_v16 }
0x1146   :  { %v1269_v22 = vmul.f32 2.0, %v1267_v17  ;;  %v1271_v26 = vmul.f32 %v1267_v17, %v1182_v55 }
0x1148   :  { %v2551_v18 = vadd.f32 -1.0, %v1269_v22 }
0x114a   :  { %1273 = vrot.lane.b32.xlu0 %v2551_v18, %s2737_s8 }
0x11bc   :  { %v1274_v23 = vpop.permute.xlu0 %1273 }
0x11bd   :  { %v1276_v20 = vmul.f32 %v1274_v23, %v1267_v17 }
0x11bf   :  { %1278 = vrot.lane.b32.xlu1 %v1276_v20, %s2738_s19 }
0x1231   :  { %v1279_v29 = vpop.permute.xlu1 %1278 }
0x1232   :  { %v1281_v21 = vadd.f32 %v1279_v29, %v1271_v26  ;;  %v1475_v26 = vld [vmem:[%s3987_s11 + $0x70] sm:$0xff]  ;;  %v1476_v29 = vld [vmem:[%s3987_s11 + $0x78] sm:$0xff] }
0x1233   :  { %1498 = vmatpush.msra.mxu2 %v1475_v26  ;;  %1521 = vmatpush.msrb.mxu3 %v1476_v29 }
0x1234   :  { %2645 = vtanh.f32 %v1281_v21 }
0x123a   :  { %v2646_v28 = vpop.eup %2645 }
0x123b   :  { %1284 = vrot.lane.b32.xlu2 %v2646_v28, %s2737_s8  ;;  %v1474_v28 = vld [vmem:[%s3987_s11 + $0x68] sm:$0xff] }
0x123c   :  { %1522 = vmatpush.msrb.mxu3 %v1474_v28 }
0x1295   :  { %v1285_v30 = vpop.permute.xlu2 %1284 }
0x1296   :  { %v1287_v32 = vmul.f32 %v1285_v30, %v1267_v17  ;;  %v1471_v30 = vld [vmem:[%s3987_s11 + $0x50] sm:$0xff] }
0x1298   :  { %v1295_v35 = vmul.f32 %v3411_v33, %v1287_v32  ;;  %v1294_v36 = vmul.f32 %v3443_v40, %v1287_v32 }
0x129a   :  { %1297 = vrot.lane.b32.xlu0 %v1295_v35, %s2738_s19  ;;  %1322 = vrot.lane.b32.xlu1 %v1294_v36, %s2738_s19  ;;  %v1469_v35 = vld [vmem:[%s3987_s11 + $0x40] sm:$0xff]  ;;  %v1470_v36 = vld [vmem:[%s3987_s11 + $0x48] sm:$0xff] }
0x130c   :  { %v1298_v37 = vpop.permute.xlu0 %1297  ;;  %v1323_v38 = vpop.permute.xlu1 %1322 }
0x130d   :  { %2552 = vmatmul.msk.f32.vlgmr.msrb.gmra.mxu0 %vm444_vm0, %v1298_v37  ;;  %2553 = vmatmul.msk.f32.vlgmr.msra.gmra.mxu1 %vm444_vm0, %v1323_v38 }
0x138a   :  { %v1318_v39 = vpop.f32.mrf.mxu0  ;;  %v1343_v42 = vpop.f32.mrf.mxu1 }
0x138b   :  { %v1344_v43 = vadd.f32 %v1343_v42, %v1318_v39 }
0x138d   :  { %v1347_v46 = vadd.f32 %v1346_v44, %v1344_v43 }
0x138f   :  { %v1348_v47 = vmul.f32 %v1347_v46, %v3462_v10 }
0x1391   :  { %v2554_v49 = vmul.f32 -1.442695, %v1348_v47 }
0x1393   :  { %2647 = vpow2.f32 %v2554_v49 }
0x1399   :  { %v2648_v50 = vpop.eup %2647 }
0x139a   :  { %v1352_v51 = vadd.f32 1.0, %v2648_v50 }
0x139c   :  { %2649 = vrcp.f32 %v1352_v51  ;;  %v1364_v55 = vand.u32 2147483648, %v1352_v51  ;;  %v1362_v57 = vand.u32 2147483647, %v1352_v51  ;;  %vm1358_vm5 = vweird.f32 %v1352_v51 }
0x139e   :  { %v1365_v60 = vor.u32 1.1754944e-38, %v1364_v55  ;;  %vm1363_vm7 = vcmp.eq.f32.partialorder %v1362_v57, 8.507059e+37  ;;  %v1463_v55 = vld [vmem:[%s3987_s11 + $0x10] sm:$0xff]  ;;  %v1461_v57 = vld [vmem:[%s3987_s11] sm:$0xff] }
0x13a2   :  { %v2650_v52 = vpop.eup %2649 }
0x13a3   :  { %v1354_v53 = vmul.f32 %v2650_v52, %v1352_v51  ;;  %vm1359_vm4 = vweird.f32 %v2650_v52  ;;  %v1467_v51 = vld [vmem:[%s3987_s11 + $0x30] sm:$0xff] }
0x13a4   :  { %vm1360_vm6 = vmor %vm1358_vm5, %vm1359_vm4 }
0x13a5   :  { %v1355_v54 = vsub.f32 1.0, %v1354_v53  ;;  %v1465_v53 = vld [vmem:[%s3987_s11 + $0x20] sm:$0xff] }
0x13a7   :  { %v1356_v56 = vmul.f32 %v2650_v52, %v1355_v54  ;;  %v1466_v54 = vld [vmem:[%s3987_s11 + $0x28] sm:$0xff] }
0x13a9   :  { %v1357_v59 = vadd.f32 %v2650_v52, %v1356_v56  ;;  %v1464_v56 = vld [vmem:[%s3987_s11 + $0x18] sm:$0xff] }
0x13ab   :  { %v1361_v24 = vsel %vm1360_vm6, %v2650_v52, %v1357_v59  ;;  %v1468_v52 = vld [vmem:[%s3987_s11 + $0x38] sm:$0xff]  ;;  %v1462_v59 = vld [vmem:[%s3987_s11 + $0x8] sm:$0xff] }
0x13ac   :  { %v1366_v61 = vsel %vm1363_vm7, %v1365_v60, %v1361_v24  ;;  %v3684_v60 = vld [vmem:[%s3990_s14 + $0x18] sm:$0xff] }
0x13ad   :  { %v1368_v25 = vmul.f32 2.0, %v1366_v61  ;;  %v3689_v24 = vld [vmem:[%s3989_s13 + $0x18] sm:$0xff]  ;;  %1599 = vmatpush.msra.mxu0 %v3684_v60 }
0x13ae   :  { %1619 = vmatpush.msrb.mxu1 %v3689_v24 }
0x13af   :  { %v2555_v62 = vadd.f32 -1.0, %v1368_v25  ;;  %v3701_v25 = vld [vmem:[%s3989_s13 + $0x10] sm:$0xff] }
0x13b0   :  { %1620 = vmatpush.msrb.mxu1 %v3701_v25 }
0x13b1   :  { %1372 = vrot.lane.b32.xlu2 %v2555_v62, %s2737_s8  ;;  %v3706_v62 = vld [vmem:[%s3990_s14 + $0x8] sm:$0xff] }
0x13b9   :  { %1091 = vrot.lane.b32.xlu2 %v3552_v14, %s2738_s19  ;;  %v1370_v14 = vmul.f32 %v1366_v61, %v1281_v21  ;;  %v1473_v21 = vld [vmem:[%s3987_s11 + $0x60] sm:$0xff] }
0x13ba   :  { %1499 = vmatpush.msra.mxu2 %v1473_v21 }
0x13bc   :  { %1500 = vmatpush.msra.mxu2 %v1471_v30 }
0x13be   :  { %1501 = vmatpush.msra.mxu2 %v1469_v35 }
0x13c0   :  { %1502 = vmatpush.msra.mxu2 %v1467_v51 }
0x13c2   :  { %1503 = vmatpush.msra.mxu2 %v1465_v53 }
0x13c4   :  { %1504 = vmatpush.msra.mxu2 %v1463_v55 }
0x13c6   :  { %1505 = vmatpush.msra.mxu2 %v1461_v57 }
0x13c8   :  { %1890 = vmatpush.msrb.mxu2 %v3684_v60 }
0x140b   :  { %v1373_v27 = vpop.permute.xlu2 %1372 }
0x140c   :  { %v1375_v31 = vmul.f32 %v1373_v27, %v1366_v61  ;;  %v3711_v27 = vld [vmem:[%s3989_s13 + $0x8] sm:$0xff] }
0x140d   :  { %1621 = vmatpush.msrb.mxu1 %v3711_v27 }
0x140e   :  { %1377 = vrot.lane.b32.xlu0 %v1375_v31, %s2738_s19  ;;  %v3720_v31 = vld [vmem:[%s3990_s14] sm:$0xff] }
0x1413   :  { %v1092_v63 = vpop.permute.xlu2 %1091 }
0x1414   :  { %1095 = vst.msk [vmem:[#allocation4 + $0x10] sm:$0xf] %vm698_vm8, %v1092_v63  ;;  %v3725_v63 = vld [vmem:[%s3989_s13] sm:$0xff] }
0x1415   :  { %1622 = vmatpush.msrb.mxu1 %v3725_v63 }
0x1416   :  { %1190 = vrot.lane.b32.xlu0 %v3566_v58, %s2738_s19  ;;  %2561 = vmatmul.msk.f32.vlgmr.msrb.gmra.mxu1 %vm444_vm0, %v3446_v41 }
0x1417   :  { %1717 = vmatpush.msra.mxu1 %v3689_v24 }
0x1419   :  { %1718 = vmatpush.msra.mxu1 %v3701_v25 }
0x141b   :  { %v1427_v0 = vld [vmem:[#allocation4 + $0x10] sm:$0x3]  ;;  %v1421_v11 = vld [vmem:[#allocation4 + $0x12] sm:$0x3]  ;;  %1719 = vmatpush.msra.mxu1 %v3711_v27 }
0x141c   :  { %1428 = vst.msk [vmem:[#allocation5 + $0x8] sm:$0x3] %vm1394_vm9, %v1427_v0 }
0x141d   :  { %1720 = vmatpush.msra.mxu1 %v3725_v63 }
0x141e   :  { %695 = vrot.lane.b32.xlu0 %v3468_v48, %s2738_s19 }
0x141f   :  { %1816 = vmatpush.msrb.mxu1 %v3689_v24 }
0x1421   :  { %1817 = vmatpush.msrb.mxu1 %v3701_v25 }
0x1423   :  { %1818 = vmatpush.msrb.mxu1 %v3711_v27 }
0x1425   :  { %1819 = vmatpush.msrb.mxu1 %v3725_v63 }
0x1426   :  { %992 = vrot.lane.b32.xlu0 %v3534_v45, %s2738_s19 }
0x1480   :  { %v1378_v3 = vpop.permute.xlu0 %1377 }
0x1481   :  { %v1380_v4 = vadd.f32 %v1378_v3, %v1370_v14 }
0x1483   :  { %2651 = vtanh.f32 %v1380_v4  ;;  %v1477_v4 = vld [vmem:[%s3988_s12] sm:$0x3] }
0x1488   :  { %v1191_v5 = vpop.permute.xlu0 %1190 }
0x1489   :  { %v2652_v6 = vpop.eup %2651  ;;  %1194 = vst.msk [vmem:[#allocation4 + $0x14] sm:$0xf] %vm698_vm8, %v1191_v5  ;;  %v1479_v5 = vperm.slane %v1477_v4, 0 }
0x148a   :  { %1383 = vrot.lane.b32.xlu1 %v2652_v6, %s2737_s8  ;;  %v1480_v6 = vperm.slane %v1477_v4, 1 }
0x1490   :  { %v696_v58 = vpop.permute.xlu0 %695  ;;  %v1413_v7 = vld [vmem:[#allocation4 + $0x16] sm:$0x3]  ;;  %v1435_v8 = vld [vmem:[#allocation4 + $0x14] sm:$0x3] }
0x1491   :  { %699 = vst.msk [vmem:[#allocation4] sm:$0xf] %vm698_vm8, %v696_v58  ;;  %1415 = vrot.lane.b32.xlu0 %v1413_v7, %s2738_s19 }
0x1492   :  { %1289 = vrot.lane.b32.xlu1 %v1287_v32, %s2738_s19  ;;  %1436 = vst.msk [vmem:[#allocation5 + $0xa] sm:$0x3] %vm1394_vm9, %v1435_v8  ;;  %v1472_v32 = vld [vmem:[%s3987_s11 + $0x58] sm:$0xff] }
0x1493   :  { %1523 = vmatpush.msrb.mxu3 %v1472_v32 }
0x1495   :  { %1524 = vmatpush.msrb.mxu3 %v1470_v36  ;;  %v1624_v36 = vpop.f32.mrf.mxu1 }
0x1497   :  { %1525 = vmatpush.msrb.mxu3 %v1468_v52 }
0x1498   :  { %v993_v48 = vpop.permute.xlu0 %992  ;;  %v1393_v45 = vld [vmem:[#allocation4] sm:$0x3] }
0x1499   :  { %996 = vst.msk [vmem:[#allocation4 + $0xc] sm:$0xf] %vm698_vm8, %v993_v48  ;;  %1526 = vmatpush.msrb.mxu3 %v1466_v54 }
0x149a   :  { %794 = vrot.lane.b32.xlu1 %v3490_v19, %s2738_s19  ;;  %1395 = vst.msk [vmem:[#allocation5] sm:$0x3] %vm1394_vm9, %v1393_v45 }
0x149b   :  { %1527 = vmatpush.msrb.mxu3 %v1464_v56 }
0x149d   :  { %1528 = vmatpush.msrb.mxu3 %v1462_v59 }
0x149f   :  { %1915 = vmatpush.msra.mxu3 %v3689_v24 }
0x14a0   :  { %v1419_v9 = vld [vmem:[#allocation4 + $0xc] sm:$0x3]  ;;  %v1429_v23 = vld [vmem:[#allocation4 + $0xe] sm:$0x3] }
0x14a1   :  { %1420 = vst.msk [vmem:[#allocation5 + $0x6] sm:$0x3] %vm1394_vm9, %v1419_v9  ;;  %1916 = vmatpush.msra.mxu3 %v3701_v25 }
0x14a2   :  { %1423 = vrot.lane.b32.xlu1 %v1421_v11, %s2738_s19 }
0x14a3   :  { %1917 = vmatpush.msra.mxu3 %v3711_v27 }
0x14a5   :  { %1918 = vmatpush.msra.mxu3 %v3725_v63 }
0x14fc   :  { %v1384_v12 = vpop.permute.xlu1 %1383 }
0x14fd   :  { %v1386_v13 = vmul.f32 %v1384_v12, %v1366_v61  ;;  %v3694_v61 = vld [vmem:[%s3990_s14 + $0x10] sm:$0xff] }
0x14fe   :  { %1600 = vmatpush.msra.mxu0 %v3694_v61  ;;  %1891 = vmatpush.msrb.mxu2 %v3694_v61 }
0x14ff   :  { %1388 = vrot.lane.b32.xlu2 %v1386_v13, %s2738_s19 }
0x1500   :  { %1601 = vmatpush.msra.mxu0 %v3706_v62  ;;  %1892 = vmatpush.msrb.mxu2 %v3706_v62 }
0x1502   :  { %1602 = vmatpush.msra.mxu0 %v3720_v31  ;;  %1893 = vmatpush.msrb.mxu2 %v3720_v31 }
0x1503   :  { %v1416_v47 = vpop.permute.xlu0 %1415  ;;  %2560 = vmatmul.msk.f32.vlgmr.msra.gmra.mxu0 %vm444_vm0, %v3415_v34 }
0x1504   :  { %v1290_v15 = vpop.permute.xlu1 %1289  ;;  %1692 = vmatpush.msrb.mxu0 %v3684_v60 }
0x1505   :  { %1293 = vst.msk [vmem:[#allocation4 + $0x18] sm:$0xf] %vm698_vm8, %v1290_v15 }
0x1506   :  { %1693 = vmatpush.msrb.mxu0 %v3694_v61 }
0x1507   :  { %893 = vrot.lane.b32.xlu2 %v3512_v1, %s2738_s19  ;;  %v1453_v1 = vld [vmem:[#allocation4 + $0x2] sm:$0x3] }
0x1508   :  { %1694 = vmatpush.msrb.mxu0 %v3706_v62 }
0x150a   :  { %1695 = vmatpush.msrb.mxu0 %v3720_v31 }
0x150c   :  { %v795_v16 = vpop.permute.xlu1 %794  ;;  %v1443_v19 = vld [vmem:[#allocation4 + $0x18] sm:$0x3]  ;;  %v1405_v17 = vld [vmem:[#allocation4 + $0x1a] sm:$0x3]  ;;  %1791 = vmatpush.msra.mxu0 %v3684_v60 }
0x150d   :  { %798 = vst.msk [vmem:[#allocation4 + $0x4] sm:$0xf] %vm698_vm8, %v795_v16 }
0x150e   :  { %1444 = vst.msk [vmem:[#allocation5 + $0xc] sm:$0x3] %vm1394_vm9, %v1443_v19  ;;  %1792 = vmatpush.msra.mxu0 %v3694_v61 }
0x150f   :  { %1407 = vrot.lane.b32.xlu2 %v1405_v17, %s2738_s19 }
0x1510   :  { %1793 = vmatpush.msra.mxu0 %v3706_v62 }
0x1512   :  { %1794 = vmatpush.msra.mxu0 %v3720_v31 }
0x1514   :  { %v1424_v22 = vpop.permute.xlu1 %1423  ;;  %v1403_v18 = vld [vmem:[#allocation4 + $0x4] sm:$0x3]  ;;  %v1445_v44 = vld [vmem:[#allocation4 + $0x6] sm:$0x3] }
0x1515   :  { %1426 = vst.msk [vmem:[#allocation5 + $0x6] sm:$0x3] %vm1401_vm10, %v1424_v22 }
0x1516   :  { %1404 = vst.msk [vmem:[#allocation5 + $0x2] sm:$0x3] %vm1394_vm9, %v1403_v18 }
0x1517   :  { %1431 = vrot.lane.b32.xlu2 %v1429_v23, %s2738_s19 }
0x151f   :  { %1455 = vrot.lane.b32.xlu2 %v1453_v1, %s2738_s19 }
0x1559   :  { %v1389_v20 = vpop.permute.xlu2 %1388 }
0x155a   :  { %1392 = vst.msk [vmem:[#allocation4 + $0x1c] sm:$0xf] %vm698_vm8, %v1389_v20 }
0x1561   :  { %v894_v37 = vpop.permute.xlu2 %893  ;;  %v1396_v38 = vld [vmem:[#allocation4 + $0x1e] sm:$0x3]  ;;  %v1451_v39 = vld [vmem:[#allocation4 + $0x1c] sm:$0x3] }
0x1562   :  { %897 = vst.msk [vmem:[#allocation4 + $0x8] sm:$0xf] %vm698_vm8, %v894_v37  ;;  %1398 = vrot.lane.b32.xlu1 %v1396_v38, %s2738_s19 }
0x1563   :  { %1452 = vst.msk [vmem:[#allocation5 + $0xe] sm:$0x3] %vm1394_vm9, %v1451_v39 }
0x1569   :  { %v1411_v42 = vld [vmem:[#allocation4 + $0x8] sm:$0x3]  ;;  %v1408_v43 = vpop.permute.xlu2 %1407  ;;  %v1437_v46 = vld [vmem:[#allocation4 + $0xa] sm:$0x3] }
0x156a   :  { %1412 = vst.msk [vmem:[#allocation5 + $0x4] sm:$0x3] %vm1394_vm9, %v1411_v42  ;;  %1447 = vrot.lane.b32.xlu1 %v1445_v44, %s2738_s19  ;;  %1439 = vrot.lane.b32.xlu0 %v1437_v46, %s2738_s19 }
0x156b   :  { %1418 = vst.msk [vmem:[#allocation5 + $0x4] sm:$0x3] %vm1401_vm10, %v1416_v47 }
0x156c   :  { %1410 = vst.msk [vmem:[#allocation5 + $0x2] sm:$0x3] %vm1401_vm10, %v1408_v43 }
0x1571   :  { %v1432_v49 = vpop.permute.xlu2 %1431 }
0x1572   :  { %1434 = vst.msk [vmem:[#allocation5 + $0x8] sm:$0x3] %vm1401_vm10, %v1432_v49 }
0x1579   :  { %v1456_v50 = vpop.permute.xlu2 %1455 }
0x157a   :  { %1458 = vst.msk [vmem:[#allocation5 + $0xe] sm:$0x3] %vm1401_vm10, %v1456_v50 }
0x1580   :  { %v1604_v35 = vpop.f32.mrf.mxu0 }
0x1581   :  { %v1625_v37 = vadd.f32 %v1624_v36, %v1604_v35 }
0x15d4   :  { %v1399_v34 = vpop.permute.xlu1 %1398 }
0x15d5   :  { %1402 = vst.msk [vmem:[#allocation5] sm:$0x3] %vm1401_vm10, %v1399_v34 }
0x15dc   :  { %v1448_v41 = vpop.permute.xlu1 %1447  ;;  %v1440_v0 = vpop.permute.xlu0 %1439  ;;  %v1459_v14 = vld [vmem:[#allocation5] sm:$0xff] }
0x15dd   :  { %1450 = vst.msk [vmem:[#allocation5 + $0xc] sm:$0x3] %vm1401_vm10, %v1448_v41  ;;  %2556 = vmatmul.msk.f32.vlgmr.msra.gmra.mxu2 %vm1483_vm11, %v1459_v14  ;;  %2558 = vmatmul.msk.f32.vlgmr.msrb.gmra.mxu3 %vm1483_vm11, %v1459_v14 }
0x15de   :  { %1442 = vst.msk [vmem:[#allocation5 + $0xa] sm:$0x3] %vm1401_vm10, %v1440_v0  ;;  %2088 = vmatpush.msra.mxu2 %v3684_v60  ;;  %2113 = vmatpush.msrb.mxu3 %v3689_v24 }
0x15e0   :  { %2089 = vmatpush.msra.mxu2 %v3694_v61  ;;  %2114 = vmatpush.msrb.mxu3 %v3701_v25 }
0x15e2   :  { %2090 = vmatpush.msra.mxu2 %v3706_v62  ;;  %2115 = vmatpush.msrb.mxu3 %v3711_v27 }
0x15e4   :  { %2091 = vmatpush.msra.mxu2 %v3720_v31  ;;  %2116 = vmatpush.msrb.mxu3 %v3725_v63 }
0x15e5   :  { %v1460_v3 = vld [vmem:[#allocation5 + $0x8] sm:$0xff] }
0x15e6   :  { %2557 = vmatmul.msk.f32.gmra.mxu2 %vm1483_vm11, %v1460_v3  ;;  %2559 = vmatmul.msk.f32.gmra.mxu3 %vm1483_vm11, %v1460_v3 }
0x1660   :  { %v1507_v58 = vpop.f32.mrf.mxu2  ;;  %v1530_v7 = vpop.f32.mrf.mxu3 }
0x1661   :  { %v1508_v8 = vadd.f32 %v1507_v58, %v1479_v5  ;;  %v1531_v48 = vadd.f32 %v1530_v7, %v1480_v6 }
0x1663   :  { %1544 = vst [vmem:[#allocation6] sm:$0xff] %v1508_v8 }
0x1664   :  { %1545 = vst [vmem:[#allocation6 + $0x18] sm:$0xff] %v1531_v48 }
0x1669   :  { %v1510_v15 = vpop.f32.mrf.mxu2  ;;  %v1533_v19 = vpop.f32.mrf.mxu3 }
0x166a   :  { %v1548_v45 = vld [vmem:[#allocation6] sm:$0x3]  ;;  %v1552_v9 = vld [vmem:[#allocation6] sm:$0xc]  ;;  %v1557_v11 = vld [vmem:[#allocation6] sm:$0x30]  ;;  %v1511_v18 = vadd.f32 %v1510_v15, %v1479_v5  ;;  %v1534_v23 = vadd.f32 %v1533_v19, %v1480_v6 }
0x166b   :  { %1549 = vst [vmem:[#allocation7] sm:$0x3] %v1548_v45  ;;  %v1562_v12 = vld [vmem:[#allocation6] sm:$0xc0]  ;;  %v1570_v13 = vld [vmem:[#allocation6 + $0x18] sm:$0xc0] }
0x166c   :  { %1554 = vst [vmem:[#allocation7 + $0x2] sm:$0xc] %v1552_v9  ;;  %v1575_v16 = vld [vmem:[#allocation6 + $0x18] sm:$0x30]  ;;  %v1580_v17 = vld [vmem:[#allocation6 + $0x18] sm:$0xc] }
0x166d   :  { %1559 = vst [vmem:[#allocation7 + $0x4] sm:$0x30] %v1557_v11  ;;  %v1585_v22 = vld [vmem:[#allocation6 + $0x18] sm:$0x3] }
0x166e   :  { %1564 = vst [vmem:[#allocation7 + $0x6] sm:$0xc0] %v1562_v12 }
0x166f   :  { %1571 = vst [vmem:[#allocation7 + $0xc] sm:$0xc0] %v1570_v13 }
0x1670   :  { %1576 = vst [vmem:[#allocation7 + $0x12] sm:$0x30] %v1575_v16 }
0x1671   :  { %1581 = vst [vmem:[#allocation7 + $0x18] sm:$0xc] %v1580_v17 }
0x1672   :  { %1586 = vst [vmem:[#allocation7 + $0x1e] sm:$0x3] %v1585_v22 }
0x1673   :  { %1546 = vst [vmem:[#allocation6 + $0x8] sm:$0xff] %v1511_v18 }
0x1674   :  { %1547 = vst [vmem:[#allocation6 + $0x10] sm:$0xff] %v1534_v23 }
0x167a   :  { %v1567_v1 = vld [vmem:[#allocation6 + $0x8] sm:$0x3]  ;;  %v1572_v20 = vld [vmem:[#allocation6 + $0x8] sm:$0xc]  ;;  %v1577_v26 = vld [vmem:[#allocation6 + $0x8] sm:$0x30] }
0x167b   :  { %1569 = vst [vmem:[#allocation7 + $0x10] sm:$0x3] %v1567_v1  ;;  %v1582_v29 = vld [vmem:[#allocation6 + $0x8] sm:$0xc0]  ;;  %v1550_v21 = vld [vmem:[#allocation6 + $0x10] sm:$0xc0] }
0x167c   :  { %1574 = vst [vmem:[#allocation7 + $0x12] sm:$0xc] %v1572_v20  ;;  %v1555_v28 = vld [vmem:[#allocation6 + $0x10] sm:$0x30]  ;;  %v1560_v30 = vld [vmem:[#allocation6 + $0x10] sm:$0xc] }
0x167d   :  { %1579 = vst [vmem:[#allocation7 + $0x14] sm:$0x30] %v1577_v26  ;;  %v1565_v32 = vld [vmem:[#allocation6 + $0x10] sm:$0x3] }
0x167e   :  { %1584 = vst [vmem:[#allocation7 + $0x16] sm:$0xc0] %v1582_v29 }
0x167f   :  { %1551 = vst [vmem:[#allocation7 - $0x4] sm:$0xc0] %v1550_v21 }
0x1680   :  { %1556 = vst [vmem:[#allocation7 + $0x2] sm:$0x30] %v1555_v28 }
0x1681   :  { %1561 = vst [vmem:[#allocation7 + $0x8] sm:$0xc] %v1560_v30 }
0x1682   :  { %1566 = vst [vmem:[#allocation7 + $0xe] sm:$0x3] %v1565_v32 }
0x1686   :  { %v1627_v38 = vld [vmem:[#allocation7] sm:$0xf] }
0x1687   :  { %v1628_v39 = vadd.f32 %v1627_v38, %v1625_v37  ;;  %v1725_v13 = vld [vmem:[#allocation7 + $0x4] sm:$0xf] }
0x1689   :  { %v1629_v42 = vmul.f32 %v1628_v39, %v3462_v10 }
0x168b   :  { %v2562_v43 = vmul.f32 -1.442695, %v1629_v42 }
0x168d   :  { %2653 = vpow2.f32 %v2562_v43 }
0x1693   :  { %v2654_v44 = vpop.eup %2653 }
0x1694   :  { %v1633_v46 = vadd.f32 1.0, %v2654_v44 }
0x1696   :  { %2655 = vrcp.f32 %v1633_v46  ;;  %v1645_v51 = vand.u32 2147483648, %v1633_v46  ;;  %v1643_v53 = vand.u32 2147483647, %v1633_v46  ;;  %vm1639_vm13 = vweird.f32 %v1633_v46 }
0x1698   :  { %v1646_v55 = vor.u32 1.1754944e-38, %v1645_v51  ;;  %vm1644_vm15 = vcmp.eq.f32.partialorder %v1643_v53, 8.507059e+37 }
0x169c   :  { %v2656_v47 = vpop.eup %2655 }
0x169d   :  { %v1635_v49 = vmul.f32 %v2656_v47, %v1633_v46  ;;  %vm1640_vm12 = vweird.f32 %v2656_v47 }
0x169e   :  { %vm1641_vm14 = vmor %vm1639_vm13, %vm1640_vm12 }
0x169f   :  { %v1636_v50 = vsub.f32 1.0, %v1635_v49 }
0x16a1   :  { %v1637_v52 = vmul.f32 %v2656_v47, %v1636_v50 }
0x16a3   :  { %v1638_v54 = vadd.f32 %v2656_v47, %v1637_v52 }
0x16a5   :  { %v1642_v56 = vsel %vm1641_vm14, %v2656_v47, %v1638_v54 }
0x16a6   :  { %v1647_v57 = vsel %vm1644_vm15, %v1646_v55, %v1642_v56  ;;  %v1824_v56 = vld [vmem:[#allocation7 + $0x8] sm:$0xf] }
0x16a7   :  { %v1649_v59 = vmul.f32 2.0, %v1647_v57  ;;  %v1651_v14 = vmul.f32 0.0, %v1647_v57 }
0x16a9   :  { %v2563_v34 = vadd.f32 -1.0, %v1649_v59 }
0x16ab   :  { %1653 = vrot.lane.b32.xlu0 %v2563_v34, %s2737_s8 }
0x171d   :  { %v1654_v41 = vpop.permute.xlu0 %1653 }
0x171e   :  { %v1656_v0 = vmul.f32 %v1654_v41, %v1647_v57 }
0x1720   :  { %1658 = vrot.lane.b32.xlu1 %v1656_v0, %s2738_s19 }
0x1792   :  { %v1659_v3 = vpop.permute.xlu1 %1658 }
0x1793   :  { %v1661_v4 = vadd.f32 %v1659_v3, %v1651_v14 }
0x1795   :  { %2657 = vtanh.f32 %v1661_v4 }
0x179b   :  { %v2658_v5 = vpop.eup %2657 }
0x179c   :  { %1664 = vrot.lane.b32.xlu2 %v2658_v5, %s2737_s8 }
0x17f6   :  { %v1665_v6 = vpop.permute.xlu2 %1664 }
0x17f7   :  { %v3779_v58 = vmul.f32 %v1665_v6, %v1647_v57 }
0x17f9   :  { %v1674_v7 = vmul.f32 %v3411_v33, %v3779_v58  ;;  %v1673_v8 = vmul.f32 %v3443_v40, %v3779_v58 }
0x17fb   :  { %1676 = vrot.lane.b32.xlu0 %v1674_v7, %s2738_s19  ;;  %1701 = vrot.lane.b32.xlu1 %v1673_v8, %s2738_s19 }
0x186d   :  { %v1677_v48 = vpop.permute.xlu0 %1676  ;;  %v1702_v45 = vpop.permute.xlu1 %1701 }
0x186e   :  { %2564 = vmatmul.msk.f32.vlgmr.msrb.gmra.mxu0 %vm444_vm0, %v1677_v48  ;;  %2565 = vmatmul.msk.f32.vlgmr.msra.gmra.mxu1 %vm444_vm0, %v1702_v45 }
0x186f   :  { %1989 = vmatpush.msrb.mxu0 %v3684_v60  ;;  %2014 = vmatpush.msra.mxu1 %v3689_v24 }
0x1871   :  { %1990 = vmatpush.msrb.mxu0 %v3694_v61  ;;  %2015 = vmatpush.msra.mxu1 %v3701_v25 }
0x1873   :  { %1991 = vmatpush.msrb.mxu0 %v3706_v62  ;;  %2016 = vmatpush.msra.mxu1 %v3711_v27 }
0x1875   :  { %1992 = vmatpush.msrb.mxu0 %v3720_v31  ;;  %2017 = vmatpush.msra.mxu1 %v3725_v63 }
0x18eb   :  { %v1697_v9 = vpop.f32.mrf.mxu0  ;;  %v1722_v11 = vpop.f32.mrf.mxu1 }
0x18ec   :  { %v1723_v12 = vadd.f32 %v1722_v11, %v1697_v9 }
0x18ee   :  { %v1726_v15 = vadd.f32 %v1725_v13, %v1723_v12 }
0x18f0   :  { %v1727_v16 = vmul.f32 %v1726_v15, %v3462_v10 }
0x18f2   :  { %v2566_v19 = vmul.f32 -1.442695, %v1727_v16 }
0x18f4   :  { %2659 = vpow2.f32 %v2566_v19 }
0x18fa   :  { %v2660_v17 = vpop.eup %2659 }
0x18fb   :  { %v1731_v22 = vadd.f32 1.0, %v2660_v17 }
0x18fd   :  { %2661 = vrcp.f32 %v1731_v22  ;;  %v1743_v20 = vand.u32 2147483648, %v1731_v22  ;;  %v1741_v29 = vand.u32 2147483647, %v1731_v22  ;;  %vm1737_vm2 = vweird.f32 %v1731_v22 }
0x18ff   :  { %v1744_v28 = vor.u32 1.1754944e-38, %v1743_v20  ;;  %vm1742_vm4 = vcmp.eq.f32.partialorder %v1741_v29, 8.507059e+37 }
0x1903   :  { %v2662_v18 = vpop.eup %2661 }
0x1904   :  { %v1733_v23 = vmul.f32 %v2662_v18, %v1731_v22  ;;  %vm1738_vm1 = vweird.f32 %v2662_v18 }
0x1905   :  { %vm1739_vm3 = vmor %vm1737_vm2, %vm1738_vm1 }
0x1906   :  { %v1734_v1 = vsub.f32 1.0, %v1733_v23 }
0x1908   :  { %v1735_v26 = vmul.f32 %v2662_v18, %v1734_v1 }
0x190a   :  { %v1736_v21 = vadd.f32 %v2662_v18, %v1735_v26 }
0x190c   :  { %v1740_v30 = vsel %vm1739_vm3, %v2662_v18, %v1736_v21 }
0x190d   :  { %v1745_v32 = vsel %vm1742_vm4, %v1744_v28, %v1740_v30  ;;  %v1923_v30 = vld [vmem:[#allocation7 + $0xc] sm:$0xf] }
0x190e   :  { %v1747_v35 = vmul.f32 2.0, %v1745_v32  ;;  %v1749_v39 = vmul.f32 %v1745_v32, %v1661_v4 }
0x1910   :  { %v2567_v36 = vadd.f32 -1.0, %v1747_v35 }
0x1912   :  { %1751 = vrot.lane.b32.xlu2 %v2567_v36, %s2737_s8 }
0x196c   :  { %v1752_v37 = vpop.permute.xlu2 %1751 }
0x196d   :  { %v1754_v38 = vmul.f32 %v1752_v37, %v1745_v32 }
0x196f   :  { %1756 = vrot.lane.b32.xlu0 %v1754_v38, %s2738_s19 }
0x19e1   :  { %v1757_v42 = vpop.permute.xlu0 %1756 }
0x19e2   :  { %v1759_v43 = vadd.f32 %v1757_v42, %v1749_v39 }
0x19e4   :  { %2663 = vtanh.f32 %v1759_v43 }
0x19ea   :  { %v2664_v44 = vpop.eup %2663 }
0x19eb   :  { %1762 = vrot.lane.b32.xlu1 %v2664_v44, %s2737_s8 }
0x1a5d   :  { %v1763_v46 = vpop.permute.xlu1 %1762 }
0x1a5e   :  { %v3801_v47 = vmul.f32 %v1763_v46, %v1745_v32 }
0x1a60   :  { %v1773_v49 = vmul.f32 %v3411_v33, %v3801_v47  ;;  %v1772_v50 = vmul.f32 %v3443_v40, %v3801_v47 }
0x1a62   :  { %1775 = vrot.lane.b32.xlu2 %v1773_v49, %s2738_s19  ;;  %1800 = vrot.lane.b32.xlu0 %v1772_v50, %s2738_s19 }
0x1abc   :  { %v1776_v51 = vpop.permute.xlu2 %1775 }
0x1abd   :  { %2568 = vmatmul.msk.f32.vlgmr.msra.gmra.mxu0 %vm444_vm0, %v1776_v51 }
0x1abe   :  { %2187 = vmatpush.msra.mxu0 %v3684_v60 }
0x1ac0   :  { %2188 = vmatpush.msra.mxu0 %v3694_v61 }
0x1ac2   :  { %2189 = vmatpush.msra.mxu0 %v3706_v62 }
0x1ac4   :  { %2190 = vmatpush.msra.mxu0 %v3720_v31 }
0x1ad4   :  { %v1801_v52 = vpop.permute.xlu0 %1800 }
0x1ad5   :  { %2569 = vmatmul.msk.f32.vlgmr.msrb.gmra.mxu1 %vm444_vm0, %v1801_v52 }
0x1ad6   :  { %2212 = vmatpush.msrb.mxu1 %v3689_v24 }
0x1ad8   :  { %2213 = vmatpush.msrb.mxu1 %v3701_v25 }
0x1ada   :  { %2214 = vmatpush.msrb.mxu1 %v3711_v27 }
0x1adc   :  { %2215 = vmatpush.msrb.mxu1 %v3725_v63 }
0x1b3a   :  { %v1796_v53 = vpop.f32.mrf.mxu0 }
0x1b52   :  { %v1821_v54 = vpop.f32.mrf.mxu1 }
0x1b53   :  { %v1822_v55 = vadd.f32 %v1821_v54, %v1796_v53 }
0x1b55   :  { %v1825_v57 = vadd.f32 %v1824_v56, %v1822_v55 }
0x1b57   :  { %v1826_v59 = vmul.f32 %v1825_v57, %v3462_v10 }
0x1b59   :  { %v2570_v34 = vmul.f32 -1.442695, %v1826_v59 }
0x1b5b   :  { %2665 = vpow2.f32 %v2570_v34 }
0x1b61   :  { %v2666_v41 = vpop.eup %2665 }
0x1b62   :  { %v1830_v0 = vadd.f32 1.0, %v2666_v41 }
0x1b64   :  { %2667 = vrcp.f32 %v1830_v0  ;;  %v1842_v5 = vand.u32 2147483648, %v1830_v0  ;;  %v1840_v7 = vand.u32 2147483647, %v1830_v0  ;;  %vm1836_vm6 = vweird.f32 %v1830_v0 }
0x1b66   :  { %v1843_v48 = vor.u32 1.1754944e-38, %v1842_v5  ;;  %vm1841_vm12 = vcmp.eq.f32.partialorder %v1840_v7, 8.507059e+37 }
0x1b6a   :  { %v2668_v14 = vpop.eup %2667 }
0x1b6b   :  { %v1832_v3 = vmul.f32 %v2668_v14, %v1830_v0  ;;  %vm1837_vm5 = vweird.f32 %v2668_v14 }
0x1b6c   :  { %vm1838_vm7 = vmor %vm1836_vm6, %vm1837_vm5 }
0x1b6d   :  { %v1833_v4 = vsub.f32 1.0, %v1832_v3 }
0x1b6f   :  { %v1834_v6 = vmul.f32 %v2668_v14, %v1833_v4  ;;  %v2022_v4 = vld [vmem:[#allocation7 + $0x10] sm:$0xf] }
0x1b71   :  { %v1835_v8 = vadd.f32 %v2668_v14, %v1834_v6 }
0x1b73   :  { %v1839_v45 = vsel %vm1838_vm7, %v2668_v14, %v1835_v8 }
0x1b74   :  { %v1844_v9 = vsel %vm1841_vm12, %v1843_v48, %v1839_v45 }
0x1b75   :  { %v1846_v11 = vmul.f32 2.0, %v1844_v9  ;;  %v1848_v16 = vmul.f32 %v1844_v9, %v1759_v43 }
0x1b77   :  { %v2571_v12 = vadd.f32 -1.0, %v1846_v11 }
0x1b79   :  { %1850 = vrot.lane.b32.xlu1 %v2571_v12, %s2737_s8 }
0x1beb   :  { %v1851_v13 = vpop.permute.xlu1 %1850 }
0x1bec   :  { %v1853_v15 = vmul.f32 %v1851_v13, %v1844_v9 }
0x1bee   :  { %1855 = vrot.lane.b32.xlu2 %v1853_v15, %s2738_s19 }
0x1c48   :  { %v1856_v19 = vpop.permute.xlu2 %1855 }
0x1c49   :  { %v1858_v17 = vadd.f32 %v1856_v19, %v1848_v16 }
0x1c4b   :  { %2669 = vtanh.f32 %v1858_v17 }
0x1c51   :  { %v2670_v22 = vpop.eup %2669 }
0x1c52   :  { %1861 = vrot.lane.b32.xlu0 %v2670_v22, %s2737_s8 }
0x1cc4   :  { %v1862_v18 = vpop.permute.xlu0 %1861 }
0x1cc5   :  { %v3823_v23 = vmul.f32 %v1862_v18, %v1844_v9 }
0x1cc7   :  { %v1872_v1 = vmul.f32 %v3411_v33, %v3823_v23  ;;  %v1871_v20 = vmul.f32 %v3443_v40, %v3823_v23 }
0x1cc9   :  { %1874 = vrot.lane.b32.xlu1 %v1872_v1, %s2738_s19  ;;  %1899 = vrot.lane.b32.xlu2 %v1871_v20, %s2738_s19 }
0x1d23   :  { %v1900_v26 = vpop.permute.xlu2 %1899 }
0x1d24   :  { %2573 = vmatmul.msk.f32.vlgmr.msra.gmra.mxu3 %vm444_vm0, %v1900_v26 }
0x1d25   :  { %2311 = vmatpush.msra.mxu3 %v3689_v24 }
0x1d27   :  { %2312 = vmatpush.msra.mxu3 %v3701_v25 }
0x1d29   :  { %2313 = vmatpush.msra.mxu3 %v3711_v27 }
0x1d2b   :  { %2314 = vmatpush.msra.mxu3 %v3725_v63 }
0x1d3b   :  { %v1875_v29 = vpop.permute.xlu1 %1874 }
0x1d3c   :  { %2572 = vmatmul.msk.f32.vlgmr.msrb.gmra.mxu2 %vm444_vm0, %v1875_v29 }
0x1d3d   :  { %2286 = vmatpush.msrb.mxu2 %v3684_v60 }
0x1d3f   :  { %2287 = vmatpush.msrb.mxu2 %v3694_v61 }
0x1d41   :  { %2288 = vmatpush.msrb.mxu2 %v3706_v62 }
0x1d43   :  { %2289 = vmatpush.msrb.mxu2 %v3720_v31 }
0x1da7   :  { %v1920_v21 = vpop.f32.mrf.mxu3 }
0x1dbf   :  { %v1895_v28 = vpop.f32.mrf.mxu2 }
0x1dc0   :  { %v1921_v24 = vadd.f32 %v1920_v21, %v1895_v28 }
0x1dc2   :  { %v1924_v25 = vadd.f32 %v1923_v30, %v1921_v24 }
0x1dc4   :  { %v1925_v27 = vmul.f32 %v1924_v25, %v3462_v10 }
0x1dc6   :  { %v2574_v32 = vmul.f32 -1.442695, %v1925_v27 }
0x1dc8   :  { %2671 = vpow2.f32 %v2574_v32 }
0x1dce   :  { %v2672_v63 = vpop.eup %2671 }
0x1dcf   :  { %v1929_v35 = vadd.f32 1.0, %v2672_v63 }
0x1dd1   :  { %2673 = vrcp.f32 %v1929_v35  ;;  %v1941_v61 = vand.u32 2147483648, %v1929_v35  ;;  %v1939_v62 = vand.u32 2147483647, %v1929_v35  ;;  %vm1935_vm14 = vweird.f32 %v1929_v35 }
0x1dd3   :  { %v1942_v39 = vor.u32 1.1754944e-38, %v1941_v61  ;;  %vm1940_vm1 = vcmp.eq.f32.partialorder %v1939_v62, 8.507059e+37  ;;  %v2121_v61 = vld [vmem:[#allocation7 + $0x14] sm:$0xf] }
0x1dd7   :  { %v2674_v36 = vpop.eup %2673 }
0x1dd8   :  { %v1931_v60 = vmul.f32 %v2674_v36, %v1929_v35  ;;  %vm1936_vm13 = vweird.f32 %v2674_v36 }
0x1dd9   :  { %vm1937_vm15 = vmor %vm1935_vm14, %vm1936_vm13 }
0x1dda   :  { %v1932_v37 = vsub.f32 1.0, %v1931_v60 }
0x1ddc   :  { %v1933_v38 = vmul.f32 %v2674_v36, %v1932_v37 }
0x1dde   :  { %v1934_v31 = vadd.f32 %v2674_v36, %v1933_v38 }
0x1de0   :  { %v1938_v42 = vsel %vm1937_vm15, %v2674_v36, %v1934_v31 }
0x1de1   :  { %v1943_v43 = vsel %vm1940_vm1, %v1942_v39, %v1938_v42 }
0x1de2   :  { %v1945_v44 = vmul.f32 2.0, %v1943_v43  ;;  %v1947_v51 = vmul.f32 %v1943_v43, %v1858_v17 }
0x1de4   :  { %v2575_v46 = vadd.f32 -1.0, %v1945_v44 }
0x1de6   :  { %1949 = vrot.lane.b32.xlu0 %v2575_v46, %s2737_s8 }
0x1e58   :  { %v1950_v49 = vpop.permute.xlu0 %1949 }
0x1e59   :  { %v1952_v50 = vmul.f32 %v1950_v49, %v1943_v43 }
0x1e5b   :  { %1954 = vrot.lane.b32.xlu1 %v1952_v50, %s2738_s19 }
0x1ecd   :  { %v1955_v52 = vpop.permute.xlu1 %1954 }
0x1ece   :  { %v1957_v53 = vadd.f32 %v1955_v52, %v1947_v51 }
0x1ed0   :  { %2675 = vtanh.f32 %v1957_v53 }
0x1ed6   :  { %v2676_v54 = vpop.eup %2675 }
0x1ed7   :  { %1960 = vrot.lane.b32.xlu2 %v2676_v54, %s2737_s8 }
0x1f31   :  { %v1961_v55 = vpop.permute.xlu2 %1960 }
0x1f32   :  { %v3845_v56 = vmul.f32 %v1961_v55, %v1943_v43 }
0x1f34   :  { %v1971_v57 = vmul.f32 %v3411_v33, %v3845_v56  ;;  %v1970_v59 = vmul.f32 %v3443_v40, %v3845_v56 }
0x1f36   :  { %1973 = vrot.lane.b32.xlu0 %v1971_v57, %s2738_s19  ;;  %1998 = vrot.lane.b32.xlu1 %v1970_v59, %s2738_s19 }
0x1fa8   :  { %v1974_v34 = vpop.permute.xlu0 %1973  ;;  %v1999_v41 = vpop.permute.xlu1 %1998 }
0x1fa9   :  { %2576 = vmatmul.msk.f32.vlgmr.msrb.gmra.mxu0 %vm444_vm0, %v1974_v34  ;;  %2577 = vmatmul.msk.f32.vlgmr.msra.gmra.mxu1 %vm444_vm0, %v1999_v41 }
0x2026   :  { %v1994_v0 = vpop.f32.mrf.mxu0  ;;  %v2019_v14 = vpop.f32.mrf.mxu1 }
0x2027   :  { %v2020_v3 = vadd.f32 %v2019_v14, %v1994_v0 }
0x2029   :  { %v2023_v5 = vadd.f32 %v2022_v4, %v2020_v3 }
0x202b   :  { %v2024_v6 = vmul.f32 %v2023_v5, %v3462_v10 }
0x202d   :  { %v2578_v7 = vmul.f32 -1.442695, %v2024_v6 }
0x202f   :  { %2677 = vpow2.f32 %v2578_v7 }
0x2035   :  { %v2678_v8 = vpop.eup %2677 }
0x2036   :  { %v2028_v48 = vadd.f32 1.0, %v2678_v8 }
0x2038   :  { %2679 = vrcp.f32 %v2028_v48  ;;  %v2040_v12 = vand.u32 2147483648, %v2028_v48  ;;  %v2038_v15 = vand.u32 2147483647, %v2028_v48  ;;  %vm2034_vm3 = vweird.f32 %v2028_v48 }
0x203a   :  { %v2041_v19 = vor.u32 1.1754944e-38, %v2040_v12  ;;  %vm2039_vm5 = vcmp.eq.f32.partialorder %v2038_v15, 8.507059e+37 }
0x203e   :  { %v2680_v45 = vpop.eup %2679 }
0x203f   :  { %v2030_v9 = vmul.f32 %v2680_v45, %v2028_v48  ;;  %vm2035_vm2 = vweird.f32 %v2680_v45 }
0x2040   :  { %vm2036_vm4 = vmor %vm2034_vm3, %vm2035_vm2 }
0x2041   :  { %v2031_v11 = vsub.f32 1.0, %v2030_v9 }
0x2043   :  { %v2032_v13 = vmul.f32 %v2680_v45, %v2031_v11 }
0x2045   :  { %v2033_v16 = vadd.f32 %v2680_v45, %v2032_v13  ;;  %v2220_v13 = vld [vmem:[#allocation7 + $0x18] sm:$0xf] }
0x2047   :  { %v2037_v17 = vsel %vm2036_vm4, %v2680_v45, %v2033_v16 }
0x2048   :  { %v2042_v22 = vsel %vm2039_vm5, %v2041_v19, %v2037_v17 }
0x2049   :  { %v2044_v18 = vmul.f32 2.0, %v2042_v22  ;;  %v2046_v29 = vmul.f32 %v2042_v22, %v1957_v53 }
0x204b   :  { %v2579_v1 = vadd.f32 -1.0, %v2044_v18 }
0x204d   :  { %2048 = vrot.lane.b32.xlu2 %v2579_v1, %s2737_s8 }
0x20a7   :  { %v2049_v20 = vpop.permute.xlu2 %2048 }
0x20a8   :  { %v2051_v26 = vmul.f32 %v2049_v20, %v2042_v22 }
0x20aa   :  { %2053 = vrot.lane.b32.xlu0 %v2051_v26, %s2738_s19 }
0x211c   :  { %v2054_v21 = vpop.permute.xlu0 %2053 }
0x211d   :  { %v2056_v28 = vadd.f32 %v2054_v21, %v2046_v29 }
0x211f   :  { %2681 = vtanh.f32 %v2056_v28 }
0x2125   :  { %v2682_v24 = vpop.eup %2681 }
0x2126   :  { %2059 = vrot.lane.b32.xlu1 %v2682_v24, %s2737_s8 }
0x2198   :  { %v2060_v30 = vpop.permute.xlu1 %2059 }
0x2199   :  { %v3859_v25 = vmul.f32 %v2060_v30, %v2042_v22 }
0x219b   :  { %v2070_v27 = vmul.f32 %v3411_v33, %v3859_v25  ;;  %v2069_v32 = vmul.f32 %v3443_v40, %v3859_v25 }
0x219d   :  { %2072 = vrot.lane.b32.xlu2 %v2070_v27, %s2738_s19  ;;  %2097 = vrot.lane.b32.xlu0 %v2069_v32, %s2738_s19 }
0x21f7   :  { %v2073_v63 = vpop.permute.xlu2 %2072 }
0x21f8   :  { %2580 = vmatmul.msk.f32.vlgmr.msra.gmra.mxu2 %vm444_vm0, %v2073_v63 }
0x220f   :  { %v2098_v35 = vpop.permute.xlu0 %2097 }
0x2210   :  { %2581 = vmatmul.msk.f32.vlgmr.msrb.gmra.mxu3 %vm444_vm0, %v2098_v35 }
0x227b   :  { %v2093_v36 = vpop.f32.mrf.mxu2 }
0x2293   :  { %v2118_v60 = vpop.f32.mrf.mxu3 }
0x2294   :  { %v2119_v37 = vadd.f32 %v2118_v60, %v2093_v36 }
0x2296   :  { %v2122_v38 = vadd.f32 %v2121_v61, %v2119_v37 }
0x2298   :  { %v2123_v62 = vmul.f32 %v2122_v38, %v3462_v10 }
0x229a   :  { %v2582_v31 = vmul.f32 -1.442695, %v2123_v62 }
0x229c   :  { %2683 = vpow2.f32 %v2582_v31 }
0x22a2   :  { %v2684_v39 = vpop.eup %2683 }
0x22a3   :  { %v2127_v42 = vadd.f32 1.0, %v2684_v39 }
0x22a5   :  { %2685 = vrcp.f32 %v2127_v42  ;;  %v2139_v49 = vand.u32 2147483648, %v2127_v42  ;;  %v2137_v51 = vand.u32 2147483647, %v2127_v42  ;;  %vm2133_vm7 = vweird.f32 %v2127_v42 }
0x22a7   :  { %v2140_v53 = vor.u32 1.1754944e-38, %v2139_v49  ;;  %vm2138_vm13 = vcmp.eq.f32.partialorder %v2137_v51, 8.507059e+37  ;;  %v2319_v51 = vld [vmem:[#allocation7 + $0x1c] sm:$0xf] }
0x22ab   :  { %v2686_v43 = vpop.eup %2685 }
0x22ac   :  { %v2129_v44 = vmul.f32 %v2686_v43, %v2127_v42  ;;  %vm2134_vm6 = vweird.f32 %v2686_v43 }
0x22ad   :  { %vm2135_vm12 = vmor %vm2133_vm7, %vm2134_vm6 }
0x22ae   :  { %v2130_v46 = vsub.f32 1.0, %v2129_v44 }
0x22b0   :  { %v2131_v50 = vmul.f32 %v2686_v43, %v2130_v46 }
0x22b2   :  { %v2132_v52 = vadd.f32 %v2686_v43, %v2131_v50 }
0x22b4   :  { %v2136_v54 = vsel %vm2135_vm12, %v2686_v43, %v2132_v52 }
0x22b5   :  { %v2141_v55 = vsel %vm2138_vm13, %v2140_v53, %v2136_v54 }
0x22b6   :  { %v2143_v57 = vmul.f32 2.0, %v2141_v55  ;;  %v2145_v0 = vmul.f32 %v2141_v55, %v2056_v28 }
0x22b8   :  { %v2583_v59 = vadd.f32 -1.0, %v2143_v57 }
0x22ba   :  { %2147 = vrot.lane.b32.xlu1 %v2583_v59, %s2737_s8 }
0x232c   :  { %v2148_v34 = vpop.permute.xlu1 %2147 }
0x232d   :  { %v2150_v41 = vmul.f32 %v2148_v34, %v2141_v55 }
0x232f   :  { %2152 = vrot.lane.b32.xlu2 %v2150_v41, %s2738_s19 }
0x2389   :  { %v2153_v14 = vpop.permute.xlu2 %2152 }
0x238a   :  { %v2155_v3 = vadd.f32 %v2153_v14, %v2145_v0 }
0x238c   :  { %2687 = vtanh.f32 %v2155_v3 }
0x2392   :  { %v2688_v4 = vpop.eup %2687 }
0x2393   :  { %2158 = vrot.lane.b32.xlu0 %v2688_v4, %s2737_s8 }
0x2405   :  { %v2159_v5 = vpop.permute.xlu0 %2158 }
0x2406   :  { %v3873_v6 = vmul.f32 %v2159_v5, %v2141_v55 }
0x2408   :  { %v2169_v7 = vmul.f32 %v3411_v33, %v3873_v6  ;;  %v2168_v8 = vmul.f32 %v3443_v40, %v3873_v6 }
0x240a   :  { %2171 = vrot.lane.b32.xlu1 %v2169_v7, %s2738_s19  ;;  %2196 = vrot.lane.b32.xlu2 %v2168_v8, %s2738_s19 }
0x2464   :  { %v2197_v48 = vpop.permute.xlu2 %2196 }
0x2465   :  { %2585 = vmatmul.msk.f32.vlgmr.msrb.gmra.mxu1 %vm444_vm0, %v2197_v48 }
0x247c   :  { %v2172_v45 = vpop.permute.xlu1 %2171 }
0x247d   :  { %2584 = vmatmul.msk.f32.vlgmr.msra.gmra.mxu0 %vm444_vm0, %v2172_v45 }
0x24e2   :  { %v2217_v9 = vpop.f32.mrf.mxu1 }
0x24fa   :  { %v2192_v11 = vpop.f32.mrf.mxu0 }
0x24fb   :  { %v2218_v12 = vadd.f32 %v2217_v9, %v2192_v11 }
0x24fd   :  { %v2221_v15 = vadd.f32 %v2220_v13, %v2218_v12 }
0x24ff   :  { %v2222_v16 = vmul.f32 %v2221_v15, %v3462_v10 }
0x2501   :  { %v2586_v19 = vmul.f32 -1.442695, %v2222_v16 }
0x2503   :  { %2689 = vpow2.f32 %v2586_v19 }
0x2509   :  { %v2690_v17 = vpop.eup %2689 }
0x250a   :  { %v2226_v22 = vadd.f32 1.0, %v2690_v17 }
0x250c   :  { %2691 = vrcp.f32 %v2226_v22  ;;  %v2238_v26 = vand.u32 2147483648, %v2226_v22  ;;  %v2236_v21 = vand.u32 2147483647, %v2226_v22  ;;  %vm2232_vm15 = vweird.f32 %v2226_v22 }
0x250e   :  { %v2239_v24 = vor.u32 1.1754944e-38, %v2238_v26  ;;  %vm2237_vm2 = vcmp.eq.f32.partialorder %v2236_v21, 8.507059e+37 }
0x2512   :  { %v2692_v18 = vpop.eup %2691 }
0x2513   :  { %v2228_v1 = vmul.f32 %v2692_v18, %v2226_v22  ;;  %vm2233_vm14 = vweird.f32 %v2692_v18 }
0x2514   :  { %vm2234_vm1 = vmor %vm2232_vm15, %vm2233_vm14 }
0x2515   :  { %v2229_v20 = vsub.f32 1.0, %v2228_v1 }
0x2517   :  { %v2230_v29 = vmul.f32 %v2692_v18, %v2229_v20 }
0x2519   :  { %v2231_v28 = vadd.f32 %v2692_v18, %v2230_v29 }
0x251b   :  { %v2235_v30 = vsel %vm2234_vm1, %v2692_v18, %v2231_v28 }
0x251c   :  { %v2240_v27 = vsel %vm2237_vm2, %v2239_v24, %v2235_v30 }
0x251d   :  { %v2242_v32 = vmul.f32 2.0, %v2240_v27  ;;  %v2244_v60 = vmul.f32 %v2240_v27, %v2155_v3 }
0x251f   :  { %v2587_v63 = vadd.f32 -1.0, %v2242_v32  ;;  %v2438_v32 = vld [vmem:[%s3991_s15 + $0x30] sm:$0xff] }
0x2521   :  { %2246 = vrot.lane.b32.xlu0 %v2587_v63, %s2737_s8  ;;  %v2437_v63 = vld [vmem:[%s3991_s15 + $0x28] sm:$0xff] }
0x2593   :  { %v2247_v35 = vpop.permute.xlu0 %2246 }
0x2594   :  { %v2249_v36 = vmul.f32 %v2247_v35, %v2240_v27  ;;  %v2436_v35 = vld [vmem:[%s3991_s15 + $0x20] sm:$0xff] }
0x2596   :  { %2251 = vrot.lane.b32.xlu1 %v2249_v36, %s2738_s19 }
0x2608   :  { %v2252_v37 = vpop.permute.xlu1 %2251 }
0x2609   :  { %v2254_v61 = vadd.f32 %v2252_v37, %v2244_v60 }
0x260b   :  { %2693 = vtanh.f32 %v2254_v61 }
0x2611   :  { %v2694_v38 = vpop.eup %2693 }
0x2612   :  { %2257 = vrot.lane.b32.xlu2 %v2694_v38, %s2737_s8 }
0x266c   :  { %v2258_v62 = vpop.permute.xlu2 %2257 }
0x266d   :  { %v2260_v31 = vmul.f32 %v2258_v62, %v2240_v27  ;;  %v2439_v27 = vld [vmem:[%s3991_s15 + $0x38] sm:$0xff] }
0x266e   :  { %2458 = vmatpush.msrb.mxu0 %v2439_v27 }
0x266f   :  { %v2268_v39 = vmul.f32 %v3411_v33, %v2260_v31  ;;  %v2267_v42 = vmul.f32 %v3443_v40, %v2260_v31 }
0x2670   :  { %2459 = vmatpush.msrb.mxu0 %v2438_v32 }
0x2671   :  { %2270 = vrot.lane.b32.xlu0 %v2268_v39, %s2738_s19  ;;  %2295 = vrot.lane.b32.xlu1 %v2267_v42, %s2738_s19 }
0x2672   :  { %2460 = vmatpush.msrb.mxu0 %v2437_v63 }
0x2674   :  { %2461 = vmatpush.msrb.mxu0 %v2436_v35 }
0x26e3   :  { %v2271_v43 = vpop.permute.xlu0 %2270  ;;  %v2296_v44 = vpop.permute.xlu1 %2295 }
0x26e4   :  { %2588 = vmatmul.msk.f32.vlgmr.msrb.gmra.mxu2 %vm444_vm0, %v2271_v43  ;;  %2589 = vmatmul.msk.f32.vlgmr.msra.gmra.mxu3 %vm444_vm0, %v2296_v44  ;;  %v2435_v44 = vld [vmem:[%s3991_s15 + $0x18] sm:$0xff] }
0x26e5   :  { %2462 = vmatpush.msrb.mxu0 %v2435_v44 }
0x2767   :  { %v2291_v46 = vpop.f32.mrf.mxu2  ;;  %v2316_v49 = vpop.f32.mrf.mxu3 }
0x2768   :  { %v2317_v50 = vadd.f32 %v2316_v49, %v2291_v46  ;;  %v2434_v46 = vld [vmem:[%s3991_s15 + $0x10] sm:$0xff]  ;;  %v2433_v49 = vld [vmem:[%s3991_s15 + $0x8] sm:$0xff] }
0x2769   :  { %2463 = vmatpush.msrb.mxu0 %v2434_v46 }
0x276a   :  { %v2320_v52 = vadd.f32 %v2319_v51, %v2317_v50  ;;  %v2432_v50 = vld [vmem:[%s3991_s15] sm:$0xff]  ;;  %s2739_s15 = smov [#allocation10]  }
0x276b   :  { %2464 = vmatpush.msrb.mxu0 %v2433_v49 }
0x276c   :  { %v2321_v53 = vmul.f32 %v2320_v52, %v3462_v10 }
0x276d   :  { %2465 = vmatpush.msrb.mxu0 %v2432_v50 }
0x276e   :  { %v2590_v33 = vmul.f32 -1.442695, %v2321_v53 }
0x2770   :  { %2695 = vpow2.f32 %v2590_v33 }
0x2776   :  { %v2696_v40 = vpop.eup %2695 }
0x2777   :  { %v2325_v54 = vadd.f32 1.0, %v2696_v40 }
0x2779   :  { %2697 = vrcp.f32 %v2325_v54  ;;  %v2337_v34 = vand.u32 2147483648, %v2325_v54  ;;  %v2335_v0 = vand.u32 2147483647, %v2325_v54  ;;  %vm2331_vm0 = vweird.f32 %v2325_v54 }
0x277b   :  { %v2338_v3 = vor.u32 1.1754944e-38, %v2337_v34  ;;  %vm2336_vm5 = vcmp.eq.f32.partialorder %v2335_v0, 8.507059e+37 }
0x277f   :  { %v2698_v55 = vpop.eup %2697 }
0x2780   :  { %v2327_v57 = vmul.f32 %v2698_v55, %v2325_v54  ;;  %vm2332_vm3 = vweird.f32 %v2698_v55  ;;  %v2604_v54 = vld [vmem:[%s3992_s16] ss:$0 sm:$0xff]  ;;  %s2502_s16 = sshll.u32 %s2739_s15, 4  ;;  %s2503_s16 = int_to_ptr.vmem [resolvable:$true] %s2502_s16 }
0x2781   :  { %vm2333_vm4 = vmor %vm2331_vm0, %vm2332_vm3 }
0x2782   :  { %v2328_v59 = vsub.f32 1.0, %v2327_v57 }
0x2784   :  { %v2329_v41 = vmul.f32 %v2698_v55, %v2328_v59 }
0x2786   :  { %v2330_v14 = vadd.f32 %v2698_v55, %v2329_v41 }
0x2788   :  { %v2334_v4 = vsel %vm2333_vm4, %v2698_v55, %v2330_v14 }
0x2789   :  { %v2339_v5 = vsel %vm2336_vm5, %v2338_v3, %v2334_v4 }
0x278a   :  { %v2341_v10 = vmul.f32 2.0, %v2339_v5 }
0x278c   :  { %v2591_v7 = vadd.f32 -1.0, %v2341_v10 }
0x278e   :  { %2345 = vrot.lane.b32.xlu2 %v2591_v7, %s2737_s8 }
0x2796   :  { %2064 = vrot.lane.b32.xlu2 %v3859_v25, %s2738_s19  ;;  %v2343_v25 = vmul.f32 %v2339_v5, %v2254_v61 }
0x27e8   :  { %v2346_v8 = vpop.permute.xlu2 %2345 }
0x27e9   :  { %v2348_v48 = vmul.f32 %v2346_v8, %v2339_v5 }
0x27eb   :  { %2350 = vrot.lane.b32.xlu0 %v2348_v48, %s2738_s19 }
0x27f0   :  { %v2065_v45 = vpop.permute.xlu2 %2064 }
0x27f1   :  { %2068 = vst.msk [vmem:[#allocation8 + $0x10] sm:$0xf] %vm698_vm8, %v2065_v45 }
0x27f3   :  { %2163 = vrot.lane.b32.xlu0 %v3873_v6, %s2738_s19 }
0x27f8   :  { %v2398_v9 = vld [vmem:[#allocation8 + $0x10] sm:$0x3]  ;;  %v2392_v22 = vld [vmem:[#allocation8 + $0x12] sm:$0x3] }
0x27f9   :  { %2399 = vst.msk [vmem:[#allocation9 + $0x8] sm:$0x3] %vm1394_vm9, %v2398_v9 }
0x27fb   :  { %1669 = vrot.lane.b32.xlu0 %v3779_v58, %s2738_s19 }
0x2803   :  { %1965 = vrot.lane.b32.xlu0 %v3845_v56, %s2738_s19 }
0x285d   :  { %v2351_v11 = vpop.permute.xlu0 %2350 }
0x285e   :  { %v2353_v12 = vadd.f32 %v2351_v11, %v2343_v25 }
0x2860   :  { %2699 = vtanh.f32 %v2353_v12 }
0x2865   :  { %v2164_v13 = vpop.permute.xlu0 %2163 }
0x2866   :  { %v2700_v15 = vpop.eup %2699  ;;  %2167 = vst.msk [vmem:[#allocation8 + $0x14] sm:$0xf] %vm698_vm8, %v2164_v13 }
0x2867   :  { %2356 = vrot.lane.b32.xlu1 %v2700_v15, %s2737_s8 }
0x286d   :  { %v1670_v6 = vpop.permute.xlu0 %1669  ;;  %v2384_v16 = vld [vmem:[#allocation8 + $0x16] sm:$0x3]  ;;  %v2406_v19 = vld [vmem:[#allocation8 + $0x14] sm:$0x3] }
0x286e   :  { %1672 = vst.msk [vmem:[#allocation8] sm:$0xf] %vm698_vm8, %v1670_v6  ;;  %2386 = vrot.lane.b32.xlu0 %v2384_v16, %s2738_s19 }
0x286f   :  { %2262 = vrot.lane.b32.xlu1 %v2260_v31, %s2738_s19  ;;  %2407 = vst.msk [vmem:[#allocation9 + $0xa] sm:$0x3] %vm1394_vm9, %v2406_v19 }
0x2875   :  { %v1966_v58 = vpop.permute.xlu0 %1965  ;;  %v2366_v56 = vld [vmem:[#allocation8] sm:$0x3]  ;;  %v2424_v30 = vld [vmem:[#allocation8 + $0x2] sm:$0x3] }
0x2876   :  { %1969 = vst.msk [vmem:[#allocation8 + $0xc] sm:$0xf] %vm698_vm8, %v1966_v58 }
0x2877   :  { %1767 = vrot.lane.b32.xlu1 %v3801_v47, %s2738_s19  ;;  %2367 = vst.msk [vmem:[#allocation9] sm:$0x3] %vm1394_vm9, %v2366_v56 }
0x287d   :  { %v2390_v17 = vld [vmem:[#allocation8 + $0xc] sm:$0x3]  ;;  %v2400_v24 = vld [vmem:[#allocation8 + $0xe] sm:$0x3] }
0x287e   :  { %2391 = vst.msk [vmem:[#allocation9 + $0x6] sm:$0x3] %vm1394_vm9, %v2390_v17 }
0x287f   :  { %2394 = vrot.lane.b32.xlu1 %v2392_v22, %s2738_s19 }
0x28d9   :  { %v2357_v18 = vpop.permute.xlu1 %2356 }
0x28da   :  { %v2359_v1 = vmul.f32 %v2357_v18, %v2339_v5 }
0x28dc   :  { %2361 = vrot.lane.b32.xlu2 %v2359_v1, %s2738_s19 }
0x28e0   :  { %v2387_v39 = vpop.permute.xlu0 %2386 }
0x28e1   :  { %v2263_v20 = vpop.permute.xlu1 %2262 }
0x28e2   :  { %2266 = vst.msk [vmem:[#allocation8 + $0x18] sm:$0xf] %vm698_vm8, %v2263_v20 }
0x28e4   :  { %1866 = vrot.lane.b32.xlu2 %v3823_v23, %s2738_s19 }
0x28e9   :  { %v1768_v26 = vpop.permute.xlu1 %1767  ;;  %v2414_v47 = vld [vmem:[#allocation8 + $0x18] sm:$0x3]  ;;  %v2376_v29 = vld [vmem:[#allocation8 + $0x1a] sm:$0x3] }
0x28ea   :  { %1771 = vst.msk [vmem:[#allocation8 + $0x4] sm:$0xf] %vm698_vm8, %v1768_v26 }
0x28eb   :  { %2415 = vst.msk [vmem:[#allocation9 + $0xc] sm:$0x3] %vm1394_vm9, %v2414_v47 }
0x28ec   :  { %2378 = vrot.lane.b32.xlu2 %v2376_v29, %s2738_s19 }
0x28f1   :  { %v2395_v21 = vpop.permute.xlu1 %2394  ;;  %v2374_v28 = vld [vmem:[#allocation8 + $0x4] sm:$0x3]  ;;  %v2416_v62 = vld [vmem:[#allocation8 + $0x6] sm:$0x3] }
0x28f2   :  { %2397 = vst.msk [vmem:[#allocation9 + $0x6] sm:$0x3] %vm1401_vm10, %v2395_v21 }
0x28f3   :  { %2375 = vst.msk [vmem:[#allocation9 + $0x2] sm:$0x3] %vm1394_vm9, %v2374_v28 }
0x28f4   :  { %2402 = vrot.lane.b32.xlu2 %v2400_v24, %s2738_s19 }
0x28fc   :  { %2426 = vrot.lane.b32.xlu2 %v2424_v30, %s2738_s19 }
0x2936   :  { %v2362_v23 = vpop.permute.xlu2 %2361 }
0x2937   :  { %2365 = vst.msk [vmem:[#allocation8 + $0x1c] sm:$0xf] %vm698_vm8, %v2362_v23 }
0x293e   :  { %v1867_v36 = vpop.permute.xlu2 %1866  ;;  %v2368_v60 = vld [vmem:[#allocation8 + $0x1e] sm:$0x3]  ;;  %v2422_v37 = vld [vmem:[#allocation8 + $0x1c] sm:$0x3] }
0x293f   :  { %1870 = vst.msk [vmem:[#allocation8 + $0x8] sm:$0xf] %vm698_vm8, %v1867_v36  ;;  %2370 = vrot.lane.b32.xlu1 %v2368_v60, %s2738_s19  ;;  %vm2473_vm8 = vcmp.lt.s32.totalorder %v3458_v2, 16 }
0x2940   :  { %2423 = vst.msk [vmem:[#allocation9 + $0xe] sm:$0x3] %vm1394_vm9, %v2422_v37 }
0x2946   :  { %v2382_v61 = vld [vmem:[#allocation8 + $0x8] sm:$0x3]  ;;  %v2379_v38 = vpop.permute.xlu2 %2378  ;;  %v2408_v31 = vld [vmem:[#allocation8 + $0xa] sm:$0x3] }
0x2947   :  { %2383 = vst.msk [vmem:[#allocation9 + $0x4] sm:$0x3] %vm1394_vm9, %v2382_v61  ;;  %2418 = vrot.lane.b32.xlu1 %v2416_v62, %s2738_s19  ;;  %2410 = vrot.lane.b32.xlu0 %v2408_v31, %s2738_s19 }
0x2948   :  { %2389 = vst.msk [vmem:[#allocation9 + $0x4] sm:$0x3] %vm1401_vm10, %v2387_v39 }
0x2949   :  { %2381 = vst.msk [vmem:[#allocation9 + $0x2] sm:$0x3] %vm1401_vm10, %v2379_v38 }
0x294e   :  { %v2403_v42 = vpop.permute.xlu2 %2402 }
0x294f   :  { %2405 = vst.msk [vmem:[#allocation9 + $0x8] sm:$0x3] %vm1401_vm10, %v2403_v42 }
0x2956   :  { %v2427_v43 = vpop.permute.xlu2 %2426 }
0x2957   :  { %2429 = vst.msk [vmem:[#allocation9 + $0xe] sm:$0x3] %vm1401_vm10, %v2427_v43 }
0x29b1   :  { %v2371_v51 = vpop.permute.xlu1 %2370 }
0x29b2   :  { %2373 = vst.msk [vmem:[#allocation9] sm:$0x3] %vm1401_vm10, %v2371_v51 }
0x29b9   :  { %v2419_v52 = vpop.permute.xlu1 %2418  ;;  %v2411_v53 = vpop.permute.xlu0 %2410  ;;  %v2430_v33 = vld [vmem:[#allocation9] sm:$0xff] }
0x29ba   :  { %2421 = vst.msk [vmem:[#allocation9 + $0xc] sm:$0x3] %vm1401_vm10, %v2419_v52  ;;  %2592 = vmatmul.msk.f32.vlgmr.msrb.gmra.mxu0 %vm1483_vm11, %v2430_v33 }
0x29bb   :  { %2413 = vst.msk [vmem:[#allocation9 + $0xa] sm:$0x3] %vm1401_vm10, %v2411_v53 }
0x29c2   :  { %v2431_v40 = vld [vmem:[#allocation9 + $0x8] sm:$0xff] }
0x29c3   :  { %2593 = vmatmul.msk.f32.gmra.mxu0 %vm1483_vm11, %v2431_v40 }
0x2a37   :  { %v2467_v55 = vpop.f32.mrf.mxu0 }
0x2a38   :  { %v2468_v57 = vadd.f32 %v2604_v54, %v2467_v55 }
0x2a3a   :  { %v2474_v59 = vsel %vm2473_vm8, %v2468_v57, -1e+09 }
0x2a3b   :  { %2476 = vmax.xlane.f32.xlu0 %v2474_v59 }
0x2a40   :  { %v2470_v34 = vpop.f32.mrf.mxu0 }
0x2a41   :  { %v2471_v41 = vadd.f32 %v2604_v54, %v2470_v34 }
0x2a43   :  { %v2475_v0 = vsel %vm2473_vm8, %v2471_v41, -1e+09 }
0x2a44   :  { %2478 = vmax.xlane.f32.xlu1 %v2475_v0 }
0x2aae   :  { %v2477_v14 = vpop.xlane.xlu0 %2476 }
0x2aaf   :  { %v2480_v3 = vsub.f32 %v2474_v59, %v2477_v14 }
0x2ab1   :  { %v2482_v4 = vmul.f32 1.442695, %v2480_v3 }
0x2ab3   :  { %2701 = vpow2.f32 %v2482_v4 }
0x2ab7   :  { %v2479_v5 = vpop.xlane.xlu1 %2478 }
0x2ab8   :  { %v2481_v10 = vsub.f32 %v2475_v0, %v2479_v5 }
0x2ab9   :  { %v2702_v7 = vpop.eup %2701 }
0x2aba   :  { %v2484_v8 = vmul.f32 1.442695, %v2481_v10  ;;  %2486 = vadd.xlane.f32.xlu2 %v2702_v7 }
0x2abc   :  { %2703 = vpow2.f32 %v2484_v8 }
0x2ac2   :  { %v2704_v48 = vpop.eup %2703 }
0x2ac3   :  { %2488 = vadd.xlane.f32.xlu2 %v2704_v48 }
0x2b2d   :  { %v2487_v2 = vpop.xlane.xlu2 %2486 }
0x2b2e   :  { %2705 = vlog2.f32 %v2487_v2 }
0x2b34   :  { %v2706_v45 = vpop.eup %2705 }
0x2b35   :  { %v2491_v9 = vmul.f32 0.6931472, %v2706_v45 }
0x2b36   :  { %v2489_v25 = vpop.xlane.xlu2 %2488 }
0x2b37   :  { %v2494_v11 = vsub.f32 %v2480_v3, %v2491_v9  ;;  %2707 = vlog2.f32 %v2489_v25 }
0x2b39   :  { %2496 = vst [vmem:[#allocation10] sm:$0xff] %v2494_v11 }
0x2b3d   :  { %v2708_v12 = vpop.eup %2707 }
0x2b3e   :  { %v2493_v13 = vmul.f32 0.6931472, %v2708_v12 }
0x2b40   :  { %v2495_v15 = vsub.f32 %v2481_v10, %v2493_v13 }
0x2b42   :  { %2497 = vst [vmem:[#allocation10 + $0x8] sm:$0xff] %v2495_v15 }
0x2b43   :  { %2510 = dma.vmem_to_hbm [thread:$0]  %s2503_s16, 256, %s2505_s10, [#allocation11], %s2740_s6, %s2740_s6, %s2741_s3  }
0x2b44   :  { %2733 = dma.done.wait [#allocation11], 256  }
0x2b45   :  { %2734 = vsyncadd [#allocation11], 4294967040 }
0x2b46   :  { %2515 = vsyncpa [#allocation11], 1 }

</bundles_post_ra>
